<compile_context>
chip_gen: v7x
topology: tpu7x:2x2x1
jax: 0.10.0
libtpu: 0.0.40
codegen_flags: <defaults>
</compile_context>

<pallas_src>
import math

import jax
import jax.numpy as jnp
from jax import lax
from jax.experimental import pallas as pl
from jax.experimental.pallas import tpu as pltpu


# ------------------------------ fused kernel -------------------------------- #

def fused_net_kernel(x_ref, a1e_ref, a1o_ref, e1e_ref, e1o_ref, b1l_ref,
                     b2e_ref, b2o_ref, e2e_ref, e2o_ref, b2l_ref,
                     w1f_ref, b1f_ref, w2f_ref, b2f_ref, out_ref):
    bt = x_ref.shape[0]

    # Hoist all weight loads out of the per-image loop (VMEM -> values once).
    a1e = a1e_ref[...]       # (5, 28, 120)  conv1 packed weights, even cols
    a1o = a1o_ref[...]       # (5, 28, 120)  conv1 packed weights, odd cols
    e1e = e1e_ref[...]       # (12, 24)      row-pool selection (even rows)
    e1o = e1o_ref[...]       # (12, 24)      row-pool selection (odd rows)
    b1l = b1l_ref[...]       # (1, 120)      conv1 bias tiled over width
    b2e = b2e_ref[...]       # (5, 120, 80)  conv2 packed weights, even cols
    b2o = b2o_ref[...]       # (5, 120, 80)  conv2 packed weights, odd cols
    e2e = e2e_ref[...]       # (4, 8)
    e2o = e2o_ref[...]       # (4, 8)
    b2l = b2l_ref[...]       # (1, 80)
    w1f = w1f_ref[...]       # (4, 80, 64)   fc1 weights (row-permuted, padded)
    b1f = b1f_ref[...]       # (1, 64)
    w2f = w2f_ref[...]       # (64, 128)     fc2 weights (padded, lane-dense)
    b2f = b2f_ref[...]       # (1, 128)

    for b in range(bt):
        x2d = x_ref[b]                                    # (28, 28)

        # ---- conv1 (1->10, k=5) fused with 2x2 maxpool + relu --------------
        ye = jnp.zeros((24, 120), jnp.float32)            # even output columns
        yo = jnp.zeros((24, 120), jnp.float32)            # odd  output columns
        for ki in range(5):
            xs = x2d[ki:ki + 24, :]                       # (24, 28)
            ye = ye + jnp.dot(xs, a1e[ki], preferred_element_type=jnp.float32)
            yo = yo + jnp.dot(xs, a1o[ki], preferred_element_type=jnp.float32)
        ywp = jnp.maximum(ye, yo)                         # width-pooled (24,120)
        he = jnp.dot(e1e, ywp, preferred_element_type=jnp.float32)   # rows 2i
        ho = jnp.dot(e1o, ywp, preferred_element_type=jnp.float32)   # rows 2i+1
        h1 = jnp.maximum(jnp.maximum(he, ho) + b1l, 0.0)  # (12, 120) lane=w*10+c

        # ---- conv2 (10->20, k=5) + 2x2 maxpool + relu ----------------------
        # TODO(synk): training-mode Dropout2d omitted (eval-mode identity).
        y2e = jnp.zeros((8, 80), jnp.float32)
        y2o = jnp.zeros((8, 80), jnp.float32)
        for ki in range(5):
            hs = h1[ki:ki + 8, :]                         # (8, 120)
            y2e = y2e + jnp.dot(hs, b2e[ki], preferred_element_type=jnp.float32)
            y2o = y2o + jnp.dot(hs, b2o[ki], preferred_element_type=jnp.float32)
        y2wp = jnp.maximum(y2e, y2o)                      # (8, 80)
        h2e = jnp.dot(e2e, y2wp, preferred_element_type=jnp.float32)
        h2o = jnp.dot(e2o, y2wp, preferred_element_type=jnp.float32)
        h2 = jnp.maximum(jnp.maximum(h2e, h2o) + b2l, 0.0)  # (4, 80) lane=q*20+c

        # ---- fc1 + relu + (eval-mode dropout = identity) + fc2 -------------
        hidden = b1f                                      # (1, 64)
        for p2 in range(4):
            hidden = hidden + jnp.dot(h2[p2:p2 + 1, :], w1f[p2],
                                      preferred_element_type=jnp.float32)
        hidden = jnp.maximum(hidden, 0.0)
        # TODO(synk): training-mode F.dropout(p=0.5) omitted (eval semantics).
        out_b = jnp.dot(hidden, w2f, preferred_element_type=jnp.float32) + b2f
        out_ref[pl.ds(b, 1), :] = out_b                   # (1, 128) lane-dense


# -------------------- weight packing (plain JAX, tiny) ----------------------- #

def _prep_constants(params):
    (c1w, c1b, c2w, c2b, f1w, f1b, f2w, f2b) = params
    f32 = jnp.float32
    hp = lax.Precision.HIGHEST

    # conv1 as shifted width-matmuls: A1[ki][w_in, w*10+co] = w1[co,0,ki,w_in-w]
    s1 = jnp.stack([jnp.eye(28, 24, k=-kj, dtype=f32) for kj in range(5)])
    a1 = jnp.einsum('jaw,cij->iawc', s1, c1w[:, 0].astype(f32), precision=hp)
    a1e = a1[:, :, 0::2, :].reshape(5, 28, 120)       # even output columns w=2*w2
    a1o = a1[:, :, 1::2, :].reshape(5, 28, 120)       # odd  output columns
    b1l = jnp.tile(c1b.astype(f32), 12).reshape(1, 120)
    e1e = jnp.eye(24, dtype=f32)[0::2, :]             # (12, 24) pick rows 2i
    e1o = jnp.eye(24, dtype=f32)[1::2, :]             # (12, 24) pick rows 2i+1

    # conv2: B2[ki][(w_in*10+ci), (q*20+co)] = w2[co,ci,ki,w_in-q]
    s2 = jnp.stack([jnp.eye(12, 8, k=-kj, dtype=f32) for kj in range(5)])
    b2 = jnp.einsum('jaq,ocij->iacqo', s2, c2w.astype(f32), precision=hp)
    b2e = b2[:, :, :, 0::2, :].reshape(5, 120, 80)
    b2o = b2[:, :, :, 1::2, :].reshape(5, 120, 80)
    b2l = jnp.tile(c2b.astype(f32), 4).reshape(1, 80)
    e2e = jnp.eye(8, dtype=f32)[0::2, :]              # (4, 8)
    e2o = jnp.eye(8, dtype=f32)[1::2, :]

    # fc1: reorder rows from PyTorch's (co, p2, q2) flatten to the kernel's
    # (p2, q2, co) layout, pad hidden 50 -> 64.
    w1f = f1w.astype(f32).reshape(50, 20, 4, 4).transpose(2, 3, 1, 0)
    w1f = w1f.reshape(4, 80, 50)
    w1f = jnp.pad(w1f, ((0, 0), (0, 0), (0, 14)))     # (4, 80, 64)
    b1f = jnp.pad(f1b.astype(f32), (0, 14)).reshape(1, 64)

    # fc2: pad hidden 50 -> 64, output 10 -> 128 (lane-dense HBM store).
    w2f = jnp.pad(f2w.astype(f32).T, ((0, 14), (0, 118)))   # (64, 128)
    b2f = jnp.pad(f2b.astype(f32), (0, 118)).reshape(1, 128)

    return (a1e, a1o, e1e, e1o, b1l, b2e, b2o, e2e, e2o, b2l, w1f, b1f, w2f, b2f)


# --------------------------------- wrapper ----------------------------------- #

def net_forward(x_nchw, params, block_b=8):
    B = x_nchw.shape[0]
    assert x_nchw.shape[1:] == (1, 28, 28), x_nchw.shape

    consts = _prep_constants(params)

    bb = min(block_b, B)
    b_pad = ((B + bb - 1) // bb) * bb
    x = x_nchw[:, 0, :, :].astype(jnp.float32)            # (B, 28, 28)
    if b_pad != B:
        x = jnp.pad(x, ((0, b_pad - B), (0, 0), (0, 0)))

    def full_spec(shape):
        n = len(shape)
        return pl.BlockSpec(shape, lambda i, _n=n: (0,) * _n)

    in_specs = [pl.BlockSpec((bb, 28, 28), lambda i: (i, 0, 0))]
    in_specs += [full_spec(c.shape) for c in consts]

    out = pl.pallas_call(
        fused_net_kernel,
        out_shape=jax.ShapeDtypeStruct((b_pad, 128), jnp.float32),
        grid=(b_pad // bb,),
        in_specs=in_specs,
        out_specs=pl.BlockSpec((bb, 128), lambda i: (i, 0)),
        compiler_params=pltpu.CompilerParams(
            dimension_semantics=("parallel",)),
    )(x, *consts)

    return out[:B, :10]


# --------------------------- reference & params ------------------------------ #

def reference_forward(x_nchw, params):
    """Pure-JAX reference (eval-mode PyTorch semantics)."""
    (c1w, c1b, c2w, c2b, f1w, f1b, f2w, f2b) = params
    dn = ('NCHW', 'OIHW', 'NCHW')
    hp = lax.Precision.HIGHEST
    y = lax.conv_general_dilated(x_nchw, c1w, (1, 1), 'VALID',
                                 dimension_numbers=dn, precision=hp)
    y = y + c1b[None, :, None, None]
    y = lax.reduce_window(y, -jnp.inf, lax.max, (1, 1, 2, 2), (1, 1, 2, 2), 'VALID')
    y = jnp.maximum(y, 0.0)
    y = lax.conv_general_dilated(y, c2w, (1, 1), 'VALID',
                                 dimension_numbers=dn, precision=hp)
    y = y + c2b[None, :, None, None]
    y = lax.reduce_window(y, -jnp.inf, lax.max, (1, 1, 2, 2), (1, 1, 2, 2), 'VALID')
    y = jnp.maximum(y, 0.0)
    y = y.reshape(y.shape[0], 320)
    y = jnp.maximum(jnp.dot(y, f1w.T, precision=hp) + f1b, 0.0)
    return jnp.dot(y, f2w.T, precision=hp) + f2b


def init_params(key):
    """Deterministic init mimicking PyTorch's default U(-1/sqrt(fan_in), +)."""
    ks = jax.random.split(key, 8)

    def u(k, shape, fan_in):
        bound = 1.0 / math.sqrt(fan_in)
        return jax.random.uniform(k, shape, jnp.float32, -bound, bound)

    c1w = u(ks[0], (10, 1, 5, 5), 1 * 5 * 5)
    c1b = u(ks[1], (10,), 1 * 5 * 5)
    c2w = u(ks[2], (20, 10, 5, 5), 10 * 5 * 5)
    c2b = u(ks[3], (20,), 10 * 5 * 5)
    f1w = u(ks[4], (50, 320), 320)
    f1b = u(ks[5], (50,), 320)
    f2w = u(ks[6], (10, 50), 50)
    f2b = u(ks[7], (10,), 50)
    return (c1w, c1b, c2w, c2b, f1w, f1b, f2w, f2b)


if __name__ == "__main__":
    key = jax.random.PRNGKey(0)
    pkey, xkey = jax.random.split(key)
    params = init_params(pkey)

    # Input matching the module's implied shape: 320 = 20*4*4 => 28x28, 1 channel.
    x = jax.random.normal(xkey, (2, 1, 28, 28), dtype=jnp.float32)

    out = jax.jit(net_forward)(x, params)
    out = jax.block_until_ready(out)

    ref = reference_forward(x, params)

    assert out.shape == (2, 10), out.shape
    assert out.dtype == jnp.float32
    assert bool(jnp.all(jnp.isfinite(out)))
    assert bool(jnp.allclose(out, ref, atol=2e-2, rtol=2e-2)), (
        float(jnp.max(jnp.abs(out - ref))))
    print("KERNEL_OK")
</pallas_src>

<mosaic_0001>
module attributes {stable_mosaic.version = 11 : i64} {
  func.func @fused_net_kernel(%arg0: i32, %arg1: memref<2x28x28xf32, #tpu.memory_space<vmem>>, %arg2: memref<5x28x120xf32, #tpu.memory_space<vmem>>, %arg3: memref<5x28x120xf32, #tpu.memory_space<vmem>>, %arg4: memref<12x24xf32, #tpu.memory_space<vmem>>, %arg5: memref<12x24xf32, #tpu.memory_space<vmem>>, %arg6: memref<1x120xf32, #tpu.memory_space<vmem>>, %arg7: memref<5x120x80xf32, #tpu.memory_space<vmem>>, %arg8: memref<5x120x80xf32, #tpu.memory_space<vmem>>, %arg9: memref<4x8xf32, #tpu.memory_space<vmem>>, %arg10: memref<4x8xf32, #tpu.memory_space<vmem>>, %arg11: memref<1x80xf32, #tpu.memory_space<vmem>>, %arg12: memref<4x80x64xf32, #tpu.memory_space<vmem>>, %arg13: memref<1x64xf32, #tpu.memory_space<vmem>>, %arg14: memref<64x128xf32, #tpu.memory_space<vmem>>, %arg15: memref<1x128xf32, #tpu.memory_space<vmem>>, %arg16: memref<2x128xf32, #tpu.memory_space<vmem>>) attributes {dimension_semantics = [#tpu.dimension_semantics<parallel>], iteration_bounds = array<i64: 1>, scalar_prefetch = 0 : i64, scratch_operands = 0 : i64, tpu.core_type = #tpu.core_type<tc>, window_params = [{transform_indices = @transform_0, window_bounds = array<i64: 2, 28, 28>}, {pipeline_mode = #tpu.pipeline_mode<synchronous>, transform_indices = @transform_1, window_bounds = array<i64: 5, 28, 120>}, {pipeline_mode = #tpu.pipeline_mode<synchronous>, transform_indices = @transform_2, window_bounds = array<i64: 5, 28, 120>}, {pipeline_mode = #tpu.pipeline_mode<synchronous>, transform_indices = @transform_3, window_bounds = array<i64: 12, 24>}, {pipeline_mode = #tpu.pipeline_mode<synchronous>, transform_indices = @transform_4, window_bounds = array<i64: 12, 24>}, {pipeline_mode = #tpu.pipeline_mode<synchronous>, transform_indices = @transform_5, window_bounds = array<i64: 1, 120>}, {pipeline_mode = #tpu.pipeline_mode<synchronous>, transform_indices = @transform_6, window_bounds = array<i64: 5, 120, 80>}, {pipeline_mode = #tpu.pipeline_mode<synchronous>, transform_indices = @transform_7, window_bounds = array<i64: 5, 120, 80>}, {pipeline_mode = #tpu.pipeline_mode<synchronous>, transform_indices = @transform_8, window_bounds = array<i64: 4, 8>}, {pipeline_mode = #tpu.pipeline_mode<synchronous>, transform_indices = @transform_9, window_bounds = array<i64: 4, 8>}, {pipeline_mode = #tpu.pipeline_mode<synchronous>, transform_indices = @transform_10, window_bounds = array<i64: 1, 80>}, {pipeline_mode = #tpu.pipeline_mode<synchronous>, transform_indices = @transform_11, window_bounds = array<i64: 4, 80, 64>}, {pipeline_mode = #tpu.pipeline_mode<synchronous>, transform_indices = @transform_12, window_bounds = array<i64: 1, 64>}, {pipeline_mode = #tpu.pipeline_mode<synchronous>, transform_indices = @transform_13, window_bounds = array<i64: 64, 128>}, {pipeline_mode = #tpu.pipeline_mode<synchronous>, transform_indices = @transform_14, window_bounds = array<i64: 1, 128>}, {transform_indices = @transform_15, window_bounds = array<i64: 2, 128>}]} {
    %c0 = arith.constant 0 : index
    %c0_0 = arith.constant 0 : index
    %c0_1 = arith.constant 0 : index
    %0 = vector.load %arg2[%c0, %c0_0, %c0_1] : memref<5x28x120xf32, #tpu.memory_space<vmem>>, vector<5x28x120xf32>
    %c0_2 = arith.constant 0 : index
    %c0_3 = arith.constant 0 : index
    %c0_4 = arith.constant 0 : index
    %1 = vector.load %arg3[%c0_2, %c0_3, %c0_4] : memref<5x28x120xf32, #tpu.memory_space<vmem>>, vector<5x28x120xf32>
    %c0_5 = arith.constant 0 : index
    %c0_6 = arith.constant 0 : index
    %2 = vector.load %arg4[%c0_5, %c0_6] : memref<12x24xf32, #tpu.memory_space<vmem>>, vector<12x24xf32>
    %c0_7 = arith.constant 0 : index
    %c0_8 = arith.constant 0 : index
    %3 = vector.load %arg5[%c0_7, %c0_8] : memref<12x24xf32, #tpu.memory_space<vmem>>, vector<12x24xf32>
    %c0_9 = arith.constant 0 : index
    %c0_10 = arith.constant 0 : index
    %4 = vector.load %arg6[%c0_9, %c0_10] : memref<1x120xf32, #tpu.memory_space<vmem>>, vector<1x120xf32>
    %c0_11 = arith.constant 0 : index
    %c0_12 = arith.constant 0 : index
    %c0_13 = arith.constant 0 : index
    %5 = vector.load %arg7[%c0_11, %c0_12, %c0_13] : memref<5x120x80xf32, #tpu.memory_space<vmem>>, vector<5x120x80xf32>
    %c0_14 = arith.constant 0 : index
    %c0_15 = arith.constant 0 : index
    %c0_16 = arith.constant 0 : index
    %6 = vector.load %arg8[%c0_14, %c0_15, %c0_16] : memref<5x120x80xf32, #tpu.memory_space<vmem>>, vector<5x120x80xf32>
    %c0_17 = arith.constant 0 : index
    %c0_18 = arith.constant 0 : index
    %7 = vector.load %arg9[%c0_17, %c0_18] : memref<4x8xf32, #tpu.memory_space<vmem>>, vector<4x8xf32>
    %c0_19 = arith.constant 0 : index
    %c0_20 = arith.constant 0 : index
    %8 = vector.load %arg10[%c0_19, %c0_20] : memref<4x8xf32, #tpu.memory_space<vmem>>, vector<4x8xf32>
    %c0_21 = arith.constant 0 : index
    %c0_22 = arith.constant 0 : index
    %9 = vector.load %arg11[%c0_21, %c0_22] : memref<1x80xf32, #tpu.memory_space<vmem>>, vector<1x80xf32>
    %c0_23 = arith.constant 0 : index
    %c0_24 = arith.constant 0 : index
    %c0_25 = arith.constant 0 : index
    %10 = vector.load %arg12[%c0_23, %c0_24, %c0_25] : memref<4x80x64xf32, #tpu.memory_space<vmem>>, vector<4x80x64xf32>
    %c0_26 = arith.constant 0 : index
    %c0_27 = arith.constant 0 : index
    %11 = vector.load %arg13[%c0_26, %c0_27] : memref<1x64xf32, #tpu.memory_space<vmem>>, vector<1x64xf32>
    %c0_28 = arith.constant 0 : index
    %c0_29 = arith.constant 0 : index
    %12 = vector.load %arg14[%c0_28, %c0_29] : memref<64x128xf32, #tpu.memory_space<vmem>>, vector<64x128xf32>
    %c0_30 = arith.constant 0 : index
    %c0_31 = arith.constant 0 : index
    %13 = vector.load %arg15[%c0_30, %c0_31] : memref<1x128xf32, #tpu.memory_space<vmem>>, vector<1x128xf32>
    %c0_32 = arith.constant 0 : index
    %c0_33 = arith.constant 0 : index
    %c0_34 = arith.constant 0 : index
    %14 = vector.load %arg1[%c0_32, %c0_33, %c0_34] : memref<2x28x28xf32, #tpu.memory_space<vmem>>, vector<1x28x28xf32>
    %15 = vector.shape_cast %14 : vector<1x28x28xf32> to vector<28x28xf32>
    %cst = arith.constant 0.000000e+00 : f32
    %16 = vector.broadcast %cst : f32 to vector<24x120xf32>
    %cst_35 = arith.constant 0.000000e+00 : f32
    %17 = vector.broadcast %cst_35 : f32 to vector<24x120xf32>
    %18 = vector.extract_strided_slice %15 {offsets = [0, 0], sizes = [24, 28], strides = [1, 1]} : vector<28x28xf32> to vector<24x28xf32>
    %19 = vector.extract_strided_slice %0 {offsets = [0, 0, 0], sizes = [1, 28, 120], strides = [1, 1, 1]} : vector<5x28x120xf32> to vector<1x28x120xf32>
    %20 = vector.shape_cast %19 : vector<1x28x120xf32> to vector<28x120xf32>
    %cst_36 = arith.constant dense<0.000000e+00> : vector<24x120xf32>
    %21 = tpu.matmul %18, %20, %cst_36 {dimension_numbers = #tpu.dot_dimension_numbers<[1], [0], [0], [1], [0, 0, 1, 1], [], []>} : vector<24x28xf32>, vector<28x120xf32>, vector<24x120xf32> -> vector<24x120xf32>
    %22 = arith.addf %16, %21 : vector<24x120xf32>
    %23 = vector.extract_strided_slice %1 {offsets = [0, 0, 0], sizes = [1, 28, 120], strides = [1, 1, 1]} : vector<5x28x120xf32> to vector<1x28x120xf32>
    %24 = vector.shape_cast %23 : vector<1x28x120xf32> to vector<28x120xf32>
    %cst_37 = arith.constant dense<0.000000e+00> : vector<24x120xf32>
    %25 = tpu.matmul %18, %24, %cst_37 {dimension_numbers = #tpu.dot_dimension_numbers<[1], [0], [0], [1], [0, 0, 1, 1], [], []>} : vector<24x28xf32>, vector<28x120xf32>, vector<24x120xf32> -> vector<24x120xf32>
    %26 = arith.addf %17, %25 : vector<24x120xf32>
    %27 = vector.extract_strided_slice %15 {offsets = [1, 0], sizes = [24, 28], strides = [1, 1]} : vector<28x28xf32> to vector<24x28xf32>
    %28 = vector.extract_strided_slice %0 {offsets = [1, 0, 0], sizes = [1, 28, 120], strides = [1, 1, 1]} : vector<5x28x120xf32> to vector<1x28x120xf32>
    %29 = vector.shape_cast %28 : vector<1x28x120xf32> to vector<28x120xf32>
    %cst_38 = arith.constant dense<0.000000e+00> : vector<24x120xf32>
    %30 = tpu.matmul %27, %29, %cst_38 {dimension_numbers = #tpu.dot_dimension_numbers<[1], [0], [0], [1], [0, 0, 1, 1], [], []>} : vector<24x28xf32>, vector<28x120xf32>, vector<24x120xf32> -> vector<24x120xf32>
    %31 = arith.addf %22, %30 : vector<24x120xf32>
    %32 = vector.extract_strided_slice %1 {offsets = [1, 0, 0], sizes = [1, 28, 120], strides = [1, 1, 1]} : vector<5x28x120xf32> to vector<1x28x120xf32>
    %33 = vector.shape_cast %32 : vector<1x28x120xf32> to vector<28x120xf32>
    %cst_39 = arith.constant dense<0.000000e+00> : vector<24x120xf32>
    %34 = tpu.matmul %27, %33, %cst_39 {dimension_numbers = #tpu.dot_dimension_numbers<[1], [0], [0], [1], [0, 0, 1, 1], [], []>} : vector<24x28xf32>, vector<28x120xf32>, vector<24x120xf32> -> vector<24x120xf32>
    %35 = arith.addf %26, %34 : vector<24x120xf32>
    %36 = vector.extract_strided_slice %15 {offsets = [2, 0], sizes = [24, 28], strides = [1, 1]} : vector<28x28xf32> to vector<24x28xf32>
    %37 = vector.extract_strided_slice %0 {offsets = [2, 0, 0], sizes = [1, 28, 120], strides = [1, 1, 1]} : vector<5x28x120xf32> to vector<1x28x120xf32>
    %38 = vector.shape_cast %37 : vector<1x28x120xf32> to vector<28x120xf32>
    %cst_40 = arith.constant dense<0.000000e+00> : vector<24x120xf32>
    %39 = tpu.matmul %36, %38, %cst_40 {dimension_numbers = #tpu.dot_dimension_numbers<[1], [0], [0], [1], [0, 0, 1, 1], [], []>} : vector<24x28xf32>, vector<28x120xf32>, vector<24x120xf32> -> vector<24x120xf32>
    %40 = arith.addf %31, %39 : vector<24x120xf32>
    %41 = vector.extract_strided_slice %1 {offsets = [2, 0, 0], sizes = [1, 28, 120], strides = [1, 1, 1]} : vector<5x28x120xf32> to vector<1x28x120xf32>
    %42 = vector.shape_cast %41 : vector<1x28x120xf32> to vector<28x120xf32>
    %cst_41 = arith.constant dense<0.000000e+00> : vector<24x120xf32>
    %43 = tpu.matmul %36, %42, %cst_41 {dimension_numbers = #tpu.dot_dimension_numbers<[1], [0], [0], [1], [0, 0, 1, 1], [], []>} : vector<24x28xf32>, vector<28x120xf32>, vector<24x120xf32> -> vector<24x120xf32>
    %44 = arith.addf %35, %43 : vector<24x120xf32>
    %45 = vector.extract_strided_slice %15 {offsets = [3, 0], sizes = [24, 28], strides = [1, 1]} : vector<28x28xf32> to vector<24x28xf32>
    %46 = vector.extract_strided_slice %0 {offsets = [3, 0, 0], sizes = [1, 28, 120], strides = [1, 1, 1]} : vector<5x28x120xf32> to vector<1x28x120xf32>
    %47 = vector.shape_cast %46 : vector<1x28x120xf32> to vector<28x120xf32>
    %cst_42 = arith.constant dense<0.000000e+00> : vector<24x120xf32>
    %48 = tpu.matmul %45, %47, %cst_42 {dimension_numbers = #tpu.dot_dimension_numbers<[1], [0], [0], [1], [0, 0, 1, 1], [], []>} : vector<24x28xf32>, vector<28x120xf32>, vector<24x120xf32> -> vector<24x120xf32>
    %49 = arith.addf %40, %48 : vector<24x120xf32>
    %50 = vector.extract_strided_slice %1 {offsets = [3, 0, 0], sizes = [1, 28, 120], strides = [1, 1, 1]} : vector<5x28x120xf32> to vector<1x28x120xf32>
    %51 = vector.shape_cast %50 : vector<1x28x120xf32> to vector<28x120xf32>
    %cst_43 = arith.constant dense<0.000000e+00> : vector<24x120xf32>
    %52 = tpu.matmul %45, %51, %cst_43 {dimension_numbers = #tpu.dot_dimension_numbers<[1], [0], [0], [1], [0, 0, 1, 1], [], []>} : vector<24x28xf32>, vector<28x120xf32>, vector<24x120xf32> -> vector<24x120xf32>
    %53 = arith.addf %44, %52 : vector<24x120xf32>
    %54 = vector.extract_strided_slice %15 {offsets = [4, 0], sizes = [24, 28], strides = [1, 1]} : vector<28x28xf32> to vector<24x28xf32>
    %55 = vector.extract_strided_slice %0 {offsets = [4, 0, 0], sizes = [1, 28, 120], strides = [1, 1, 1]} : vector<5x28x120xf32> to vector<1x28x120xf32>
    %56 = vector.shape_cast %55 : vector<1x28x120xf32> to vector<28x120xf32>
    %cst_44 = arith.constant dense<0.000000e+00> : vector<24x120xf32>
    %57 = tpu.matmul %54, %56, %cst_44 {dimension_numbers = #tpu.dot_dimension_numbers<[1], [0], [0], [1], [0, 0, 1, 1], [], []>} : vector<24x28xf32>, vector<28x120xf32>, vector<24x120xf32> -> vector<24x120xf32>
    %58 = arith.addf %49, %57 : vector<24x120xf32>
    %59 = vector.extract_strided_slice %1 {offsets = [4, 0, 0], sizes = [1, 28, 120], strides = [1, 1, 1]} : vector<5x28x120xf32> to vector<1x28x120xf32>
    %60 = vector.shape_cast %59 : vector<1x28x120xf32> to vector<28x120xf32>
    %cst_45 = arith.constant dense<0.000000e+00> : vector<24x120xf32>
    %61 = tpu.matmul %54, %60, %cst_45 {dimension_numbers = #tpu.dot_dimension_numbers<[1], [0], [0], [1], [0, 0, 1, 1], [], []>} : vector<24x28xf32>, vector<28x120xf32>, vector<24x120xf32> -> vector<24x120xf32>
    %62 = arith.addf %53, %61 : vector<24x120xf32>
    %63 = arith.maximumf %58, %62 : vector<24x120xf32>
    %cst_46 = arith.constant dense<0.000000e+00> : vector<12x120xf32>
    %64 = tpu.matmul %2, %63, %cst_46 {dimension_numbers = #tpu.dot_dimension_numbers<[1], [0], [0], [1], [0, 0, 1, 1], [], []>} : vector<12x24xf32>, vector<24x120xf32>, vector<12x120xf32> -> vector<12x120xf32>
    %cst_47 = arith.constant dense<0.000000e+00> : vector<12x120xf32>
    %65 = tpu.matmul %3, %63, %cst_47 {dimension_numbers = #tpu.dot_dimension_numbers<[1], [0], [0], [1], [0, 0, 1, 1], [], []>} : vector<12x24xf32>, vector<24x120xf32>, vector<12x120xf32> -> vector<12x120xf32>
    %66 = arith.maximumf %64, %65 : vector<12x120xf32>
    %67 = vector.broadcast %4 : vector<1x120xf32> to vector<12x120xf32>
    %68 = arith.addf %66, %67 : vector<12x120xf32>
    %cst_48 = arith.constant 0.000000e+00 : f32
    %69 = vector.broadcast %cst_48 : f32 to vector<12x120xf32>
    %70 = arith.maximumf %68, %69 : vector<12x120xf32>
    %cst_49 = arith.constant 0.000000e+00 : f32
    %71 = vector.broadcast %cst_49 : f32 to vector<8x80xf32>
    %cst_50 = arith.constant 0.000000e+00 : f32
    %72 = vector.broadcast %cst_50 : f32 to vector<8x80xf32>
    %73 = vector.extract_strided_slice %70 {offsets = [0, 0], sizes = [8, 120], strides = [1, 1]} : vector<12x120xf32> to vector<8x120xf32>
    %74 = vector.extract_strided_slice %5 {offsets = [0, 0, 0], sizes = [1, 120, 80], strides = [1, 1, 1]} : vector<5x120x80xf32> to vector<1x120x80xf32>
    %75 = vector.shape_cast %74 : vector<1x120x80xf32> to vector<120x80xf32>
    %cst_51 = arith.constant dense<0.000000e+00> : vector<8x80xf32>
    %76 = tpu.matmul %73, %75, %cst_51 {dimension_numbers = #tpu.dot_dimension_numbers<[1], [0], [0], [1], [0, 0, 1, 1], [], []>} : vector<8x120xf32>, vector<120x80xf32>, vector<8x80xf32> -> vector<8x80xf32>
    %77 = arith.addf %71, %76 : vector<8x80xf32>
    %78 = vector.extract_strided_slice %6 {offsets = [0, 0, 0], sizes = [1, 120, 80], strides = [1, 1, 1]} : vector<5x120x80xf32> to vector<1x120x80xf32>
    %79 = vector.shape_cast %78 : vector<1x120x80xf32> to vector<120x80xf32>
    %cst_52 = arith.constant dense<0.000000e+00> : vector<8x80xf32>
    %80 = tpu.matmul %73, %79, %cst_52 {dimension_numbers = #tpu.dot_dimension_numbers<[1], [0], [0], [1], [0, 0, 1, 1], [], []>} : vector<8x120xf32>, vector<120x80xf32>, vector<8x80xf32> -> vector<8x80xf32>
    %81 = arith.addf %72, %80 : vector<8x80xf32>
    %82 = vector.extract_strided_slice %70 {offsets = [1, 0], sizes = [8, 120], strides = [1, 1]} : vector<12x120xf32> to vector<8x120xf32>
    %83 = vector.extract_strided_slice %5 {offsets = [1, 0, 0], sizes = [1, 120, 80], strides = [1, 1, 1]} : vector<5x120x80xf32> to vector<1x120x80xf32>
    %84 = vector.shape_cast %83 : vector<1x120x80xf32> to vector<120x80xf32>
    %cst_53 = arith.constant dense<0.000000e+00> : vector<8x80xf32>
    %85 = tpu.matmul %82, %84, %cst_53 {dimension_numbers = #tpu.dot_dimension_numbers<[1], [0], [0], [1], [0, 0, 1, 1], [], []>} : vector<8x120xf32>, vector<120x80xf32>, vector<8x80xf32> -> vector<8x80xf32>
    %86 = arith.addf %77, %85 : vector<8x80xf32>
    %87 = vector.extract_strided_slice %6 {offsets = [1, 0, 0], sizes = [1, 120, 80], strides = [1, 1, 1]} : vector<5x120x80xf32> to vector<1x120x80xf32>
    %88 = vector.shape_cast %87 : vector<1x120x80xf32> to vector<120x80xf32>
    %cst_54 = arith.constant dense<0.000000e+00> : vector<8x80xf32>
    %89 = tpu.matmul %82, %88, %cst_54 {dimension_numbers = #tpu.dot_dimension_numbers<[1], [0], [0], [1], [0, 0, 1, 1], [], []>} : vector<8x120xf32>, vector<120x80xf32>, vector<8x80xf32> -> vector<8x80xf32>
    %90 = arith.addf %81, %89 : vector<8x80xf32>
    %91 = vector.extract_strided_slice %70 {offsets = [2, 0], sizes = [8, 120], strides = [1, 1]} : vector<12x120xf32> to vector<8x120xf32>
    %92 = vector.extract_strided_slice %5 {offsets = [2, 0, 0], sizes = [1, 120, 80], strides = [1, 1, 1]} : vector<5x120x80xf32> to vector<1x120x80xf32>
    %93 = vector.shape_cast %92 : vector<1x120x80xf32> to vector<120x80xf32>
    %cst_55 = arith.constant dense<0.000000e+00> : vector<8x80xf32>
    %94 = tpu.matmul %91, %93, %cst_55 {dimension_numbers = #tpu.dot_dimension_numbers<[1], [0], [0], [1], [0, 0, 1, 1], [], []>} : vector<8x120xf32>, vector<120x80xf32>, vector<8x80xf32> -> vector<8x80xf32>
    %95 = arith.addf %86, %94 : vector<8x80xf32>
    %96 = vector.extract_strided_slice %6 {offsets = [2, 0, 0], sizes = [1, 120, 80], strides = [1, 1, 1]} : vector<5x120x80xf32> to vector<1x120x80xf32>
    %97 = vector.shape_cast %96 : vector<1x120x80xf32> to vector<120x80xf32>
    %cst_56 = arith.constant dense<0.000000e+00> : vector<8x80xf32>
    %98 = tpu.matmul %91, %97, %cst_56 {dimension_numbers = #tpu.dot_dimension_numbers<[1], [0], [0], [1], [0, 0, 1, 1], [], []>} : vector<8x120xf32>, vector<120x80xf32>, vector<8x80xf32> -> vector<8x80xf32>
    %99 = arith.addf %90, %98 : vector<8x80xf32>
    %100 = vector.extract_strided_slice %70 {offsets = [3, 0], sizes = [8, 120], strides = [1, 1]} : vector<12x120xf32> to vector<8x120xf32>
    %101 = vector.extract_strided_slice %5 {offsets = [3, 0, 0], sizes = [1, 120, 80], strides = [1, 1, 1]} : vector<5x120x80xf32> to vector<1x120x80xf32>
    %102 = vector.shape_cast %101 : vector<1x120x80xf32> to vector<120x80xf32>
    %cst_57 = arith.constant dense<0.000000e+00> : vector<8x80xf32>
    %103 = tpu.matmul %100, %102, %cst_57 {dimension_numbers = #tpu.dot_dimension_numbers<[1], [0], [0], [1], [0, 0, 1, 1], [], []>} : vector<8x120xf32>, vector<120x80xf32>, vector<8x80xf32> -> vector<8x80xf32>
    %104 = arith.addf %95, %103 : vector<8x80xf32>
    %105 = vector.extract_strided_slice %6 {offsets = [3, 0, 0], sizes = [1, 120, 80], strides = [1, 1, 1]} : vector<5x120x80xf32> to vector<1x120x80xf32>
    %106 = vector.shape_cast %105 : vector<1x120x80xf32> to vector<120x80xf32>
    %cst_58 = arith.constant dense<0.000000e+00> : vector<8x80xf32>
    %107 = tpu.matmul %100, %106, %cst_58 {dimension_numbers = #tpu.dot_dimension_numbers<[1], [0], [0], [1], [0, 0, 1, 1], [], []>} : vector<8x120xf32>, vector<120x80xf32>, vector<8x80xf32> -> vector<8x80xf32>
    %108 = arith.addf %99, %107 : vector<8x80xf32>
    %109 = vector.extract_strided_slice %70 {offsets = [4, 0], sizes = [8, 120], strides = [1, 1]} : vector<12x120xf32> to vector<8x120xf32>
    %110 = vector.extract_strided_slice %5 {offsets = [4, 0, 0], sizes = [1, 120, 80], strides = [1, 1, 1]} : vector<5x120x80xf32> to vector<1x120x80xf32>
    %111 = vector.shape_cast %110 : vector<1x120x80xf32> to vector<120x80xf32>
    %cst_59 = arith.constant dense<0.000000e+00> : vector<8x80xf32>
    %112 = tpu.matmul %109, %111, %cst_59 {dimension_numbers = #tpu.dot_dimension_numbers<[1], [0], [0], [1], [0, 0, 1, 1], [], []>} : vector<8x120xf32>, vector<120x80xf32>, vector<8x80xf32> -> vector<8x80xf32>
    %113 = arith.addf %104, %112 : vector<8x80xf32>
    %114 = vector.extract_strided_slice %6 {offsets = [4, 0, 0], sizes = [1, 120, 80], strides = [1, 1, 1]} : vector<5x120x80xf32> to vector<1x120x80xf32>
    %115 = vector.shape_cast %114 : vector<1x120x80xf32> to vector<120x80xf32>
    %cst_60 = arith.constant dense<0.000000e+00> : vector<8x80xf32>
    %116 = tpu.matmul %109, %115, %cst_60 {dimension_numbers = #tpu.dot_dimension_numbers<[1], [0], [0], [1], [0, 0, 1, 1], [], []>} : vector<8x120xf32>, vector<120x80xf32>, vector<8x80xf32> -> vector<8x80xf32>
    %117 = arith.addf %108, %116 : vector<8x80xf32>
    %118 = arith.maximumf %113, %117 : vector<8x80xf32>
    %cst_61 = arith.constant dense<0.000000e+00> : vector<4x80xf32>
    %119 = tpu.matmul %7, %118, %cst_61 {dimension_numbers = #tpu.dot_dimension_numbers<[1], [0], [0], [1], [0, 0, 1, 1], [], []>} : vector<4x8xf32>, vector<8x80xf32>, vector<4x80xf32> -> vector<4x80xf32>
    %cst_62 = arith.constant dense<0.000000e+00> : vector<4x80xf32>
    %120 = tpu.matmul %8, %118, %cst_62 {dimension_numbers = #tpu.dot_dimension_numbers<[1], [0], [0], [1], [0, 0, 1, 1], [], []>} : vector<4x8xf32>, vector<8x80xf32>, vector<4x80xf32> -> vector<4x80xf32>
    %121 = arith.maximumf %119, %120 : vector<4x80xf32>
    %122 = vector.broadcast %9 : vector<1x80xf32> to vector<4x80xf32>
    %123 = arith.addf %121, %122 : vector<4x80xf32>
    %cst_63 = arith.constant 0.000000e+00 : f32
    %124 = vector.broadcast %cst_63 : f32 to vector<4x80xf32>
    %125 = arith.maximumf %123, %124 : vector<4x80xf32>
    %126 = vector.extract_strided_slice %125 {offsets = [0, 0], sizes = [1, 80], strides = [1, 1]} : vector<4x80xf32> to vector<1x80xf32>
    %127 = vector.extract_strided_slice %10 {offsets = [0, 0, 0], sizes = [1, 80, 64], strides = [1, 1, 1]} : vector<4x80x64xf32> to vector<1x80x64xf32>
    %128 = vector.shape_cast %127 : vector<1x80x64xf32> to vector<80x64xf32>
    %cst_64 = arith.constant dense<0.000000e+00> : vector<1x64xf32>
    %129 = tpu.matmul %126, %128, %cst_64 {dimension_numbers = #tpu.dot_dimension_numbers<[1], [0], [0], [1], [0, 0, 1, 1], [], []>} : vector<1x80xf32>, vector<80x64xf32>, vector<1x64xf32> -> vector<1x64xf32>
    %130 = arith.addf %11, %129 : vector<1x64xf32>
    %131 = vector.extract_strided_slice %125 {offsets = [1, 0], sizes = [1, 80], strides = [1, 1]} : vector<4x80xf32> to vector<1x80xf32>
    %132 = vector.extract_strided_slice %10 {offsets = [1, 0, 0], sizes = [1, 80, 64], strides = [1, 1, 1]} : vector<4x80x64xf32> to vector<1x80x64xf32>
    %133 = vector.shape_cast %132 : vector<1x80x64xf32> to vector<80x64xf32>
    %cst_65 = arith.constant dense<0.000000e+00> : vector<1x64xf32>
    %134 = tpu.matmul %131, %133, %cst_65 {dimension_numbers = #tpu.dot_dimension_numbers<[1], [0], [0], [1], [0, 0, 1, 1], [], []>} : vector<1x80xf32>, vector<80x64xf32>, vector<1x64xf32> -> vector<1x64xf32>
    %135 = arith.addf %130, %134 : vector<1x64xf32>
    %136 = vector.extract_strided_slice %125 {offsets = [2, 0], sizes = [1, 80], strides = [1, 1]} : vector<4x80xf32> to vector<1x80xf32>
    %137 = vector.extract_strided_slice %10 {offsets = [2, 0, 0], sizes = [1, 80, 64], strides = [1, 1, 1]} : vector<4x80x64xf32> to vector<1x80x64xf32>
    %138 = vector.shape_cast %137 : vector<1x80x64xf32> to vector<80x64xf32>
    %cst_66 = arith.constant dense<0.000000e+00> : vector<1x64xf32>
    %139 = tpu.matmul %136, %138, %cst_66 {dimension_numbers = #tpu.dot_dimension_numbers<[1], [0], [0], [1], [0, 0, 1, 1], [], []>} : vector<1x80xf32>, vector<80x64xf32>, vector<1x64xf32> -> vector<1x64xf32>
    %140 = arith.addf %135, %139 : vector<1x64xf32>
    %141 = vector.extract_strided_slice %125 {offsets = [3, 0], sizes = [1, 80], strides = [1, 1]} : vector<4x80xf32> to vector<1x80xf32>
    %142 = vector.extract_strided_slice %10 {offsets = [3, 0, 0], sizes = [1, 80, 64], strides = [1, 1, 1]} : vector<4x80x64xf32> to vector<1x80x64xf32>
    %143 = vector.shape_cast %142 : vector<1x80x64xf32> to vector<80x64xf32>
    %cst_67 = arith.constant dense<0.000000e+00> : vector<1x64xf32>
    %144 = tpu.matmul %141, %143, %cst_67 {dimension_numbers = #tpu.dot_dimension_numbers<[1], [0], [0], [1], [0, 0, 1, 1], [], []>} : vector<1x80xf32>, vector<80x64xf32>, vector<1x64xf32> -> vector<1x64xf32>
    %145 = arith.addf %140, %144 : vector<1x64xf32>
    %cst_68 = arith.constant 0.000000e+00 : f32
    %146 = vector.broadcast %cst_68 : f32 to vector<1x64xf32>
    %147 = arith.maximumf %145, %146 : vector<1x64xf32>
    %cst_69 = arith.constant dense<0.000000e+00> : vector<1x128xf32>
    %148 = tpu.matmul %147, %12, %cst_69 {dimension_numbers = #tpu.dot_dimension_numbers<[1], [0], [0], [1], [0, 0, 1, 1], [], []>} : vector<1x64xf32>, vector<64x128xf32>, vector<1x128xf32> -> vector<1x128xf32>
    %149 = arith.addf %148, %13 : vector<1x128xf32>
    %c0_70 = arith.constant 0 : index
    %c0_71 = arith.constant 0 : index
    %150 = vector.load %arg16[%c0_70, %c0_71] : memref<2x128xf32, #tpu.memory_space<vmem>>, vector<1x128xf32>
    tpu.vector_store %arg16[%c0_70, %c0_71], %149 {strides = array<i32>} : memref<2x128xf32, #tpu.memory_space<vmem>>, vector<1x128xf32>,
    %c1 = arith.constant 1 : index
    %c0_72 = arith.constant 0 : index
    %c0_73 = arith.constant 0 : index
    %151 = vector.load %arg1[%c1, %c0_72, %c0_73] : memref<2x28x28xf32, #tpu.memory_space<vmem>>, vector<1x28x28xf32>
    %152 = vector.shape_cast %151 : vector<1x28x28xf32> to vector<28x28xf32>
    %cst_74 = arith.constant 0.000000e+00 : f32
    %153 = vector.broadcast %cst_74 : f32 to vector<24x120xf32>
    %cst_75 = arith.constant 0.000000e+00 : f32
    %154 = vector.broadcast %cst_75 : f32 to vector<24x120xf32>
    %155 = vector.extract_strided_slice %152 {offsets = [0, 0], sizes = [24, 28], strides = [1, 1]} : vector<28x28xf32> to vector<24x28xf32>
    %156 = vector.extract_strided_slice %0 {offsets = [0, 0, 0], sizes = [1, 28, 120], strides = [1, 1, 1]} : vector<5x28x120xf32> to vector<1x28x120xf32>
    %157 = vector.shape_cast %156 : vector<1x28x120xf32> to vector<28x120xf32>
    %cst_76 = arith.constant dense<0.000000e+00> : vector<24x120xf32>
    %158 = tpu.matmul %155, %157, %cst_76 {dimension_numbers = #tpu.dot_dimension_numbers<[1], [0], [0], [1], [0, 0, 1, 1], [], []>} : vector<24x28xf32>, vector<28x120xf32>, vector<24x120xf32> -> vector<24x120xf32>
    %159 = arith.addf %153, %158 : vector<24x120xf32>
    %160 = vector.extract_strided_slice %1 {offsets = [0, 0, 0], sizes = [1, 28, 120], strides = [1, 1, 1]} : vector<5x28x120xf32> to vector<1x28x120xf32>
    %161 = vector.shape_cast %160 : vector<1x28x120xf32> to vector<28x120xf32>
    %cst_77 = arith.constant dense<0.000000e+00> : vector<24x120xf32>
    %162 = tpu.matmul %155, %161, %cst_77 {dimension_numbers = #tpu.dot_dimension_numbers<[1], [0], [0], [1], [0, 0, 1, 1], [], []>} : vector<24x28xf32>, vector<28x120xf32>, vector<24x120xf32> -> vector<24x120xf32>
    %163 = arith.addf %154, %162 : vector<24x120xf32>
    %164 = vector.extract_strided_slice %152 {offsets = [1, 0], sizes = [24, 28], strides = [1, 1]} : vector<28x28xf32> to vector<24x28xf32>
    %165 = vector.extract_strided_slice %0 {offsets = [1, 0, 0], sizes = [1, 28, 120], strides = [1, 1, 1]} : vector<5x28x120xf32> to vector<1x28x120xf32>
    %166 = vector.shape_cast %165 : vector<1x28x120xf32> to vector<28x120xf32>
    %cst_78 = arith.constant dense<0.000000e+00> : vector<24x120xf32>
    %167 = tpu.matmul %164, %166, %cst_78 {dimension_numbers = #tpu.dot_dimension_numbers<[1], [0], [0], [1], [0, 0, 1, 1], [], []>} : vector<24x28xf32>, vector<28x120xf32>, vector<24x120xf32> -> vector<24x120xf32>
    %168 = arith.addf %159, %167 : vector<24x120xf32>
    %169 = vector.extract_strided_slice %1 {offsets = [1, 0, 0], sizes = [1, 28, 120], strides = [1, 1, 1]} : vector<5x28x120xf32> to vector<1x28x120xf32>
    %170 = vector.shape_cast %169 : vector<1x28x120xf32> to vector<28x120xf32>
    %cst_79 = arith.constant dense<0.000000e+00> : vector<24x120xf32>
    %171 = tpu.matmul %164, %170, %cst_79 {dimension_numbers = #tpu.dot_dimension_numbers<[1], [0], [0], [1], [0, 0, 1, 1], [], []>} : vector<24x28xf32>, vector<28x120xf32>, vector<24x120xf32> -> vector<24x120xf32>
    %172 = arith.addf %163, %171 : vector<24x120xf32>
    %173 = vector.extract_strided_slice %152 {offsets = [2, 0], sizes = [24, 28], strides = [1, 1]} : vector<28x28xf32> to vector<24x28xf32>
    %174 = vector.extract_strided_slice %0 {offsets = [2, 0, 0], sizes = [1, 28, 120], strides = [1, 1, 1]} : vector<5x28x120xf32> to vector<1x28x120xf32>
    %175 = vector.shape_cast %174 : vector<1x28x120xf32> to vector<28x120xf32>
    %cst_80 = arith.constant dense<0.000000e+00> : vector<24x120xf32>
    %176 = tpu.matmul %173, %175, %cst_80 {dimension_numbers = #tpu.dot_dimension_numbers<[1], [0], [0], [1], [0, 0, 1, 1], [], []>} : vector<24x28xf32>, vector<28x120xf32>, vector<24x120xf32> -> vector<24x120xf32>
    %177 = arith.addf %168, %176 : vector<24x120xf32>
    %178 = vector.extract_strided_slice %1 {offsets = [2, 0, 0], sizes = [1, 28, 120], strides = [1, 1, 1]} : vector<5x28x120xf32> to vector<1x28x120xf32>
    %179 = vector.shape_cast %178 : vector<1x28x120xf32> to vector<28x120xf32>
    %cst_81 = arith.constant dense<0.000000e+00> : vector<24x120xf32>
    %180 = tpu.matmul %173, %179, %cst_81 {dimension_numbers = #tpu.dot_dimension_numbers<[1], [0], [0], [1], [0, 0, 1, 1], [], []>} : vector<24x28xf32>, vector<28x120xf32>, vector<24x120xf32> -> vector<24x120xf32>
    %181 = arith.addf %172, %180 : vector<24x120xf32>
    %182 = vector.extract_strided_slice %152 {offsets = [3, 0], sizes = [24, 28], strides = [1, 1]} : vector<28x28xf32> to vector<24x28xf32>
    %183 = vector.extract_strided_slice %0 {offsets = [3, 0, 0], sizes = [1, 28, 120], strides = [1, 1, 1]} : vector<5x28x120xf32> to vector<1x28x120xf32>
    %184 = vector.shape_cast %183 : vector<1x28x120xf32> to vector<28x120xf32>
    %cst_82 = arith.constant dense<0.000000e+00> : vector<24x120xf32>
    %185 = tpu.matmul %182, %184, %cst_82 {dimension_numbers = #tpu.dot_dimension_numbers<[1], [0], [0], [1], [0, 0, 1, 1], [], []>} : vector<24x28xf32>, vector<28x120xf32>, vector<24x120xf32> -> vector<24x120xf32>
    %186 = arith.addf %177, %185 : vector<24x120xf32>
    %187 = vector.extract_strided_slice %1 {offsets = [3, 0, 0], sizes = [1, 28, 120], strides = [1, 1, 1]} : vector<5x28x120xf32> to vector<1x28x120xf32>
    %188 = vector.shape_cast %187 : vector<1x28x120xf32> to vector<28x120xf32>
    %cst_83 = arith.constant dense<0.000000e+00> : vector<24x120xf32>
    %189 = tpu.matmul %182, %188, %cst_83 {dimension_numbers = #tpu.dot_dimension_numbers<[1], [0], [0], [1], [0, 0, 1, 1], [], []>} : vector<24x28xf32>, vector<28x120xf32>, vector<24x120xf32> -> vector<24x120xf32>
    %190 = arith.addf %181, %189 : vector<24x120xf32>
    %191 = vector.extract_strided_slice %152 {offsets = [4, 0], sizes = [24, 28], strides = [1, 1]} : vector<28x28xf32> to vector<24x28xf32>
    %192 = vector.extract_strided_slice %0 {offsets = [4, 0, 0], sizes = [1, 28, 120], strides = [1, 1, 1]} : vector<5x28x120xf32> to vector<1x28x120xf32>
    %193 = vector.shape_cast %192 : vector<1x28x120xf32> to vector<28x120xf32>
    %cst_84 = arith.constant dense<0.000000e+00> : vector<24x120xf32>
    %194 = tpu.matmul %191, %193, %cst_84 {dimension_numbers = #tpu.dot_dimension_numbers<[1], [0], [0], [1], [0, 0, 1, 1], [], []>} : vector<24x28xf32>, vector<28x120xf32>, vector<24x120xf32> -> vector<24x120xf32>
    %195 = arith.addf %186, %194 : vector<24x120xf32>
    %196 = vector.extract_strided_slice %1 {offsets = [4, 0, 0], sizes = [1, 28, 120], strides = [1, 1, 1]} : vector<5x28x120xf32> to vector<1x28x120xf32>
    %197 = vector.shape_cast %196 : vector<1x28x120xf32> to vector<28x120xf32>
    %cst_85 = arith.constant dense<0.000000e+00> : vector<24x120xf32>
    %198 = tpu.matmul %191, %197, %cst_85 {dimension_numbers = #tpu.dot_dimension_numbers<[1], [0], [0], [1], [0, 0, 1, 1], [], []>} : vector<24x28xf32>, vector<28x120xf32>, vector<24x120xf32> -> vector<24x120xf32>
    %199 = arith.addf %190, %198 : vector<24x120xf32>
    %200 = arith.maximumf %195, %199 : vector<24x120xf32>
    %cst_86 = arith.constant dense<0.000000e+00> : vector<12x120xf32>
    %201 = tpu.matmul %2, %200, %cst_86 {dimension_numbers = #tpu.dot_dimension_numbers<[1], [0], [0], [1], [0, 0, 1, 1], [], []>} : vector<12x24xf32>, vector<24x120xf32>, vector<12x120xf32> -> vector<12x120xf32>
    %cst_87 = arith.constant dense<0.000000e+00> : vector<12x120xf32>
    %202 = tpu.matmul %3, %200, %cst_87 {dimension_numbers = #tpu.dot_dimension_numbers<[1], [0], [0], [1], [0, 0, 1, 1], [], []>} : vector<12x24xf32>, vector<24x120xf32>, vector<12x120xf32> -> vector<12x120xf32>
    %203 = arith.maximumf %201, %202 : vector<12x120xf32>
    %204 = vector.broadcast %4 : vector<1x120xf32> to vector<12x120xf32>
    %205 = arith.addf %203, %204 : vector<12x120xf32>
    %cst_88 = arith.constant 0.000000e+00 : f32
    %206 = vector.broadcast %cst_88 : f32 to vector<12x120xf32>
    %207 = arith.maximumf %205, %206 : vector<12x120xf32>
    %cst_89 = arith.constant 0.000000e+00 : f32
    %208 = vector.broadcast %cst_89 : f32 to vector<8x80xf32>
    %cst_90 = arith.constant 0.000000e+00 : f32
    %209 = vector.broadcast %cst_90 : f32 to vector<8x80xf32>
    %210 = vector.extract_strided_slice %207 {offsets = [0, 0], sizes = [8, 120], strides = [1, 1]} : vector<12x120xf32> to vector<8x120xf32>
    %211 = vector.extract_strided_slice %5 {offsets = [0, 0, 0], sizes = [1, 120, 80], strides = [1, 1, 1]} : vector<5x120x80xf32> to vector<1x120x80xf32>
    %212 = vector.shape_cast %211 : vector<1x120x80xf32> to vector<120x80xf32>
    %cst_91 = arith.constant dense<0.000000e+00> : vector<8x80xf32>
    %213 = tpu.matmul %210, %212, %cst_91 {dimension_numbers = #tpu.dot_dimension_numbers<[1], [0], [0], [1], [0, 0, 1, 1], [], []>} : vector<8x120xf32>, vector<120x80xf32>, vector<8x80xf32> -> vector<8x80xf32>
    %214 = arith.addf %208, %213 : vector<8x80xf32>
    %215 = vector.extract_strided_slice %6 {offsets = [0, 0, 0], sizes = [1, 120, 80], strides = [1, 1, 1]} : vector<5x120x80xf32> to vector<1x120x80xf32>
    %216 = vector.shape_cast %215 : vector<1x120x80xf32> to vector<120x80xf32>
    %cst_92 = arith.constant dense<0.000000e+00> : vector<8x80xf32>
    %217 = tpu.matmul %210, %216, %cst_92 {dimension_numbers = #tpu.dot_dimension_numbers<[1], [0], [0], [1], [0, 0, 1, 1], [], []>} : vector<8x120xf32>, vector<120x80xf32>, vector<8x80xf32> -> vector<8x80xf32>
    %218 = arith.addf %209, %217 : vector<8x80xf32>
    %219 = vector.extract_strided_slice %207 {offsets = [1, 0], sizes = [8, 120], strides = [1, 1]} : vector<12x120xf32> to vector<8x120xf32>
    %220 = vector.extract_strided_slice %5 {offsets = [1, 0, 0], sizes = [1, 120, 80], strides = [1, 1, 1]} : vector<5x120x80xf32> to vector<1x120x80xf32>
    %221 = vector.shape_cast %220 : vector<1x120x80xf32> to vector<120x80xf32>
    %cst_93 = arith.constant dense<0.000000e+00> : vector<8x80xf32>
    %222 = tpu.matmul %219, %221, %cst_93 {dimension_numbers = #tpu.dot_dimension_numbers<[1], [0], [0], [1], [0, 0, 1, 1], [], []>} : vector<8x120xf32>, vector<120x80xf32>, vector<8x80xf32> -> vector<8x80xf32>
    %223 = arith.addf %214, %222 : vector<8x80xf32>
    %224 = vector.extract_strided_slice %6 {offsets = [1, 0, 0], sizes = [1, 120, 80], strides = [1, 1, 1]} : vector<5x120x80xf32> to vector<1x120x80xf32>
    %225 = vector.shape_cast %224 : vector<1x120x80xf32> to vector<120x80xf32>
    %cst_94 = arith.constant dense<0.000000e+00> : vector<8x80xf32>
    %226 = tpu.matmul %219, %225, %cst_94 {dimension_numbers = #tpu.dot_dimension_numbers<[1], [0], [0], [1], [0, 0, 1, 1], [], []>} : vector<8x120xf32>, vector<120x80xf32>, vector<8x80xf32> -> vector<8x80xf32>
    %227 = arith.addf %218, %226 : vector<8x80xf32>
    %228 = vector.extract_strided_slice %207 {offsets = [2, 0], sizes = [8, 120], strides = [1, 1]} : vector<12x120xf32> to vector<8x120xf32>
    %229 = vector.extract_strided_slice %5 {offsets = [2, 0, 0], sizes = [1, 120, 80], strides = [1, 1, 1]} : vector<5x120x80xf32> to vector<1x120x80xf32>
    %230 = vector.shape_cast %229 : vector<1x120x80xf32> to vector<120x80xf32>
    %cst_95 = arith.constant dense<0.000000e+00> : vector<8x80xf32>
    %231 = tpu.matmul %228, %230, %cst_95 {dimension_numbers = #tpu.dot_dimension_numbers<[1], [0], [0], [1], [0, 0, 1, 1], [], []>} : vector<8x120xf32>, vector<120x80xf32>, vector<8x80xf32> -> vector<8x80xf32>
    %232 = arith.addf %223, %231 : vector<8x80xf32>
    %233 = vector.extract_strided_slice %6 {offsets = [2, 0, 0], sizes = [1, 120, 80], strides = [1, 1, 1]} : vector<5x120x80xf32> to vector<1x120x80xf32>
    %234 = vector.shape_cast %233 : vector<1x120x80xf32> to vector<120x80xf32>
    %cst_96 = arith.constant dense<0.000000e+00> : vector<8x80xf32>
    %235 = tpu.matmul %228, %234, %cst_96 {dimension_numbers = #tpu.dot_dimension_numbers<[1], [0], [0], [1], [0, 0, 1, 1], [], []>} : vector<8x120xf32>, vector<120x80xf32>, vector<8x80xf32> -> vector<8x80xf32>
    %236 = arith.addf %227, %235 : vector<8x80xf32>
    %237 = vector.extract_strided_slice %207 {offsets = [3, 0], sizes = [8, 120], strides = [1, 1]} : vector<12x120xf32> to vector<8x120xf32>
    %238 = vector.extract_strided_slice %5 {offsets = [3, 0, 0], sizes = [1, 120, 80], strides = [1, 1, 1]} : vector<5x120x80xf32> to vector<1x120x80xf32>
    %239 = vector.shape_cast %238 : vector<1x120x80xf32> to vector<120x80xf32>
    %cst_97 = arith.constant dense<0.000000e+00> : vector<8x80xf32>
    %240 = tpu.matmul %237, %239, %cst_97 {dimension_numbers = #tpu.dot_dimension_numbers<[1], [0], [0], [1], [0, 0, 1, 1], [], []>} : vector<8x120xf32>, vector<120x80xf32>, vector<8x80xf32> -> vector<8x80xf32>
    %241 = arith.addf %232, %240 : vector<8x80xf32>
    %242 = vector.extract_strided_slice %6 {offsets = [3, 0, 0], sizes = [1, 120, 80], strides = [1, 1, 1]} : vector<5x120x80xf32> to vector<1x120x80xf32>
    %243 = vector.shape_cast %242 : vector<1x120x80xf32> to vector<120x80xf32>
    %cst_98 = arith.constant dense<0.000000e+00> : vector<8x80xf32>
    %244 = tpu.matmul %237, %243, %cst_98 {dimension_numbers = #tpu.dot_dimension_numbers<[1], [0], [0], [1], [0, 0, 1, 1], [], []>} : vector<8x120xf32>, vector<120x80xf32>, vector<8x80xf32> -> vector<8x80xf32>
    %245 = arith.addf %236, %244 : vector<8x80xf32>
    %246 = vector.extract_strided_slice %207 {offsets = [4, 0], sizes = [8, 120], strides = [1, 1]} : vector<12x120xf32> to vector<8x120xf32>
    %247 = vector.extract_strided_slice %5 {offsets = [4, 0, 0], sizes = [1, 120, 80], strides = [1, 1, 1]} : vector<5x120x80xf32> to vector<1x120x80xf32>
    %248 = vector.shape_cast %247 : vector<1x120x80xf32> to vector<120x80xf32>
    %cst_99 = arith.constant dense<0.000000e+00> : vector<8x80xf32>
    %249 = tpu.matmul %246, %248, %cst_99 {dimension_numbers = #tpu.dot_dimension_numbers<[1], [0], [0], [1], [0, 0, 1, 1], [], []>} : vector<8x120xf32>, vector<120x80xf32>, vector<8x80xf32> -> vector<8x80xf32>
    %250 = arith.addf %241, %249 : vector<8x80xf32>
    %251 = vector.extract_strided_slice %6 {offsets = [4, 0, 0], sizes = [1, 120, 80], strides = [1, 1, 1]} : vector<5x120x80xf32> to vector<1x120x80xf32>
    %252 = vector.shape_cast %251 : vector<1x120x80xf32> to vector<120x80xf32>
    %cst_100 = arith.constant dense<0.000000e+00> : vector<8x80xf32>
    %253 = tpu.matmul %246, %252, %cst_100 {dimension_numbers = #tpu.dot_dimension_numbers<[1], [0], [0], [1], [0, 0, 1, 1], [], []>} : vector<8x120xf32>, vector<120x80xf32>, vector<8x80xf32> -> vector<8x80xf32>
    %254 = arith.addf %245, %253 : vector<8x80xf32>
    %255 = arith.maximumf %250, %254 : vector<8x80xf32>
    %cst_101 = arith.constant dense<0.000000e+00> : vector<4x80xf32>
    %256 = tpu.matmul %7, %255, %cst_101 {dimension_numbers = #tpu.dot_dimension_numbers<[1], [0], [0], [1], [0, 0, 1, 1], [], []>} : vector<4x8xf32>, vector<8x80xf32>, vector<4x80xf32> -> vector<4x80xf32>
    %cst_102 = arith.constant dense<0.000000e+00> : vector<4x80xf32>
    %257 = tpu.matmul %8, %255, %cst_102 {dimension_numbers = #tpu.dot_dimension_numbers<[1], [0], [0], [1], [0, 0, 1, 1], [], []>} : vector<4x8xf32>, vector<8x80xf32>, vector<4x80xf32> -> vector<4x80xf32>
    %258 = arith.maximumf %256, %257 : vector<4x80xf32>
    %259 = vector.broadcast %9 : vector<1x80xf32> to vector<4x80xf32>
    %260 = arith.addf %258, %259 : vector<4x80xf32>
    %cst_103 = arith.constant 0.000000e+00 : f32
    %261 = vector.broadcast %cst_103 : f32 to vector<4x80xf32>
    %262 = arith.maximumf %260, %261 : vector<4x80xf32>
    %263 = vector.extract_strided_slice %262 {offsets = [0, 0], sizes = [1, 80], strides = [1, 1]} : vector<4x80xf32> to vector<1x80xf32>
    %264 = vector.extract_strided_slice %10 {offsets = [0, 0, 0], sizes = [1, 80, 64], strides = [1, 1, 1]} : vector<4x80x64xf32> to vector<1x80x64xf32>
    %265 = vector.shape_cast %264 : vector<1x80x64xf32> to vector<80x64xf32>
    %cst_104 = arith.constant dense<0.000000e+00> : vector<1x64xf32>
    %266 = tpu.matmul %263, %265, %cst_104 {dimension_numbers = #tpu.dot_dimension_numbers<[1], [0], [0], [1], [0, 0, 1, 1], [], []>} : vector<1x80xf32>, vector<80x64xf32>, vector<1x64xf32> -> vector<1x64xf32>
    %267 = arith.addf %11, %266 : vector<1x64xf32>
    %268 = vector.extract_strided_slice %262 {offsets = [1, 0], sizes = [1, 80], strides = [1, 1]} : vector<4x80xf32> to vector<1x80xf32>
    %269 = vector.extract_strided_slice %10 {offsets = [1, 0, 0], sizes = [1, 80, 64], strides = [1, 1, 1]} : vector<4x80x64xf32> to vector<1x80x64xf32>
    %270 = vector.shape_cast %269 : vector<1x80x64xf32> to vector<80x64xf32>
    %cst_105 = arith.constant dense<0.000000e+00> : vector<1x64xf32>
    %271 = tpu.matmul %268, %270, %cst_105 {dimension_numbers = #tpu.dot_dimension_numbers<[1], [0], [0], [1], [0, 0, 1, 1], [], []>} : vector<1x80xf32>, vector<80x64xf32>, vector<1x64xf32> -> vector<1x64xf32>
    %272 = arith.addf %267, %271 : vector<1x64xf32>
    %273 = vector.extract_strided_slice %262 {offsets = [2, 0], sizes = [1, 80], strides = [1, 1]} : vector<4x80xf32> to vector<1x80xf32>
    %274 = vector.extract_strided_slice %10 {offsets = [2, 0, 0], sizes = [1, 80, 64], strides = [1, 1, 1]} : vector<4x80x64xf32> to vector<1x80x64xf32>
    %275 = vector.shape_cast %274 : vector<1x80x64xf32> to vector<80x64xf32>
    %cst_106 = arith.constant dense<0.000000e+00> : vector<1x64xf32>
    %276 = tpu.matmul %273, %275, %cst_106 {dimension_numbers = #tpu.dot_dimension_numbers<[1], [0], [0], [1], [0, 0, 1, 1], [], []>} : vector<1x80xf32>, vector<80x64xf32>, vector<1x64xf32> -> vector<1x64xf32>
    %277 = arith.addf %272, %276 : vector<1x64xf32>
    %278 = vector.extract_strided_slice %262 {offsets = [3, 0], sizes = [1, 80], strides = [1, 1]} : vector<4x80xf32> to vector<1x80xf32>
    %279 = vector.extract_strided_slice %10 {offsets = [3, 0, 0], sizes = [1, 80, 64], strides = [1, 1, 1]} : vector<4x80x64xf32> to vector<1x80x64xf32>
    %280 = vector.shape_cast %279 : vector<1x80x64xf32> to vector<80x64xf32>
    %cst_107 = arith.constant dense<0.000000e+00> : vector<1x64xf32>
    %281 = tpu.matmul %278, %280, %cst_107 {dimension_numbers = #tpu.dot_dimension_numbers<[1], [0], [0], [1], [0, 0, 1, 1], [], []>} : vector<1x80xf32>, vector<80x64xf32>, vector<1x64xf32> -> vector<1x64xf32>
    %282 = arith.addf %277, %281 : vector<1x64xf32>
    %cst_108 = arith.constant 0.000000e+00 : f32
    %283 = vector.broadcast %cst_108 : f32 to vector<1x64xf32>
    %284 = arith.maximumf %282, %283 : vector<1x64xf32>
    %cst_109 = arith.constant dense<0.000000e+00> : vector<1x128xf32>
    %285 = tpu.matmul %284, %12, %cst_109 {dimension_numbers = #tpu.dot_dimension_numbers<[1], [0], [0], [1], [0, 0, 1, 1], [], []>} : vector<1x64xf32>, vector<64x128xf32>, vector<1x128xf32> -> vector<1x128xf32>
    %286 = arith.addf %285, %13 : vector<1x128xf32>
    %c1_110 = arith.constant 1 : index
    %c0_111 = arith.constant 0 : index
    %287 = vector.load %arg16[%c1_110, %c0_111] : memref<2x128xf32, #tpu.memory_space<vmem>>, vector<1x128xf32>
    tpu.vector_store %arg16[%c1_110, %c0_111], %286 {strides = array<i32>} : memref<2x128xf32, #tpu.memory_space<vmem>>, vector<1x128xf32>,
    return
  }
  func.func @transform_0(%arg0: i32) -> (i32, i32, i32) {
    %c0_i32 = arith.constant 0 : i32
    %c0_i32_0 = arith.constant 0 : i32
    %c0_i32_1 = arith.constant 0 : i32
    return %arg0, %c0_i32, %c0_i32_0 : i32, i32, i32
  }
  func.func @transform_1(%arg0: i32) -> (i32, i32, i32) {
    %c0_i32 = arith.constant 0 : i32
    %c0_i32_0 = arith.constant 0 : i32
    %c0_i32_1 = arith.constant 0 : i32
    %c0_i32_2 = arith.constant 0 : i32
    return %c0_i32, %c0_i32_0, %c0_i32_1 : i32, i32, i32
  }
  func.func @transform_2(%arg0: i32) -> (i32, i32, i32) {
    %c0_i32 = arith.constant 0 : i32
    %c0_i32_0 = arith.constant 0 : i32
    %c0_i32_1 = arith.constant 0 : i32
    %c0_i32_2 = arith.constant 0 : i32
    return %c0_i32, %c0_i32_0, %c0_i32_1 : i32, i32, i32
  }
  func.func @transform_3(%arg0: i32) -> (i32, i32) {
    %c0_i32 = arith.constant 0 : i32
    %c0_i32_0 = arith.constant 0 : i32
    %c0_i32_1 = arith.constant 0 : i32
    return %c0_i32, %c0_i32_0 : i32, i32
  }
  func.func @transform_4(%arg0: i32) -> (i32, i32) {
    %c0_i32 = arith.constant 0 : i32
    %c0_i32_0 = arith.constant 0 : i32
    %c0_i32_1 = arith.constant 0 : i32
    return %c0_i32, %c0_i32_0 : i32, i32
  }
  func.func @transform_5(%arg0: i32) -> (i32, i32) {
    %c0_i32 = arith.constant 0 : i32
    %c0_i32_0 = arith.constant 0 : i32
    %c0_i32_1 = arith.constant 0 : i32
    return %c0_i32, %c0_i32_0 : i32, i32
  }
  func.func @transform_6(%arg0: i32) -> (i32, i32, i32) {
    %c0_i32 = arith.constant 0 : i32
    %c0_i32_0 = arith.constant 0 : i32
    %c0_i32_1 = arith.constant 0 : i32
    %c0_i32_2 = arith.constant 0 : i32
    return %c0_i32, %c0_i32_0, %c0_i32_1 : i32, i32, i32
  }
  func.func @transform_7(%arg0: i32) -> (i32, i32, i32) {
    %c0_i32 = arith.constant 0 : i32
    %c0_i32_0 = arith.constant 0 : i32
    %c0_i32_1 = arith.constant 0 : i32
    %c0_i32_2 = arith.constant 0 : i32
    return %c0_i32, %c0_i32_0, %c0_i32_1 : i32, i32, i32
  }
  func.func @transform_8(%arg0: i32) -> (i32, i32) {
    %c0_i32 = arith.constant 0 : i32
    %c0_i32_0 = arith.constant 0 : i32
    %c0_i32_1 = arith.constant 0 : i32
    return %c0_i32, %c0_i32_0 : i32, i32
  }
  func.func @transform_9(%arg0: i32) -> (i32, i32) {
    %c0_i32 = arith.constant 0 : i32
    %c0_i32_0 = arith.constant 0 : i32
    %c0_i32_1 = arith.constant 0 : i32
    return %c0_i32, %c0_i32_0 : i32, i32
  }
  func.func @transform_10(%arg0: i32) -> (i32, i32) {
    %c0_i32 = arith.constant 0 : i32
    %c0_i32_0 = arith.constant 0 : i32
    %c0_i32_1 = arith.constant 0 : i32
    return %c0_i32, %c0_i32_0 : i32, i32
  }
  func.func @transform_11(%arg0: i32) -> (i32, i32, i32) {
    %c0_i32 = arith.constant 0 : i32
    %c0_i32_0 = arith.constant 0 : i32
    %c0_i32_1 = arith.constant 0 : i32
    %c0_i32_2 = arith.constant 0 : i32
    return %c0_i32, %c0_i32_0, %c0_i32_1 : i32, i32, i32
  }
  func.func @transform_12(%arg0: i32) -> (i32, i32) {
    %c0_i32 = arith.constant 0 : i32
    %c0_i32_0 = arith.constant 0 : i32
    %c0_i32_1 = arith.constant 0 : i32
    return %c0_i32, %c0_i32_0 : i32, i32
  }
  func.func @transform_13(%arg0: i32) -> (i32, i32) {
    %c0_i32 = arith.constant 0 : i32
    %c0_i32_0 = arith.constant 0 : i32
    %c0_i32_1 = arith.constant 0 : i32
    return %c0_i32, %c0_i32_0 : i32, i32
  }
  func.func @transform_14(%arg0: i32) -> (i32, i32) {
    %c0_i32 = arith.constant 0 : i32
    %c0_i32_0 = arith.constant 0 : i32
    %c0_i32_1 = arith.constant 0 : i32
    return %c0_i32, %c0_i32_0 : i32, i32
  }
  func.func @transform_15(%arg0: i32) -> (i32, i32) {
    %c0_i32 = arith.constant 0 : i32
    %c0_i32_0 = arith.constant 0 : i32
    return %arg0, %c0_i32 : i32, i32
  }
}

</mosaic_0001>

<bundles_post_ra>
// kernel: tile.13
= control target key start
LH: loop header
LB: loop body
LE: loop exit
PB: predicated region body
PF: predicated region fallthrough
CT: control target
= control target key end

     0   :  { %s28_s0 = inlined_call_operand.vmem [shape: f32[10], index: 0, kind: input, shape index: {}]   ;;  %s29_s1 = inlined_call_operand.vmem [shape: f32[12,10], index: 1, kind: output, shape index: {}]  }
   0x1   :  { %v4_v0 = vld [vmem:[%s28_s0] ss:$0 sm:$0xff] }
   0x2   :  { %5 = vst [vmem:[%s29_s1] sm:$0xff] %v4_v0  ;;  %8 = vst [vmem:[%s29_s1 + $0x8] sm:$0xff] %v4_v0 }

// kernel: tile.14
= control target key start
LH: loop header
LB: loop body
LE: loop exit
PB: predicated region body
PF: predicated region fallthrough
CT: control target
= control target key end

     0   :  { %s99_s10 = smov 110   ;;  %s100_s11 = smov 90   ;;  %vm3_vm0 = vcmask 80896   ;;  %vm9_vm1 = vcmask 982896   ;;  %vm15_vm2 = vcmask 900896   ;;  %vm21_vm3 = vcmask 818896   ;;  %s159_s0 = inlined_call_operand.vmem [shape: f32[12,10], index: 0, kind: input, shape index: {}]   ;;  %s160_s1 = inlined_call_operand.vmem [shape: f32[1,120], index: 1, kind: output, shape index: {}]  }
   0x1   :  { %v77_v0 = vld [vmem:[%s159_s0 + $0xb] sm:$0x1]   ;;  %v79_v1 = vld [vmem:[%s159_s0 + $0x9] sm:$0x1]   ;;  %v78_v2 = vld [vmem:[%s159_s0 + $0xa] sm:$0x1]  }
   0x2   :  { %7 = vrot.lane.b32.xlu0 %v77_v0, %s99_s10  ;;  %19 = vrot.lane.b32.xlu1 %v79_v1, %s100_s11  ;;  %v80_v3 = vld [vmem:[%s159_s0 + $0x8] sm:$0x1]   ;;  %s101_s16 = smov 100   ;;  %s102_s17 = smov 80   ;;  %v81_v4 = vld [vmem:[%s159_s0 + $0x7] sm:$0x1]  }
   0x3   :  { %v2_v5 = vld [vmem:[%s159_s0] sm:$0x1]   ;;  %v82_v6 = vld [vmem:[%s159_s0 + $0x6] sm:$0x1]   ;;  %s103_s24 = smov 70   ;;  %s104_s25 = smov 60  }
   0x4   :  { %4 = vst.msk [vmem:[#allocation0] sm:$0x1] %vm3_vm0, %v2_v5   ;;  %v83_v7 = vld [vmem:[%s159_s0 + $0x5] sm:$0x1]   ;;  %v84_v8 = vld [vmem:[%s159_s0 + $0x4] sm:$0x1]  }
   0x5   :  { %s105_s30 = smov 50   ;;  %s106_s2 = smov 40   ;;  %v85_v9 = vld [vmem:[%s159_s0 + $0x3] sm:$0x1]   ;;  %v86_v10 = vld [vmem:[%s159_s0 + $0x2] sm:$0x1]  }
   0x6   :  { %13 = vrot.lane.b32.xlu0 %v78_v2, %s101_s16  ;;  %25 = vrot.lane.b32.xlu1 %v80_v3, %s102_s17  ;;  %s107_s7 = smov 30   ;;  %s108_s8 = smov 20   ;;  %v87_v11 = vld [vmem:[%s159_s0 + $0x1] sm:$0x1]   ;;  %vm27_vm4 = vcmask 736896   ;;  %vm33_vm5 = vcmask 654896  }
   0x7   :  { %s109_s0 = smov 10   ;;  %vm39_vm6 = vcmask 572896   ;;  %vm45_vm7 = vcmask 490896   ;;  %vm51_vm8 = vcmask 408896   ;;  %vm57_vm9 = vcmask 326896  }
   0x8   :  { %vm63_vm10 = vcmask 244896   ;;  %vm69_vm11 = vcmask 162896  }
   0xa   :  { %31 = vrot.lane.b32.xlu0 %v81_v4, %s103_s24  ;;  %37 = vrot.lane.b32.xlu1 %v82_v6, %s104_s25 }
   0xe   :  { %43 = vrot.lane.b32.xlu0 %v83_v7, %s105_s30  ;;  %49 = vrot.lane.b32.xlu1 %v84_v8, %s106_s2 }
  0x12   :  { %55 = vrot.lane.b32.xlu0 %v85_v9, %s107_s7  ;;  %61 = vrot.lane.b32.xlu1 %v86_v10, %s108_s8 }
  0x16   :  { %67 = vrot.lane.b32.xlu0 %v87_v11, %s109_s0 }
  0x74   :  { %v8_v12 = vpop.permute.xlu0 %7   ;;  %v20_v13 = vpop.permute.xlu1 %19  }
  0x75   :  { %10 = vst.msk [vmem:[#allocation0] sm:$0x1] %vm9_vm1, %v8_v12  }
  0x78   :  { %v14_v14 = vpop.permute.xlu0 %13   ;;  %v26_v15 = vpop.permute.xlu1 %25  }
  0x79   :  { %16 = vst.msk [vmem:[#allocation0] sm:$0x1] %vm15_vm2, %v14_v14  }
  0x7a   :  { %22 = vst.msk [vmem:[#allocation0] sm:$0x1] %vm21_vm3, %v20_v13  }
  0x7b   :  { %28 = vst.msk [vmem:[#allocation0] sm:$0x1] %vm27_vm4, %v26_v15  }
  0x7c   :  { %v32_v16 = vpop.permute.xlu0 %31   ;;  %v38_v17 = vpop.permute.xlu1 %37  }
  0x7d   :  { %34 = vst.msk [vmem:[#allocation0] sm:$0x1] %vm33_vm5, %v32_v16  }
  0x7e   :  { %40 = vst.msk [vmem:[#allocation0] sm:$0x1] %vm39_vm6, %v38_v17  }
  0x80   :  { %v44_v18 = vpop.permute.xlu0 %43   ;;  %v50_v19 = vpop.permute.xlu1 %49  }
  0x81   :  { %46 = vst.msk [vmem:[#allocation0] sm:$0x1] %vm45_vm7, %v44_v18  }
  0x82   :  { %52 = vst.msk [vmem:[#allocation0] sm:$0x1] %vm51_vm8, %v50_v19  }
  0x84   :  { %v56_v20 = vpop.permute.xlu0 %55   ;;  %v62_v21 = vpop.permute.xlu1 %61  }
  0x85   :  { %58 = vst.msk [vmem:[#allocation0] sm:$0x1] %vm57_vm9, %v56_v20  }
  0x86   :  { %64 = vst.msk [vmem:[#allocation0] sm:$0x1] %vm63_vm10, %v62_v21  }
  0x88   :  { %v68_v22 = vpop.permute.xlu0 %67  }
  0x89   :  { %70 = vst.msk [vmem:[#allocation0] sm:$0x1] %vm69_vm11, %v68_v22  }
  0x90   :  { %v74_v23 = vld [vmem:[#allocation0] sm:$0x1] }
  0x91   :  { %76 = vst [vmem:[%s160_s1] sm:$0x1] %v74_v23 }

// kernel: tile.18
= control target key start
LH: loop header
LB: loop body
LE: loop exit
PB: predicated region body
PF: predicated region fallthrough
CT: control target
= control target key end

     0   :  { %s22_s0 = inlined_call_operand.vmem [shape: f32[20], index: 0, kind: input, shape index: {}]   ;;  %s23_s1 = inlined_call_operand.vmem [shape: f32[4,20], index: 1, kind: output, shape index: {}]  }
   0x1   :  { %v4_v0 = vld [vmem:[%s22_s0] ss:$0 sm:$0xff] }
   0x2   :  { %5 = vst [vmem:[%s23_s1] sm:$0xf] %v4_v0 }

// kernel: tile.19
= control target key start
LH: loop header
LB: loop body
LE: loop exit
PB: predicated region body
PF: predicated region fallthrough
CT: control target
= control target key end

     0   :  { %vm7_vm0 = vcmask 162816   ;;  %s37_s8 = smov 20   ;;  %s38_s9 = smov 40   ;;  %vm13_vm1 = vcmask 654816   ;;  %vm19_vm2 = vcmask 490816   ;;  %vm25_vm3 = vcmask 326816   ;;  %s55_s0 = inlined_call_operand.vmem [shape: f32[4,20], index: 0, kind: input, shape index: {}]   ;;  %s56_s1 = inlined_call_operand.vmem [shape: f32[1,80], index: 1, kind: output, shape index: {}]  }
   0x1   :  { %v4_v0 = vld [vmem:[%s55_s0] sm:$0xf]  ;;  %s36_s0 = smov 60  }
   0x2   :  { %5 = vst [vmem:[#allocation1] sm:$0xf] %v4_v0 }
   0x9   :  { %v10_v1 = vld [vmem:[#allocation1 + $0x3] sm:$0x1]   ;;  %v22_v2 = vld [vmem:[#allocation1 + $0x1] sm:$0x1]   ;;  %v6_v3 = vld [vmem:[#allocation1] sm:$0x1]  }
   0xa   :  { %11 = vrot.lane.b32.xlu0 %v10_v1, %s36_s0  ;;  %23 = vrot.lane.b32.xlu1 %v22_v2, %s37_s8  ;;  %v16_v4 = vld [vmem:[#allocation1 + $0x2] sm:$0x1]   ;;  %8 = vst.msk [vmem:[#allocation0] sm:$0x1] %vm7_vm0, %v6_v3  }
   0xe   :  { %17 = vrot.lane.b32.xlu0 %v16_v4, %s38_s9 }
  0x7c   :  { %v12_v5 = vpop.permute.xlu0 %11   ;;  %v24_v6 = vpop.permute.xlu1 %23  }
  0x7d   :  { %14 = vst.msk [vmem:[#allocation0] sm:$0x1] %vm13_vm1, %v12_v5  }
  0x80   :  { %v18_v7 = vpop.permute.xlu0 %17  }
  0x81   :  { %20 = vst.msk [vmem:[#allocation0] sm:$0x1] %vm19_vm2, %v18_v7  }
  0x82   :  { %26 = vst.msk [vmem:[#allocation0] sm:$0x1] %vm25_vm3, %v24_v6  }
  0x89   :  { %v30_v8 = vld [vmem:[#allocation0] sm:$0x1] }
  0x8a   :  { %32 = vst [vmem:[%s56_s1] sm:$0x1] %v30_v8 }

// kernel: net_forward.1
= control target key start
LH: loop header
LB: loop body
LE: loop exit
PB: predicated region body
PF: predicated region fallthrough
CT: control target
= control target key end

     0   :  { %vm322_vm0 = vcmask 1043456   ;;  %v10000_v3 = vmov 0.0|0.0   ;;  %vm7866_vm1 = vmmov 0   ;;  %v9998_v11 = vmov 0.0   ;;  %s9982_s0 = inlined_call_operand.vmem [shape: f32[2,28,28], index: 0, kind: input, shape index: {}]   ;;  %s9983_s1 = inlined_call_operand.vmem [shape: f32[5,28,120], index: 1, kind: input, shape index: {}]   ;;  %s9984_s2 = inlined_call_operand.vmem [shape: f32[5,28,120], index: 2, kind: input, shape index: {}]   ;;  %s9985_s3 = inlined_call_operand.vmem [shape: f32[12,24], index: 3, kind: input, shape index: {}]   ;;  %s9986_s4 = inlined_call_operand.vmem [shape: f32[12,24], index: 4, kind: input, shape index: {}]   ;;  %s9987_s5 = inlined_call_operand.vmem [shape: f32[1,120], index: 5, kind: input, shape index: {}]   ;;  %s9988_s6 = inlined_call_operand.vmem [shape: f32[5,120,80], index: 6, kind: input, shape index: {}]   ;;  %s9989_s7 = inlined_call_operand.vmem [shape: f32[5,120,80], index: 7, kind: input, shape index: {}]   ;;  %s9990_s8 = inlined_call_operand.vmem [shape: f32[4,8], index: 8, kind: input, shape index: {}]   ;;  %s9991_s9 = inlined_call_operand.vmem [shape: f32[4,8], index: 9, kind: input, shape index: {}]   ;;  %s9992_s10 = inlined_call_operand.vmem [shape: f32[1,80], index: 10, kind: input, shape index: {}]   ;;  %s9993_s11 = inlined_call_operand.vmem [shape: f32[4,80,64], index: 11, kind: input, shape index: {}]   ;;  %s9994_s12 = inlined_call_operand.vmem [shape: f32[1,64], index: 12, kind: input, shape index: {}]   ;;  %s9995_s13 = inlined_call_operand.vmem [shape: f32[64,128], index: 13, kind: input, shape index: {}]   ;;  %s9996_s14 = inlined_call_operand.vmem [shape: f32[1,128], index: 14, kind: input, shape index: {}]   ;;  %s9997_s15 = inlined_call_operand.hbm [shape: f32[2,128], index: 15, kind: output, shape index: {}]  }
   0x1   :  { %v55_v0 = vld [vmem:[%s9983_s1 + $0x20] sm:$0xff]  ;;  %v56_v1 = vld [vmem:[%s9983_s1 + $0x28] sm:$0xff]  ;;  %6960 = vmatprep.subr.bf16.mxu1 %v10000_v3  ;;  %6967 = vmatprep.subr.bf16.mxu0 %v10000_v3  ;;  %v57_v6 = vld [vmem:[%s9983_s1 + $0x30] sm:$0xff]  ;;  %vm7868_vm2 = vmmov 1   ;;  %vm307_vm4 = vcmask 1046528   ;;  %vm315_vm5 = vcmask 228352  }
   0x2   :  { %v51_v2 = vld [vmem:[%s9983_s1] sm:$0xff]  ;;  %v7961_v4 = vpack.c.bf16 %v56_v1, %v55_v0  ;;  %v52_v5 = vld [vmem:[%s9983_s1 + $0x8] sm:$0xff]  ;;  %v58_v7 = vld [vmem:[%s9983_s1 + $0x38] sm:$0xf]  ;;  %5690 = vmatprep.mubr.msk.f32.mxu1 %vm7866_vm1, %v9998_v11  ;;  %5707 = vmatprep.mubr.msk.f32.mxu0 %vm7866_vm1, %v9998_v11 }
   0x3   :  { %v7972_v8 = vpack.c.bf16 %v52_v5, %v51_v2  ;;  %v53_v9 = vld [vmem:[%s9983_s1 + $0x10] sm:$0xff]  ;;  %v54_v10 = vld [vmem:[%s9983_s1 + $0x18] sm:$0xf]  ;;  %v7985_v12 = vpack.c.bf16 %v58_v7, %v57_v6  ;;  %v7990_v13 = vld [vmem:[%s9982_s0] sm:$0xff] }
   0x4   :  { %6962 = vmatpush3.bf16.msra.mxu1 %v7961_v4  ;;  %v7995_v14 = vld [vmem:[%s9982_s0 + $0x8] sm:$0xff]  ;;  %vm8000_vm3 = vmpackc.low %vm322_vm0, %vm7868_vm2  ;;  %v8004_v16 = vpack.c.bf16 %v54_v10, %v53_v9  ;;  %v308_v17 = vrot.slane %v7990_v13, 1  ;;  %v8011_v19 = vld [vmem:[%s9982_s0 + $0x10] sm:$0xff] }
   0x5   :  { %6969 = vmatpush3.bf16.msra.mxu0 %v7972_v8  ;;  %6963 = vmatprep.subr.bf16.mxu1 %v10000_v3  ;;  %v309_v18 = vrot.slane %v7995_v14, 1  ;;  %v75_v20 = vld [vmem:[%s9984_s2 + $0x20] sm:$0xff]  ;;  %v76_v21 = vld [vmem:[%s9984_s2 + $0x28] sm:$0xff]  ;;  %v311_v25 = vrot.slane %v8011_v19, 1  ;;  %v8040_v27 = vld [vmem:[%s9982_s0 + $0x18] sm:$0xf] }
   0x6   :  { %6970 = vmatprep.subr.bf16.mxu0 %v10000_v3  ;;  %v59_v22 = vld [vmem:[%s9983_s1 + $0x40] sm:$0xff]  ;;  %v60_v23 = vld [vmem:[%s9983_s1 + $0x48] sm:$0xff]  ;;  %v8035_v26 = vpack.c.bf16 %v76_v21, %v75_v20  ;;  %v77_v29 = vld [vmem:[%s9984_s2 + $0x30] sm:$0xff]  ;;  %v313_v34 = vrot.slane %v8040_v27, 1 }
   0x7   :  { %v310_v24 = vsel %vm307_vm4, %v308_v17, %v309_v18  ;;  %v8043_v28 = vpack.c.bf16 %v60_v23, %v59_v22  ;;  %v78_v30 = vld [vmem:[%s9984_s2 + $0x38] sm:$0xf]  ;;  %v61_v31 = vld [vmem:[%s9983_s1 + $0x50] sm:$0xff]  ;;  %v312_v33 = vsel %vm307_vm4, %v309_v18, %v311_v25 }
   0x8   :  { %6966 = vmatpush3.bf16.msk.msra.mxu1 %vm8000_vm3, %v7985_v12  ;;  %v62_v32 = vld [vmem:[%s9983_s1 + $0x58] sm:$0xf]  ;;  %v8067_v35 = vpack.c.bf16 %v78_v30, %v77_v29  ;;  %v314_v37 = vsel %vm307_vm4, %v311_v25, %v313_v34 }
   0x9   :  { %6973 = vmatpush3.bf16.msk.msra.mxu0 %vm8000_vm3, %v8004_v16  ;;  %6974 = vmatprep.subr.bf16.mxu1 %v10000_v3  ;;  %v8071_v36 = vpack.c.bf16 %v62_v32, %v61_v31 }
   0xa   :  { %6988 = vmatprep.subr.bf16.mxu0 %v10000_v3 }
   0xb   :  { %5691 = vmatmul.mubr.msk.f32.vlgmr.msra.gmra.mrb[0].mxu1 %vm315_vm5, %v310_v24 }
   0xc   :  { %5708 = vmatmul.mubr.msk.f32.vlgmr.msra.gmra.mrb[0].mxu0 %vm315_vm5, %v7990_v13  ;;  %5693 = vmatprep.mubr.msk.f32.mxu1 %vm7866_vm1, %v9998_v11 }
   0xd   :  { %5710 = vmatprep.mubr.msk.f32.mxu0 %vm7866_vm1, %v9998_v11  ;;  %6976 = vmatpush3.bf16.msra.mxu1 %v8035_v26 }
   0xe   :  { %6990 = vmatpush3.bf16.msra.mxu0 %v8043_v28  ;;  %6977 = vmatprep.subr.bf16.mxu1 %v10000_v3 }
   0xf   :  { %5694 = vmatmul.mubr.msk.f32.gmra.mrb[2].mxu1 %vm315_vm5, %v312_v33  ;;  %6991 = vmatprep.subr.bf16.mxu0 %v10000_v3 }
  0x10   :  { %5711 = vmatmul.mubr.msk.f32.gmra.mrb[2].mxu0 %vm315_vm5, %v7995_v14  ;;  %5696 = vmatprep.mubr.msk.f32.mxu1 %vm7866_vm1, %v9998_v11 }
  0x11   :  { %20 = vsyncpa [#allocation3], 0  ;;  %5713 = vmatprep.mubr.msk.f32.mxu0 %vm7866_vm1, %v9998_v11  ;;  %6980 = vmatpush3.bf16.msk.msra.mxu1 %vm8000_vm3, %v8067_v35  ;;  %v662_v38 = vrot.slane %v7990_v13, 2  ;;  %v663_v39 = vrot.slane %v7995_v14, 2  ;;  %vm661_vm6 = vcmask 1045504   ;;  %v71_v40 = vld [vmem:[%s9984_s2] sm:$0xff] }
  0x12   :  { %6994 = vmatpush3.bf16.msk.msra.mxu0 %vm8000_vm3, %v8071_v36  ;;  %6981 = vmatprep.subr.bf16.mxu1 %v10000_v3  ;;  %v72_v41 = vld [vmem:[%s9984_s2 + $0x8] sm:$0xff]  ;;  %v63_v42 = vld [vmem:[%s9983_s1 + $0x60] sm:$0xff]  ;;  %v665_v45 = vrot.slane %v8011_v19, 2  ;;  %v73_v48 = vld [vmem:[%s9984_s2 + $0x10] sm:$0xff]  ;;  %v667_v53 = vrot.slane %v8040_v27, 2  ;;  %v848_v57 = vrot.slane %v7990_v13, 3 }
  0x13   :  { %5697 = vmatmul.mubr.msk.f32.gmra.mrb[4].mxu1 %vm315_vm5, %v314_v37  ;;  %7002 = vmatprep.subr.bf16.mxu0 %v10000_v3  ;;  %v64_v43 = vld [vmem:[%s9983_s1 + $0x68] sm:$0xff]  ;;  %v8112_v44 = vsel %vm661_vm6, %v662_v38, %v663_v39  ;;  %v8115_v46 = vpack.c.bf16 %v72_v41, %v71_v40  ;;  %v74_v49 = vld [vmem:[%s9984_s2 + $0x18] sm:$0xf]  ;;  %v65_v50 = vld [vmem:[%s9983_s1 + $0x70] sm:$0xff]  ;;  %v849_v58 = vrot.slane %v7995_v14, 3  ;;  %vm847_vm7 = vcmask 1044480  }
  0x14   :  { %5714 = vmatmul.mubr.msk.f32.gmra.mrb[4].mxu0 %vm315_vm5, %v8011_v19  ;;  %5724 = vmatprep.mubr.msk.f32.mxu1 %vm7866_vm1, %v9998_v11  ;;  %v8117_v47 = vpack.c.bf16 %v64_v43, %v63_v42  ;;  %v66_v51 = vld [vmem:[%s9983_s1 + $0x78] sm:$0xf]  ;;  %v8139_v52 = vsel %vm661_vm6, %v663_v39, %v665_v45  ;;  %v8143_v54 = vpack.c.bf16 %v74_v49, %v73_v48  ;;  %v79_v59 = vld [vmem:[%s9984_s2 + $0x40] sm:$0xff]  ;;  %v80_v60 = vld [vmem:[%s9984_s2 + $0x48] sm:$0xff]  ;;  %v851_v0 = vrot.slane %v8011_v19, 3 }
  0x15   :  { %5758 = vmatprep.mubr.msk.f32.mxu0 %vm7866_vm1, %v9998_v11  ;;  %v8147_v55 = vpack.c.bf16 %v66_v51, %v65_v50  ;;  %v8158_v56 = vsel %vm661_vm6, %v665_v45, %v667_v53  ;;  %v67_v61 = vld [vmem:[%s9983_s1 + $0x80] sm:$0xff]  ;;  %v68_v62 = vld [vmem:[%s9983_s1 + $0x88] sm:$0xff]  ;;  %v8190_v63 = vsel %vm847_vm7, %v848_v57, %v849_v58  ;;  %v8193_v1 = vpack.c.bf16 %v80_v60, %v79_v59  ;;  %v81_v5 = vld [vmem:[%s9984_s2 + $0x50] sm:$0xff] }
  0x16   :  { %v8195_v2 = vpack.c.bf16 %v68_v62, %v67_v61  ;;  %v82_v6 = vld [vmem:[%s9984_s2 + $0x58] sm:$0xf]  ;;  %v69_v7 = vld [vmem:[%s9983_s1 + $0x90] sm:$0xff]  ;;  %v852_v10 = vsel %vm847_vm7, %v849_v58, %v851_v0  ;;  %v853_v17 = vrot.slane %v8040_v27, 3  ;;  %v1033_v22 = vrot.slane %v7990_v13, 4  ;;  %v84_v25 = vld [vmem:[%s9984_s2 + $0x68] sm:$0xff] }
  0x17   :  { %5725 = vmatmul.mubr.msk.f32.vlgmr.msra.gmra.mrb[6].mxu1 %vm315_vm5, %v310_v24  ;;  %v70_v9 = vld [vmem:[%s9983_s1 + $0x98] sm:$0xf]  ;;  %v8220_v18 = vpack.c.bf16 %v82_v6, %v81_v5  ;;  %v1034_v23 = vrot.slane %v7995_v14, 4  ;;  %v83_v24 = vld [vmem:[%s9984_s2 + $0x60] sm:$0xff]  ;;  %v85_v30 = vld [vmem:[%s9984_s2 + $0x70] sm:$0xff]  ;;  %v1038_v32 = vrot.slane %v8040_v27, 4 }
  0x18   :  { %5759 = vmatmul.mubr.msk.f32.vlgmr.msra.gmra.mrb[0].mxu0 %vm315_vm5, %v8112_v44  ;;  %5727 = vmatprep.mubr.msk.f32.mxu1 %vm7866_vm1, %v9998_v11  ;;  %v8224_v20 = vpack.c.bf16 %v70_v9, %v69_v7  ;;  %v854_v21 = vsel %vm847_vm7, %v851_v0, %v853_v17  ;;  %v8259_v29 = vpack.c.bf16 %v84_v25, %v83_v24  ;;  %v86_v31 = vld [vmem:[%s9984_s2 + $0x78] sm:$0xf]  ;;  %v87_v27 = vld [vmem:[%s9984_s2 + $0x80] sm:$0xff]  ;;  %v89_v39 = vld [vmem:[%s9984_s2 + $0x90] sm:$0xff]  ;;  %vm1221_vm8 = vcmask 195584  }
  0x19   :  { %5761 = vmatprep.mubr.msk.f32.mxu0 %vm7866_vm1, %v9998_v11  ;;  %6983 = vmatpush3.bf16.msra.mxu1 %v8115_v46  ;;  %v90_v40 = vld [vmem:[%s9984_s2 + $0x98] sm:$0xf]  ;;  %v91_v42 = vld [vmem:[%s9985_s3] sm:$0xff]  ;;  %vm1401_vm9 = vcmask 982016   ;;  %vm2128_vm10 = vcmask 64512   ;;  %vm2284_vm11 = vcmask 654336  }
  0x1a   :  { %7004 = vmatpush3.bf16.msra.mxu0 %v8117_v47  ;;  %6984 = vmatprep.subr.bf16.mxu1 %v10000_v3  ;;  %v8316_v41 = vpack.c.bf16 %v90_v40, %v89_v39  ;;  %v93_v43 = vld [vmem:[%s9986_s4] sm:$0xff]  ;;  %v186_v25 = vld [vmem:[%s9989_s7 + $0x78] sm:$0xff]  ;;  %vm2582_vm12 = vcmask 523264   ;;  %v7825_v15 = vld [vmem:[%s9989_s7 + $0xe8] sm:$0xff] }
  0x1b   :  { %5728 = vmatmul.mubr.msk.f32.gmra.mrb[8].mxu1 %vm315_vm5, %v312_v33  ;;  %7005 = vmatprep.subr.bf16.mxu0 %v10000_v3  ;;  %v8277_v33 = vpack.c.bf16 %v86_v31, %v85_v30  ;;  %v112_v24 = vld [vmem:[%s9988_s6 + $0x80] sm:$0xff]  ;;  %v94_v30 = vld [vmem:[%s9986_s4 + $0x8] sm:$0xf] }
  0x1c   :  { %5762 = vmatmul.mubr.msk.f32.gmra.mrb[2].mxu0 %vm315_vm5, %v8139_v52  ;;  %5730 = vmatprep.mubr.msk.f32.mxu1 %vm7866_vm1, %v9998_v11 }
  0x1d   :  { %5764 = vmatprep.mubr.msk.f32.mxu0 %vm7866_vm1, %v9998_v11  ;;  %6987 = vmatpush3.bf16.msk.msra.mxu1 %vm8000_vm3, %v8143_v54 }
  0x1e   :  { %7008 = vmatpush3.bf16.msk.msra.mxu0 %vm8000_vm3, %v8147_v55  ;;  %6995 = vmatprep.subr.bf16.mxu1 %v10000_v3 }
  0x1f   :  { %5731 = vmatmul.mubr.msk.f32.gmra.mrb[10].mxu1 %vm315_vm5, %v314_v37  ;;  %7016 = vmatprep.subr.bf16.mxu0 %v10000_v3  ;;  %v88_v37 = vld [vmem:[%s9984_s2 + $0x88] sm:$0xff] }
  0x20   :  { %5765 = vmatmul.mubr.msk.f32.gmra.mrb[4].mxu0 %vm315_vm5, %v8158_v56  ;;  %5741 = vmatprep.mubr.msk.f32.mxu1 %vm7866_vm1, %v9998_v11  ;;  %v8303_v38 = vpack.c.bf16 %v88_v37, %v87_v27  ;;  %v188_v27 = vld [vmem:[%s9989_s7 + $0x88] sm:$0xff]  ;;  %v189_v37 = vld [vmem:[%s9989_s7 + $0x90] sm:$0xff] }
  0x21   :  { %5792 = vmatprep.mubr.msk.f32.mxu0 %vm7866_vm1, %v9998_v11  ;;  %v8385_v40 = vpack.c.bf16 %v189_v37, %v188_v27 }
  0x23   :  { %5742 = vmatmul.mubr.msk.f32.vlgmr.msra.gmra.mrb[6].mxu1 %vm315_vm5, %v7990_v13  ;;  %v1035_v13 = vsel %vm322_vm0, %v1033_v22, %v1034_v23 }
  0x24   :  { %5793 = vmatmul.mubr.msk.f32.vlgmr.msra.gmra.mrb[0].mxu0 %vm315_vm5, %v8190_v63  ;;  %5744 = vmatprep.mubr.msk.f32.mxu1 %vm7866_vm1, %v9998_v11 }
  0x25   :  { %5795 = vmatprep.mubr.msk.f32.mxu0 %vm7866_vm1, %v9998_v11  ;;  %6997 = vmatpush3.bf16.msra.mxu1 %v8193_v1 }
  0x26   :  { %7018 = vmatpush3.bf16.msra.mxu0 %v8195_v2  ;;  %6998 = vmatprep.subr.bf16.mxu1 %v10000_v3 }
  0x27   :  { %5745 = vmatmul.mubr.msk.f32.gmra.mrb[8].mxu1 %vm315_vm5, %v7995_v14  ;;  %7019 = vmatprep.subr.bf16.mxu0 %v10000_v3  ;;  %v1036_v14 = vrot.slane %v8011_v19, 4 }
  0x28   :  { %5796 = vmatmul.mubr.msk.f32.gmra.mrb[2].mxu0 %vm315_vm5, %v852_v10  ;;  %5747 = vmatprep.mubr.msk.f32.mxu1 %vm7866_vm1, %v9998_v11 }
  0x29   :  { %5798 = vmatprep.mubr.msk.f32.mxu0 %vm7866_vm1, %v9998_v11  ;;  %7001 = vmatpush3.bf16.msk.msra.mxu1 %vm8000_vm3, %v8220_v18  ;;  %v1039_v34 = vsel %vm322_vm0, %v1036_v14, %v1038_v32  ;;  %v113_v32 = vld [vmem:[%s9988_s6 + $0x88] sm:$0xff] }
  0x2a   :  { %7022 = vmatpush3.bf16.msk.msra.mxu0 %vm8000_vm3, %v8224_v20  ;;  %7009 = vmatprep.subr.bf16.mxu1 %v10000_v3 }
  0x2b   :  { %5748 = vmatmul.mubr.msk.f32.gmra.mrb[10].mxu1 %vm315_vm5, %v8011_v19  ;;  %v1037_v19 = vsel %vm322_vm0, %v1034_v23, %v1036_v14  ;;  %v111_v23 = vld [vmem:[%s9988_s6 + $0x78] sm:$0xff]  ;;  %v92_v14 = vld [vmem:[%s9985_s3 + $0x8] sm:$0xf] }
  0x2c   :  { %5799 = vmatmul.mubr.msk.f32.gmra.mrb[4].mxu0 %vm315_vm5, %v854_v21  ;;  %5775 = vmatprep.mubr.msk.f32.mxu1 %vm7866_vm1, %v9998_v11  ;;  %v8361_v31 = vpack.c.bf16 %v112_v24, %v111_v23  ;;  %v199_v24 = vld [vmem:[%s9989_s7 + $0xe0] sm:$0xff] }
  0x2d   :  { %5826 = vmatprep.mubr.msk.f32.mxu0 %vm7866_vm1, %v9998_v11 }
  0x2f   :  { %5776 = vmatmul.mubr.msk.f32.vlgmr.msra.gmra.mrb[6].mxu1 %vm315_vm5, %v8112_v44 }
  0x30   :  { %5827 = vmatmul.mubr.msk.f32.vlgmr.msra.gmra.mrb[0].mxu0 %vm315_vm5, %v1035_v13  ;;  %5778 = vmatprep.mubr.msk.f32.mxu1 %vm7866_vm1, %v9998_v11 }
  0x31   :  { %5829 = vmatprep.mubr.msk.f32.mxu0 %vm7866_vm1, %v9998_v11  ;;  %7011 = vmatpush3.bf16.msra.mxu1 %v8259_v29 }
  0x32   :  { %7012 = vmatprep.subr.bf16.mxu1 %v10000_v3 }
  0x33   :  { %5779 = vmatmul.mubr.msk.f32.gmra.mrb[8].mxu1 %vm315_vm5, %v8139_v52 }
  0x34   :  { %5830 = vmatmul.mubr.msk.f32.gmra.mrb[2].mxu0 %vm315_vm5, %v1037_v19  ;;  %5781 = vmatprep.mubr.msk.f32.mxu1 %vm7866_vm1, %v9998_v11 }
  0x35   :  { %5832 = vmatprep.mubr.msk.f32.mxu0 %vm7866_vm1, %v9998_v11  ;;  %7015 = vmatpush3.bf16.msk.msra.mxu1 %vm8000_vm3, %v8277_v33 }
  0x36   :  { %7023 = vmatprep.subr.bf16.mxu1 %v10000_v3 }
  0x37   :  { %5782 = vmatmul.mubr.msk.f32.gmra.mrb[10].mxu1 %vm315_vm5, %v8158_v56 }
  0x38   :  { %5833 = vmatmul.mubr.msk.f32.gmra.mrb[4].mxu0 %vm315_vm5, %v1039_v34  ;;  %5809 = vmatprep.mubr.msk.f32.mxu1 %vm7866_vm1, %v9998_v11 }
  0x39   :  { %5858 = vmatprep.mubr.msk.f32.mxu0 %vm1221_vm8, %v91_v42  ;;  %v115_v42 = vld [vmem:[%s9988_s6 + $0x98] sm:$0xff] }
  0x3b   :  { %5810 = vmatmul.mubr.msk.f32.vlgmr.msra.gmra.mrb[6].mxu1 %vm315_vm5, %v8190_v63 }
  0x3c   :  { %5812 = vmatprep.mubr.msk.f32.mxu1 %vm7866_vm1, %v9998_v11  ;;  %7025 = vmatpush3.bf16.msra.mxu1 %v8303_v38 }
  0x3d   :  { %7026 = vmatprep.subr.bf16.mxu1 %v10000_v3 }
  0x3f   :  { %5813 = vmatmul.mubr.msk.f32.gmra.mrb[8].mxu1 %vm315_vm5, %v852_v10 }
  0x40   :  { %5815 = vmatprep.mubr.msk.f32.mxu1 %vm7866_vm1, %v9998_v11  ;;  %7029 = vmatpush3.bf16.msk.msra.mxu1 %vm8000_vm3, %v8316_v41 }
  0x43   :  { %5816 = vmatmul.mubr.msk.f32.gmra.mrb[10].mxu1 %vm315_vm5, %v854_v21 }
  0x44   :  { %5843 = vmatprep.mubr.msk.f32.mxu1 %vm7866_vm1, %v9998_v11 }
  0x47   :  { %5844 = vmatmul.mubr.msk.f32.vlgmr.msra.gmra.mrb[6].mxu1 %vm315_vm5, %v1035_v13  ;;  %v187_v13 = vld [vmem:[%s9989_s7 + $0x80] sm:$0xff] }
  0x48   :  { %5846 = vmatprep.mubr.msk.f32.mxu1 %vm7866_vm1, %v9998_v11 }
  0x4b   :  { %5847 = vmatmul.mubr.msk.f32.gmra.mrb[8].mxu1 %vm315_vm5, %v1037_v19  ;;  %v8363_v19 = vpack.c.bf16 %v187_v13, %v186_v25  ;;  %v125_v13 = vld [vmem:[%s9988_s6 + $0xe8] sm:$0xff] }
  0x4c   :  { %5849 = vmatprep.mubr.msk.f32.mxu1 %vm7866_vm1, %v9998_v11 }
  0x4f   :  { %5850 = vmatmul.mubr.msk.f32.gmra.mrb[10].mxu1 %vm315_vm5, %v1039_v34  ;;  %v114_v34 = vld [vmem:[%s9988_s6 + $0x90] sm:$0xff] }
  0x50   :  { %5867 = vmatprep.mubr.msk.f32.mxu1 %vm1221_vm8, %v93_v43  ;;  %v8383_v39 = vpack.c.bf16 %v114_v34, %v113_v32  ;;  %v116_v43 = vld [vmem:[%s9988_s6 + $0xa0] sm:$0xff] }
  0x51   :  { %v5004_v32 = vld [vmem:[%s9987_s5] ss:$0 sm:$0xff] }
  0xde   :  { %v392_v44 = vpop.f32.mrb[0].mxu1 }
  0xdf   :  { %v5692_v45 = vpop.f32.mrb[1].mxu1 }
  0xe0   :  { %v191_v45 = vld [vmem:[%s9989_s7 + $0xa0] sm:$0xff] }
  0xe2   :  { %v397_v48 = vpop.f32.mrb[2].mxu1 }
  0xe3   :  { %v5695_v49 = vpop.f32.mrb[3].mxu1 }
  0xe6   :  { %v402_v50 = vpop.f32.mrb[4].mxu1 }
  0xe7   :  { %v5698_v51 = vpop.f32.mrb[5].mxu1 }
  0xe8   :  { %v118_v51 = vld [vmem:[%s9988_s6 + $0xb0] sm:$0xff] }
 0x103   :  { %v1115_v52 = vpop.f32.mrb[0].mxu0 }
 0x104   :  { %v7680_v53 = vadd.f32 %v1115_v52, %v392_v44  ;;  %v5828_v56 = vpop.f32.mrb[1].mxu0  ;;  %v190_v44 = vld [vmem:[%s9989_s7 + $0x98] sm:$0xff]  ;;  %v192_v52 = vld [vmem:[%s9989_s7 + $0xa8] sm:$0xff] }
 0x105   :  { %v8409_v49 = vpack.c.bf16 %v191_v45, %v190_v44  ;;  %v96_v44 = vld [vmem:[%s9988_s6] sm:$0xff] }
 0x107   :  { %v1120_v57 = vpop.f32.mrb[2].mxu0 }
 0x108   :  { %v7681_v58 = vadd.f32 %v1120_v57, %v397_v48  ;;  %v5831_v59 = vpop.f32.mrb[3].mxu0  ;;  %v8407_v48 = vpack.c.bf16 %v116_v43, %v115_v42 }
 0x109   :  { %v120_v59 = vld [vmem:[%s9988_s6 + $0xc0] sm:$0xff] }
 0x10b   :  { %v1125_v60 = vpop.f32.mrb[4].mxu0 }
 0x10c   :  { %v7682_v61 = vadd.f32 %v1125_v60, %v402_v50  ;;  %v5834_v62 = vpop.f32.mrb[5].mxu0  ;;  %v117_v50 = vld [vmem:[%s9988_s6 + $0xa8] sm:$0xff]  ;;  %v194_v60 = vld [vmem:[%s9989_s7 + $0xb8] sm:$0xff] }
 0x10d   :  { %v8427_v56 = vpack.c.bf16 %v118_v51, %v117_v50  ;;  %v97_v50 = vld [vmem:[%s9988_s6 + $0x8] sm:$0xff]  ;;  %v171_v51 = vld [vmem:[%s9989_s7] sm:$0xff] }
 0x11a   :  { %v1201_v63 = vpop.f32.mrb[6].mxu1 }
 0x11b   :  { %v1218_v0 = vmax.f32 %v7680_v53, %v1201_v63  ;;  %v5845_v5 = vpop.f32.mrb[7].mxu1  ;;  %v193_v53 = vld [vmem:[%s9989_s7 + $0xb0] sm:$0xff] }
 0x11c   :  { %v8429_v57 = vpack.c.bf16 %v193_v53, %v192_v52  ;;  %v122_v5 = vld [vmem:[%s9988_s6 + $0xd0] sm:$0xff]  ;;  %v172_v52 = vld [vmem:[%s9989_s7 + $0x8] sm:$0xff] }
 0x11e   :  { %v1206_v6 = vpop.f32.mrb[8].mxu1 }
 0x11f   :  { %v1219_v7 = vmax.f32 %v7681_v58, %v1206_v6  ;;  %v5848_v9 = vpop.f32.mrb[9].mxu1  ;;  %v119_v58 = vld [vmem:[%s9988_s6 + $0xb8] sm:$0xff]  ;;  %v196_v6 = vld [vmem:[%s9989_s7 + $0xc8] sm:$0xff] }
 0x120   :  { %v8447_v62 = vpack.c.bf16 %v120_v59, %v119_v58  ;;  %v197_v9 = vld [vmem:[%s9989_s7 + $0xd0] sm:$0xff] }
 0x121   :  { %v7030_v10 = vpack.c.bf16 %v1219_v7, %v1218_v0  ;;  %v121_v0 = vld [vmem:[%s9988_s6 + $0xc8] sm:$0xff] }
 0x122   :  { %v1211_v17 = vpop.f32.mrb[10].mxu1  ;;  %v8466_v7 = vpack.c.bf16 %v122_v5, %v121_v0 }
 0x123   :  { %v1220_v21 = vmax.f32 %v7682_v61, %v1211_v17  ;;  %v5851_v22 = vpop.f32.mrb[11].mxu1  ;;  %7031 = vmatprep.subr.bf16.mxu0 %v7030_v10  ;;  %7035 = vmatprep.subr.bf16.mxu1 %v7030_v10  ;;  %v195_v61 = vld [vmem:[%s9989_s7 + $0xc0] sm:$0xff]  ;;  %v123_v17 = vld [vmem:[%s9988_s6 + $0xd8] sm:$0xff] }
 0x124   :  { %7033 = vmatpush3.bf16.msra.mxu0 %v7030_v10  ;;  %7037 = vmatpush3.bf16.msra.mxu1 %v7030_v10  ;;  %v8449_v63 = vpack.c.bf16 %v195_v61, %v194_v60  ;;  %v8471_v10 = vpack.c.bf16 %v197_v9, %v196_v6  ;;  %v198_v22 = vld [vmem:[%s9989_s7 + $0xd8] sm:$0xff]  ;;  %v8522_v60 = vpack.c.bf16 %v97_v50, %v96_v44  ;;  %v101_v50 = vld [vmem:[%s9988_s6 + $0x28] sm:$0xff] }
 0x125   :  { %5856 = vmatprep.subr.mxu0 %v1220_v21  ;;  %5865 = vmatprep.subr.mxu1 %v1220_v21  ;;  %v8491_v25 = vpack.c.bf16 %v199_v24, %v198_v22  ;;  %v8524_v61 = vpack.c.bf16 %v172_v52, %v171_v51  ;;  %v175_v51 = vld [vmem:[%s9989_s7 + $0x20] sm:$0xff]  ;;  %v176_v52 = vld [vmem:[%s9989_s7 + $0x28] sm:$0xff] }
 0x128   :  { %5857 = vmatpush3.msra.mxu0 %v1220_v21  ;;  %5866 = vmatpush3.msra.mxu1 %v1220_v21  ;;  %v124_v21 = vld [vmem:[%s9988_s6 + $0xe0] sm:$0xff] }
 0x129   :  { %5859 = vmatmul.mubr.msk.f32.vlgmr.msra.gmra.mrb[6].mxu0 %vm1221_vm8, %v92_v14  ;;  %5868 = vmatmul.mubr.msk.f32.vlgmr.msra.gmra.mrb[12].mxu1 %vm1221_vm8, %v94_v30  ;;  %v8486_v23 = vpack.c.bf16 %v124_v21, %v123_v17  ;;  %v200_v14 = vld [vmem:[%s9989_s7 + $0xe8] sm:$0xff]  ;;  %v98_v21 = vld [vmem:[%s9988_s6 + $0x10] sm:$0xff] }
 0x12a   :  { %7038 = vmatprep.subr.bf16.mxu0 %v10000_v3  ;;  %7080 = vmatprep.subr.bf16.mxu1 %v10000_v3 }
 0x12b   :  { %7040 = vmatpush3.bf16.msra.mxu0 %v8361_v31  ;;  %7082 = vmatpush3.bf16.msra.mxu1 %v8363_v19 }
 0x12c   :  { %7041 = vmatprep.subr.bf16.mxu0 %v10000_v3  ;;  %7083 = vmatprep.subr.bf16.mxu1 %v10000_v3 }
 0x12d   :  { %5900 = vmatprep.mubr.msk.f32.mxu0 %vm7866_vm1, %v9998_v11  ;;  %5966 = vmatprep.mubr.msk.f32.mxu1 %vm7866_vm1, %v9998_v11 }
 0x12f   :  { %7043 = vmatpush3.bf16.msra.mxu0 %v8383_v39  ;;  %7085 = vmatpush3.bf16.msra.mxu1 %v8385_v40 }
 0x130   :  { %7044 = vmatprep.subr.bf16.mxu0 %v10000_v3  ;;  %7086 = vmatprep.subr.bf16.mxu1 %v10000_v3 }
 0x133   :  { %7046 = vmatpush3.bf16.msra.mxu0 %v8407_v48  ;;  %7088 = vmatpush3.bf16.msra.mxu1 %v8409_v49 }
 0x134   :  { %7047 = vmatprep.subr.bf16.mxu0 %v10000_v3  ;;  %7089 = vmatprep.subr.bf16.mxu1 %v10000_v3 }
 0x137   :  { %7049 = vmatpush3.bf16.msra.mxu0 %v8427_v56  ;;  %7091 = vmatpush3.bf16.msra.mxu1 %v8429_v57 }
 0x138   :  { %7050 = vmatprep.subr.bf16.mxu0 %v10000_v3  ;;  %7092 = vmatprep.subr.bf16.mxu1 %v10000_v3 }
 0x13b   :  { %7052 = vmatpush3.bf16.msra.mxu0 %v8447_v62  ;;  %7094 = vmatpush3.bf16.msra.mxu1 %v8449_v63 }
 0x13c   :  { %7053 = vmatprep.subr.bf16.mxu0 %v10000_v3  ;;  %7095 = vmatprep.subr.bf16.mxu1 %v10000_v3 }
 0x13f   :  { %7055 = vmatpush3.bf16.msra.mxu0 %v8466_v7  ;;  %7097 = vmatpush3.bf16.msra.mxu1 %v8471_v10 }
 0x140   :  { %7056 = vmatprep.subr.bf16.mxu0 %v10000_v3  ;;  %7098 = vmatprep.subr.bf16.mxu1 %v10000_v3 }
 0x143   :  { %7058 = vmatpush3.bf16.msra.mxu0 %v8486_v23  ;;  %7100 = vmatpush3.bf16.msra.mxu1 %v8491_v25 }
 0x144   :  { %5898 = vmatprep.subr.mxu0 %v9998_v11  ;;  %5964 = vmatprep.subr.mxu1 %v9998_v11 }
 0x147   :  { %5899 = vmatpush3.msra.mxu0 %v125_v13  ;;  %5965 = vmatpush3.msra.mxu1 %v200_v14  ;;  %v99_v14 = vld [vmem:[%s9988_s6 + $0x18] sm:$0xff] }
 0x148   :  { %7059 = vmatprep.subr.bf16.mxu0 %v10000_v3  ;;  %7101 = vmatprep.subr.bf16.mxu1 %v10000_v3 }
 0x1fc   :  { %v5860_v30 = vpop.f32.mrb[6].mxu0  ;;  %v5869_v34 = vpop.f32.mrb[12].mxu1 }
 0x1fd   :  { %v1385_v27 = vmax.f32 %v5860_v30, %v5869_v34  ;;  %v1294_v37 = vpop.f32.mrb[7].mxu0  ;;  %v1375_v42 = vpop.f32.mrb[13].mxu1  ;;  %v173_v30 = vld [vmem:[%s9989_s7 + $0x10] sm:$0xff] }
 0x1fe   :  { %v1384_v43 = vmax.f32 %v1294_v37, %v1375_v42 }
 0x1ff   :  { %v1393_v45 = vadd.f32 %v5004_v32, %v1385_v27 }
 0x200   :  { %v1392_v53 = vadd.f32 %v5004_v32, %v1384_v43  ;;  %v174_v32 = vld [vmem:[%s9989_s7 + $0x18] sm:$0xff]  ;;  %v8556_v43 = vpack.c.bf16 %v99_v14, %v98_v21  ;;  %v180_v14 = vld [vmem:[%s9989_s7 + $0x48] sm:$0xff] }
 0x201   :  { %v1395_v58 = vmax.f32 %v1393_v45, 0.0  ;;  %v8558_v44 = vpack.c.bf16 %v174_v32, %v173_v30  ;;  %v100_v45 = vld [vmem:[%s9988_s6 + $0x20] sm:$0xff] }
 0x202   :  { %v8520_v59 = vmax.f32 %v1392_v53, 0.0  ;;  %v8580_v53 = vpack.c.bf16 %v101_v50, %v100_v45  ;;  %v107_v45 = vld [vmem:[%s9988_s6 + $0x58] sm:$0xff]  ;;  %v181_v50 = vld [vmem:[%s9989_s7 + $0x50] sm:$0xff] }
 0x203   :  { %v1399_v0 = vrot.slane %v1395_v58, 1  ;;  %v1687_v5 = vrot.slane %v1395_v58, 2  ;;  %v1834_v6 = vrot.slane %v1395_v58, 3  ;;  %v1981_v9 = vrot.slane %v1395_v58, 4 }
 0x204   :  { %v1398_v17 = vrot.slane %v8520_v59, 1  ;;  %v1686_v22 = vrot.slane %v8520_v59, 2  ;;  %v1833_v24 = vrot.slane %v8520_v59, 3  ;;  %v1980_v13 = vrot.slane %v8520_v59, 4 }
 0x205   :  { %v8582_v58 = vpack.c.bf16 %v176_v52, %v175_v51  ;;  %v182_v51 = vld [vmem:[%s9989_s7 + $0x58] sm:$0xff] }
 0x206   :  { %v1400_v34 = vsel %vm307_vm4, %v1398_v17, %v1399_v0  ;;  %v8544_v27 = vsel %vm661_vm6, %v1686_v22, %v1687_v5  ;;  %v8547_v37 = vsel %vm847_vm7, %v1833_v24, %v1834_v6  ;;  %v8550_v42 = vsel %vm322_vm0, %v1980_v13, %v1981_v9  ;;  %v102_v0 = vld [vmem:[%s9988_s6 + $0x30] sm:$0xff]  ;;  %v103_v5 = vld [vmem:[%s9988_s6 + $0x38] sm:$0xff]  ;;  %v104_v22 = vld [vmem:[%s9988_s6 + $0x40] sm:$0xff] }
 0x207   :  { %5901 = vmatmul.mubr.msk.f32.vlgmr.msra.gmra.mrb[8].mxu0 %vm1401_vm9, %v1400_v34  ;;  %5967 = vmatmul.mubr.msk.f32.vlgmr.msra.gmra.mrb[14].mxu1 %vm1401_vm9, %v1400_v34  ;;  %v177_v6 = vld [vmem:[%s9989_s7 + $0x30] sm:$0xff]  ;;  %v178_v9 = vld [vmem:[%s9989_s7 + $0x38] sm:$0xff]  ;;  %v8600_v17 = vpack.c.bf16 %v103_v5, %v102_v0  ;;  %v105_v24 = vld [vmem:[%s9988_s6 + $0x48] sm:$0xff]  ;;  %v8642_v0 = vpack.c.bf16 %v182_v51, %v181_v50 }
 0x208   :  { %7061 = vmatpush3.bf16.msra.mxu0 %v8522_v60  ;;  %7103 = vmatpush3.bf16.msra.mxu1 %v8524_v61  ;;  %v8602_v21 = vpack.c.bf16 %v178_v9, %v177_v6  ;;  %v179_v13 = vld [vmem:[%s9989_s7 + $0x40] sm:$0xff]  ;;  %v8620_v30 = vpack.c.bf16 %v105_v24, %v104_v22  ;;  %v106_v34 = vld [vmem:[%s9988_s6 + $0x50] sm:$0xff]  ;;  %v109_v6 = vld [vmem:[%s9988_s6 + $0x68] sm:$0xff] }
 0x209   :  { %7062 = vmatprep.subr.bf16.mxu0 %v10000_v3  ;;  %7104 = vmatprep.subr.bf16.mxu1 %v10000_v3  ;;  %v8622_v32 = vpack.c.bf16 %v180_v14, %v179_v13  ;;  %v8640_v52 = vpack.c.bf16 %v107_v45, %v106_v34  ;;  %v108_v5 = vld [vmem:[%s9988_s6 + $0x60] sm:$0xff]  ;;  %v184_v22 = vld [vmem:[%s9989_s7 + $0x68] sm:$0xff]  ;;  %v126_v14 = vld [vmem:[%s9988_s6 + $0xf0] sm:$0xff] }
 0x20a   :  { %5933 = vmatprep.mubr.msk.f32.mxu0 %vm7866_vm1, %v9998_v11  ;;  %5999 = vmatprep.mubr.msk.f32.mxu1 %vm7866_vm1, %v9998_v11  ;;  %v183_v9 = vld [vmem:[%s9989_s7 + $0x60] sm:$0xff]  ;;  %v8660_v24 = vpack.c.bf16 %v109_v6, %v108_v5  ;;  %v127_v34 = vld [vmem:[%s9988_s6 + $0xf8] sm:$0xff]  ;;  %v201_v45 = vld [vmem:[%s9989_s7 + $0xf0] sm:$0xff] }
 0x20b   :  { %v8662_v13 = vpack.c.bf16 %v184_v22, %v183_v9  ;;  %v202_v50 = vld [vmem:[%s9989_s7 + $0xf8] sm:$0xff]  ;;  %v110_v51 = vld [vmem:[%s9988_s6 + $0x70] sm:$0xff]  ;;  %v8688_v6 = vpack.c.bf16 %v127_v34, %v126_v14  ;;  %v128_v22 = vld [vmem:[%s9988_s6 + $0x100] sm:$0xff]  ;;  %v10070_v34 = vmov 0.0|0.0  }
 0x20c   :  { %7064 = vmatpush3.bf16.msra.mxu0 %v8556_v43  ;;  %7106 = vmatpush3.bf16.msra.mxu1 %v8558_v44  ;;  %v185_v5 = vld [vmem:[%s9989_s7 + $0x70] sm:$0xff]  ;;  %v8690_v9 = vpack.c.bf16 %v202_v50, %v201_v45  ;;  %v204_v14 = vld [vmem:[%s9989_s7 + $0x108] sm:$0xff] }
 0x20d   :  { %7065 = vmatprep.subr.bf16.mxu0 %v10000_v3  ;;  %7107 = vmatprep.subr.bf16.mxu1 %v10000_v3  ;;  %10067 = vst [vmem:[#allocation5_spill] sm:$0xff] %v8662_v13  ;;  %10068 = vst [vmem:[#allocation6_spill] sm:$0xff] %v8688_v6 }
 0x20e   :  { %10069 = vst [vmem:[#allocation7_spill] sm:$0xff] %v8690_v9 }
 0x210   :  { %7067 = vmatpush3.bf16.msra.mxu0 %v8580_v53  ;;  %7109 = vmatpush3.bf16.msra.mxu1 %v8582_v58 }
 0x211   :  { %7068 = vmatprep.subr.bf16.mxu0 %v10000_v3  ;;  %7110 = vmatprep.subr.bf16.mxu1 %v10000_v3 }
 0x214   :  { %7070 = vmatpush3.bf16.msra.mxu0 %v8600_v17  ;;  %7112 = vmatpush3.bf16.msra.mxu1 %v8602_v21 }
 0x215   :  { %7071 = vmatprep.subr.bf16.mxu0 %v10000_v3  ;;  %7113 = vmatprep.subr.bf16.mxu1 %v10000_v3 }
 0x218   :  { %7073 = vmatpush3.bf16.msra.mxu0 %v8620_v30  ;;  %7115 = vmatpush3.bf16.msra.mxu1 %v8622_v32 }
 0x219   :  { %7074 = vmatprep.subr.bf16.mxu0 %v10000_v3  ;;  %7116 = vmatprep.subr.bf16.mxu1 %v10000_v3 }
 0x21c   :  { %7076 = vmatpush3.bf16.msra.mxu0 %v8640_v52  ;;  %7118 = vmatpush3.bf16.msra.mxu1 %v8642_v0 }
 0x21d   :  { %7077 = vmatprep.subr.bf16.mxu0 %v10000_v3  ;;  %7119 = vmatprep.subr.bf16.mxu1 %v10000_v3  ;;  %v203_v3 = vld [vmem:[%s9989_s7 + $0x100] sm:$0xff] }
 0x21e   :  { %v8714_v50 = vpack.c.bf16 %v204_v14, %v203_v3  ;;  %v206_v3 = vld [vmem:[%s9989_s7 + $0x118] sm:$0xff] }
 0x220   :  { %7079 = vmatpush3.bf16.msra.mxu0 %v8660_v24  ;;  %7121 = vmatpush3.bf16.msra.mxu1 %v8662_v13  ;;  %10072 = vst [vmem:[#allocation9_spill] sm:$0xff] %v8714_v50  ;;  %v218_v13 = vld [vmem:[%s9989_s7 + $0x178] sm:$0xff] }
 0x221   :  { %5931 = vmatprep.subr.mxu0 %v9998_v11  ;;  %5997 = vmatprep.subr.mxu1 %v9998_v11  ;;  %v129_v11 = vld [vmem:[%s9988_s6 + $0x108] sm:$0xff] }
 0x222   :  { %v8712_v45 = vpack.c.bf16 %v129_v11, %v128_v22  ;;  %v10073_v11 = vmov 0.0  }
 0x224   :  { %5932 = vmatpush3.msra.mxu0 %v110_v51  ;;  %5998 = vmatpush3.msra.mxu1 %v185_v5  ;;  %10071 = vst [vmem:[#allocation8_spill] sm:$0xff] %v8712_v45  ;;  %v130_v51 = vld [vmem:[%s9988_s6 + $0x110] sm:$0xff] }
 0x225   :  { %5934 = vmatmul.mubr.msk.f32.vlgmr.msra.gmra.mrb[8].mxu0 %vm1401_vm9, %v8520_v59  ;;  %6000 = vmatmul.mubr.msk.f32.vlgmr.msra.gmra.mrb[14].mxu1 %vm1401_vm9, %v8520_v59  ;;  %v131_v59 = vld [vmem:[%s9988_s6 + $0x118] sm:$0xff]  ;;  %v205_v5 = vld [vmem:[%s9989_s7 + $0x110] sm:$0xff] }
 0x226   :  { %7122 = vmatprep.subr.bf16.mxu0 %v10070_v34  ;;  %7143 = vmatprep.subr.bf16.mxu1 %v10070_v34  ;;  %v8736_v22 = vpack.c.bf16 %v131_v59, %v130_v51  ;;  %v8738_v14 = vpack.c.bf16 %v206_v3, %v205_v5  ;;  %v208_v51 = vld [vmem:[%s9989_s7 + $0x128] sm:$0xff]  ;;  %v134_v3 = vld [vmem:[%s9988_s6 + $0x130] sm:$0xff] }
 0x227   :  { %7124 = vmatpush3.bf16.msra.mxu0 %v8688_v6  ;;  %7145 = vmatpush3.bf16.msra.mxu1 %v8690_v9  ;;  %v132_v9 = vld [vmem:[%s9988_s6 + $0x120] sm:$0xff]  ;;  %v133_v6 = vld [vmem:[%s9988_s6 + $0x128] sm:$0xff] }
 0x228   :  { %7125 = vmatprep.subr.bf16.mxu0 %v10070_v34  ;;  %7146 = vmatprep.subr.bf16.mxu1 %v10070_v34  ;;  %10074 = vst [vmem:[#allocation10_spill] sm:$0xff] %v8736_v22  ;;  %10075 = vst [vmem:[#allocation11_spill] sm:$0xff] %v8738_v14  ;;  %v8756_v59 = vpack.c.bf16 %v133_v6, %v132_v9  ;;  %v210_v6 = vld [vmem:[%s9989_s7 + $0x138] sm:$0xff] }
 0x229   :  { %6032 = vmatprep.mubr.msk.f32.mxu0 %vm7866_vm1, %v10073_v11  ;;  %6065 = vmatprep.mubr.msk.f32.mxu1 %vm7866_vm1, %v10073_v11 }
 0x22a   :  { %10076 = vst [vmem:[#allocation12_spill] sm:$0xff] %v8756_v59 }
 0x22b   :  { %7127 = vmatpush3.bf16.msra.mxu0 %v8712_v45  ;;  %7148 = vmatpush3.bf16.msra.mxu1 %v8714_v50  ;;  %v207_v50 = vld [vmem:[%s9989_s7 + $0x120] sm:$0xff]  ;;  %v135_v45 = vld [vmem:[%s9988_s6 + $0x138] sm:$0xff] }
 0x22c   :  { %7128 = vmatprep.subr.bf16.mxu0 %v10070_v34  ;;  %7149 = vmatprep.subr.bf16.mxu1 %v10070_v34  ;;  %v8758_v5 = vpack.c.bf16 %v208_v51, %v207_v50  ;;  %v8776_v9 = vpack.c.bf16 %v135_v45, %v134_v3  ;;  %v136_v51 = vld [vmem:[%s9988_s6 + $0x140] sm:$0xff]  ;;  %v212_v45 = vld [vmem:[%s9989_s7 + $0x148] sm:$0xff] }
 0x22e   :  { %10077 = vst [vmem:[#allocation13_spill] sm:$0xff] %v8758_v5  ;;  %10078 = vst [vmem:[#allocation14_spill] sm:$0xff] %v8776_v9 }
 0x22f   :  { %7130 = vmatpush3.bf16.msra.mxu0 %v8736_v22  ;;  %7151 = vmatpush3.bf16.msra.mxu1 %v8738_v14  ;;  %v209_v14 = vld [vmem:[%s9989_s7 + $0x130] sm:$0xff]  ;;  %v137_v22 = vld [vmem:[%s9988_s6 + $0x148] sm:$0xff] }
 0x230   :  { %7131 = vmatprep.subr.bf16.mxu0 %v10070_v34  ;;  %7152 = vmatprep.subr.bf16.mxu1 %v10070_v34  ;;  %v8778_v50 = vpack.c.bf16 %v210_v6, %v209_v14  ;;  %v8796_v14 = vpack.c.bf16 %v137_v22, %v136_v51  ;;  %v138_v6 = vld [vmem:[%s9988_s6 + $0x150] sm:$0xff]  ;;  %v214_v22 = vld [vmem:[%s9989_s7 + $0x158] sm:$0xff] }
 0x232   :  { %10079 = vst [vmem:[#allocation15_spill] sm:$0xff] %v8778_v50  ;;  %10080 = vst [vmem:[#allocation16_spill] sm:$0xff] %v8796_v14 }
 0x233   :  { %7133 = vmatpush3.bf16.msra.mxu0 %v8756_v59  ;;  %7154 = vmatpush3.bf16.msra.mxu1 %v8758_v5  ;;  %v211_v5 = vld [vmem:[%s9989_s7 + $0x140] sm:$0xff]  ;;  %v139_v59 = vld [vmem:[%s9988_s6 + $0x158] sm:$0xff] }
 0x234   :  { %7134 = vmatprep.subr.bf16.mxu0 %v10070_v34  ;;  %7155 = vmatprep.subr.bf16.mxu1 %v10070_v34  ;;  %v8798_v3 = vpack.c.bf16 %v212_v45, %v211_v5  ;;  %v8816_v5 = vpack.c.bf16 %v139_v59, %v138_v6  ;;  %v141_v45 = vld [vmem:[%s9988_s6 + $0x168] sm:$0xff]  ;;  %v140_v6 = vld [vmem:[%s9988_s6 + $0x160] sm:$0xff] }
 0x235   :  { %v216_v59 = vld [vmem:[%s9989_s7 + $0x168] sm:$0xff] }
 0x236   :  { %10081 = vst [vmem:[#allocation17_spill] sm:$0xff] %v8798_v3  ;;  %10082 = vst [vmem:[#allocation18_spill] sm:$0xff] %v8816_v5 }
 0x237   :  { %7136 = vmatpush3.bf16.msra.mxu0 %v8776_v9  ;;  %7157 = vmatpush3.bf16.msra.mxu1 %v8778_v50  ;;  %v213_v50 = vld [vmem:[%s9989_s7 + $0x150] sm:$0xff]  ;;  %v144_v9 = vld [vmem:[%s9988_s6 + $0x180] sm:$0xff] }
 0x238   :  { %7137 = vmatprep.subr.bf16.mxu0 %v10070_v34  ;;  %7158 = vmatprep.subr.bf16.mxu1 %v10070_v34  ;;  %v8818_v51 = vpack.c.bf16 %v214_v22, %v213_v50  ;;  %v217_v50 = vld [vmem:[%s9989_s7 + $0x170] sm:$0xff]  ;;  %v215_v22 = vld [vmem:[%s9989_s7 + $0x160] sm:$0xff] }
 0x23a   :  { %10083 = vst [vmem:[#allocation19_spill] sm:$0xff] %v8818_v51 }
 0x23b   :  { %7139 = vmatpush3.bf16.msra.mxu0 %v8796_v14  ;;  %7160 = vmatpush3.bf16.msra.mxu1 %v8798_v3  ;;  %v142_v3 = vld [vmem:[%s9988_s6 + $0x170] sm:$0xff]  ;;  %v143_v14 = vld [vmem:[%s9988_s6 + $0x178] sm:$0xff] }
 0x23c   :  { %7140 = vmatprep.subr.bf16.mxu0 %v10070_v34  ;;  %7161 = vmatprep.subr.bf16.mxu1 %v10070_v34 }
 0x23f   :  { %7142 = vmatpush3.bf16.msra.mxu0 %v8816_v5  ;;  %7163 = vmatpush3.bf16.msra.mxu1 %v8818_v51  ;;  %v8844_v51 = vpack.c.bf16 %v142_v3, %v141_v45  ;;  %v8846_v5 = vpack.c.bf16 %v217_v50, %v216_v59  ;;  %v219_v3 = vld [vmem:[%s9989_s7 + $0x180] sm:$0xff]  ;;  %v8868_v45 = vpack.c.bf16 %v144_v9, %v143_v14  ;;  %v145_v50 = vld [vmem:[%s9988_s6 + $0x188] sm:$0xff] }
 0x240   :  { %6030 = vmatprep.subr.mxu0 %v10073_v11  ;;  %6063 = vmatprep.subr.mxu1 %v10073_v11  ;;  %v8870_v59 = vpack.c.bf16 %v219_v3, %v218_v13  ;;  %v221_v13 = vld [vmem:[%s9989_s7 + $0x190] sm:$0xff]  ;;  %v148_v3 = vld [vmem:[%s9988_s6 + $0x1a0] sm:$0xff] }
 0x241   :  { %10084 = vst [vmem:[#allocation20_spill] sm:$0xff] %v8846_v5  ;;  %10085 = vst [vmem:[#allocation21_spill] sm:$0xff] %v8868_v45 }
 0x242   :  { %10086 = vst [vmem:[#allocation22_spill] sm:$0xff] %v8870_v59 }
 0x243   :  { %6031 = vmatpush3.msra.mxu0 %v140_v6  ;;  %6064 = vmatpush3.msra.mxu1 %v215_v22  ;;  %v220_v6 = vld [vmem:[%s9989_s7 + $0x188] sm:$0xff]  ;;  %v147_v22 = vld [vmem:[%s9988_s6 + $0x198] sm:$0xff] }
 0x244   :  { %6033 = vmatmul.mubr.msk.f32.vlgmr.msra.gmra.mrb[8].mxu0 %vm1401_vm9, %v8544_v27  ;;  %6066 = vmatmul.mubr.msk.f32.vlgmr.msra.gmra.mrb[14].mxu1 %vm1401_vm9, %v8544_v27  ;;  %v146_v27 = vld [vmem:[%s9988_s6 + $0x190] sm:$0xff]  ;;  %v8894_v14 = vpack.c.bf16 %v221_v13, %v220_v6  ;;  %v149_v13 = vld [vmem:[%s9988_s6 + $0x1a8] sm:$0xff] }
 0x245   :  { %7164 = vmatprep.subr.bf16.mxu0 %v10070_v34  ;;  %7185 = vmatprep.subr.bf16.mxu1 %v10070_v34  ;;  %v8892_v9 = vpack.c.bf16 %v146_v27, %v145_v50  ;;  %v223_v50 = vld [vmem:[%s9989_s7 + $0x1a0] sm:$0xff]  ;;  %v8912_v27 = vpack.c.bf16 %v148_v3, %v147_v22 }
 0x246   :  { %7166 = vmatpush3.bf16.msra.mxu0 %v8844_v51  ;;  %7187 = vmatpush3.bf16.msra.mxu1 %v8846_v5  ;;  %10088 = vst [vmem:[#allocation24_spill] sm:$0xff] %v8894_v14  ;;  %v233_v5 = vld [vmem:[%s9989_s7 + $0x1f0] sm:$0xff] }
 0x247   :  { %7167 = vmatprep.subr.bf16.mxu0 %v10070_v34  ;;  %7188 = vmatprep.subr.bf16.mxu1 %v10070_v34  ;;  %10087 = vst [vmem:[#allocation23_spill] sm:$0xff] %v8892_v9  ;;  %10089 = vst [vmem:[#allocation25_spill] sm:$0xff] %v8912_v27 }
 0x248   :  { %6098 = vmatprep.mubr.msk.f32.mxu0 %vm7866_vm1, %v10073_v11  ;;  %6131 = vmatprep.mubr.msk.f32.mxu1 %vm7866_vm1, %v10073_v11 }
 0x24a   :  { %7169 = vmatpush3.bf16.msra.mxu0 %v8868_v45  ;;  %7190 = vmatpush3.bf16.msra.mxu1 %v8870_v59  ;;  %v222_v59 = vld [vmem:[%s9989_s7 + $0x198] sm:$0xff]  ;;  %v150_v45 = vld [vmem:[%s9988_s6 + $0x1b0] sm:$0xff] }
 0x24b   :  { %7170 = vmatprep.subr.bf16.mxu0 %v10070_v34  ;;  %7191 = vmatprep.subr.bf16.mxu1 %v10070_v34  ;;  %v8914_v6 = vpack.c.bf16 %v223_v50, %v222_v59  ;;  %v225_v59 = vld [vmem:[%s9989_s7 + $0x1b0] sm:$0xff]  ;;  %v8932_v22 = vpack.c.bf16 %v150_v45, %v149_v13  ;;  %v151_v50 = vld [vmem:[%s9988_s6 + $0x1b8] sm:$0xff]  ;;  %v227_v45 = vld [vmem:[%s9989_s7 + $0x1c0] sm:$0xff] }
 0x24d   :  { %10090 = vst [vmem:[#allocation26_spill] sm:$0xff] %v8914_v6  ;;  %10091 = vst [vmem:[#allocation27_spill] sm:$0xff] %v8932_v22 }
 0x24e   :  { %7172 = vmatpush3.bf16.msra.mxu0 %v8892_v9  ;;  %7193 = vmatpush3.bf16.msra.mxu1 %v8894_v14  ;;  %v224_v14 = vld [vmem:[%s9989_s7 + $0x1a8] sm:$0xff]  ;;  %v152_v9 = vld [vmem:[%s9988_s6 + $0x1c0] sm:$0xff] }
 0x24f   :  { %7173 = vmatprep.subr.bf16.mxu0 %v10070_v34  ;;  %7194 = vmatprep.subr.bf16.mxu1 %v10070_v34  ;;  %v8934_v3 = vpack.c.bf16 %v225_v59, %v224_v14  ;;  %v8952_v14 = vpack.c.bf16 %v152_v9, %v151_v50  ;;  %v153_v59 = vld [vmem:[%s9988_s6 + $0x1c8] sm:$0xff]  ;;  %v229_v9 = vld [vmem:[%s9989_s7 + $0x1d0] sm:$0xff] }
 0x251   :  { %10092 = vst [vmem:[#allocation28_spill] sm:$0xff] %v8934_v3  ;;  %10093 = vst [vmem:[#allocation29_spill] sm:$0xff] %v8952_v14 }
 0x252   :  { %7175 = vmatpush3.bf16.msra.mxu0 %v8912_v27  ;;  %7196 = vmatpush3.bf16.msra.mxu1 %v8914_v6  ;;  %v226_v6 = vld [vmem:[%s9989_s7 + $0x1b8] sm:$0xff]  ;;  %v154_v27 = vld [vmem:[%s9988_s6 + $0x1d0] sm:$0xff] }
 0x253   :  { %7176 = vmatprep.subr.bf16.mxu0 %v10070_v34  ;;  %7197 = vmatprep.subr.bf16.mxu1 %v10070_v34  ;;  %v8954_v13 = vpack.c.bf16 %v227_v45, %v226_v6  ;;  %v8972_v6 = vpack.c.bf16 %v154_v27, %v153_v59  ;;  %v156_v45 = vld [vmem:[%s9988_s6 + $0x1e0] sm:$0xff]  ;;  %v155_v59 = vld [vmem:[%s9988_s6 + $0x1d8] sm:$0xff] }
 0x254   :  { %v231_v27 = vld [vmem:[%s9989_s7 + $0x1e0] sm:$0xff] }
 0x255   :  { %10094 = vst [vmem:[#allocation30_spill] sm:$0xff] %v8954_v13  ;;  %10095 = vst [vmem:[#allocation31_spill] sm:$0xff] %v8972_v6 }
 0x256   :  { %7178 = vmatpush3.bf16.msra.mxu0 %v8932_v22  ;;  %7199 = vmatpush3.bf16.msra.mxu1 %v8934_v3  ;;  %v228_v3 = vld [vmem:[%s9989_s7 + $0x1c8] sm:$0xff]  ;;  %v159_v22 = vld [vmem:[%s9988_s6 + $0x1f8] sm:$0xff] }
 0x257   :  { %7179 = vmatprep.subr.bf16.mxu0 %v10070_v34  ;;  %7200 = vmatprep.subr.bf16.mxu1 %v10070_v34  ;;  %v8974_v50 = vpack.c.bf16 %v229_v9, %v228_v3  ;;  %v232_v3 = vld [vmem:[%s9989_s7 + $0x1e8] sm:$0xff]  ;;  %v230_v9 = vld [vmem:[%s9989_s7 + $0x1d8] sm:$0xff] }
 0x259   :  { %10096 = vst [vmem:[#allocation32_spill] sm:$0xff] %v8974_v50 }
 0x25a   :  { %7181 = vmatpush3.bf16.msra.mxu0 %v8952_v14  ;;  %7202 = vmatpush3.bf16.msra.mxu1 %v8954_v13  ;;  %v157_v13 = vld [vmem:[%s9988_s6 + $0x1e8] sm:$0xff]  ;;  %v158_v14 = vld [vmem:[%s9988_s6 + $0x1f0] sm:$0xff] }
 0x25b   :  { %7182 = vmatprep.subr.bf16.mxu0 %v10070_v34  ;;  %7203 = vmatprep.subr.bf16.mxu1 %v10070_v34 }
 0x25e   :  { %7184 = vmatpush3.bf16.msra.mxu0 %v8972_v6  ;;  %7205 = vmatpush3.bf16.msra.mxu1 %v8974_v50  ;;  %v9000_v50 = vpack.c.bf16 %v157_v13, %v156_v45  ;;  %v9002_v6 = vpack.c.bf16 %v232_v3, %v231_v27  ;;  %v234_v13 = vld [vmem:[%s9989_s7 + $0x1f8] sm:$0xff]  ;;  %v9024_v45 = vpack.c.bf16 %v159_v22, %v158_v14  ;;  %v160_v3 = vld [vmem:[%s9988_s6 + $0x200] sm:$0xff] }
 0x25f   :  { %6096 = vmatprep.subr.mxu0 %v10073_v11  ;;  %6129 = vmatprep.subr.mxu1 %v10073_v11  ;;  %v9026_v27 = vpack.c.bf16 %v234_v13, %v233_v5  ;;  %v236_v5 = vld [vmem:[%s9989_s7 + $0x208] sm:$0xff]  ;;  %v163_v13 = vld [vmem:[%s9988_s6 + $0x218] sm:$0xff] }
 0x260   :  { %10097 = vst [vmem:[#allocation33_spill] sm:$0xff] %v9024_v45 }
 0x261   :  { %10098 = vst [vmem:[#allocation34_spill] sm:$0xff] %v9026_v27 }
 0x262   :  { %6097 = vmatpush3.msra.mxu0 %v155_v59  ;;  %6130 = vmatpush3.msra.mxu1 %v230_v9  ;;  %v235_v59 = vld [vmem:[%s9989_s7 + $0x200] sm:$0xff]  ;;  %v162_v9 = vld [vmem:[%s9988_s6 + $0x210] sm:$0xff] }
 0x263   :  { %6099 = vmatmul.mubr.msk.f32.vlgmr.msra.gmra.mrb[8].mxu0 %vm1401_vm9, %v8547_v37  ;;  %6132 = vmatmul.mubr.msk.f32.vlgmr.msra.gmra.mrb[14].mxu1 %vm1401_vm9, %v8547_v37  ;;  %v161_v37 = vld [vmem:[%s9988_s6 + $0x208] sm:$0xff]  ;;  %v9050_v14 = vpack.c.bf16 %v236_v5, %v235_v59  ;;  %v164_v5 = vld [vmem:[%s9988_s6 + $0x220] sm:$0xff] }
 0x264   :  { %7206 = vmatprep.subr.bf16.mxu0 %v10070_v34  ;;  %7227 = vmatprep.subr.bf16.mxu1 %v10070_v34  ;;  %v9048_v22 = vpack.c.bf16 %v161_v37, %v160_v3  ;;  %v238_v3 = vld [vmem:[%s9989_s7 + $0x218] sm:$0xff]  ;;  %v9068_v37 = vpack.c.bf16 %v163_v13, %v162_v9 }
 0x265   :  { %7208 = vmatpush3.bf16.msra.mxu0 %v9000_v50  ;;  %7229 = vmatpush3.bf16.msra.mxu1 %v9002_v6  ;;  %10100 = vst [vmem:[#allocation36_spill] sm:$0xff] %v9050_v14 }
 0x266   :  { %7209 = vmatprep.subr.bf16.mxu0 %v10070_v34  ;;  %7230 = vmatprep.subr.bf16.mxu1 %v10070_v34  ;;  %10099 = vst [vmem:[#allocation35_spill] sm:$0xff] %v9048_v22  ;;  %10101 = vst [vmem:[#allocation37_spill] sm:$0xff] %v9068_v37 }
 0x267   :  { %6164 = vmatprep.mubr.msk.f32.mxu0 %vm7866_vm1, %v10073_v11  ;;  %6197 = vmatprep.mubr.msk.f32.mxu1 %vm7866_vm1, %v10073_v11 }
 0x269   :  { %7211 = vmatpush3.bf16.msra.mxu0 %v9024_v45  ;;  %7232 = vmatpush3.bf16.msra.mxu1 %v9026_v27  ;;  %v237_v27 = vld [vmem:[%s9989_s7 + $0x210] sm:$0xff]  ;;  %v165_v45 = vld [vmem:[%s9988_s6 + $0x228] sm:$0xff] }
 0x26a   :  { %7212 = vmatprep.subr.bf16.mxu0 %v10070_v34  ;;  %7233 = vmatprep.subr.bf16.mxu1 %v10070_v34  ;;  %v9070_v59 = vpack.c.bf16 %v238_v3, %v237_v27  ;;  %v240_v27 = vld [vmem:[%s9989_s7 + $0x228] sm:$0xff]  ;;  %v9088_v9 = vpack.c.bf16 %v165_v45, %v164_v5  ;;  %v166_v3 = vld [vmem:[%s9988_s6 + $0x230] sm:$0xff]  ;;  %v242_v45 = vld [vmem:[%s9989_s7 + $0x238] sm:$0xff] }
 0x26c   :  { %10102 = vst [vmem:[#allocation38_spill] sm:$0xff] %v9070_v59 }
 0x26d   :  { %7214 = vmatpush3.bf16.msra.mxu0 %v9048_v22  ;;  %7235 = vmatpush3.bf16.msra.mxu1 %v9050_v14  ;;  %v239_v14 = vld [vmem:[%s9989_s7 + $0x220] sm:$0xff]  ;;  %v167_v22 = vld [vmem:[%s9988_s6 + $0x238] sm:$0xff] }
 0x26e   :  { %7215 = vmatprep.subr.bf16.mxu0 %v10070_v34  ;;  %7236 = vmatprep.subr.bf16.mxu1 %v10070_v34  ;;  %v9090_v13 = vpack.c.bf16 %v240_v27, %v239_v14  ;;  %v9108_v14 = vpack.c.bf16 %v167_v22, %v166_v3  ;;  %v168_v27 = vld [vmem:[%s9988_s6 + $0x240] sm:$0xff]  ;;  %v244_v22 = vld [vmem:[%s9989_s7 + $0x248] sm:$0xff] }
 0x270   :  { %10103 = vst [vmem:[#allocation39_spill] sm:$0xff] %v9090_v13  ;;  %10104 = vst [vmem:[#allocation40_spill] sm:$0xff] %v9108_v14 }
 0x271   :  { %7217 = vmatpush3.bf16.msra.mxu0 %v9068_v37  ;;  %7238 = vmatpush3.bf16.msra.mxu1 %v9070_v59  ;;  %v241_v59 = vld [vmem:[%s9989_s7 + $0x230] sm:$0xff]  ;;  %v169_v37 = vld [vmem:[%s9988_s6 + $0x248] sm:$0xff] }
 0x272   :  { %7218 = vmatprep.subr.bf16.mxu0 %v10070_v34  ;;  %7239 = vmatprep.subr.bf16.mxu1 %v10070_v34  ;;  %v9110_v5 = vpack.c.bf16 %v242_v45, %v241_v59  ;;  %v9128_v59 = vpack.c.bf16 %v169_v37, %v168_v27  ;;  %v170_v45 = vld [vmem:[%s9988_s6 + $0x250] sm:$0xff]  ;;  %v250_v27 = vld [vmem:[%s9993_s11 + $0x8] sm:$0xff] }
 0x273   :  { %v245_v37 = vld [vmem:[%s9989_s7 + $0x250] sm:$0xff] }
 0x274   :  { %10105 = vst [vmem:[#allocation41_spill] sm:$0xff] %v9110_v5  ;;  %10106 = vst [vmem:[#allocation42_spill] sm:$0xff] %v9128_v59 }
 0x275   :  { %7220 = vmatpush3.bf16.msra.mxu0 %v9088_v9  ;;  %7241 = vmatpush3.bf16.msra.mxu1 %v9090_v13  ;;  %v243_v13 = vld [vmem:[%s9989_s7 + $0x240] sm:$0xff] }
 0x276   :  { %7221 = vmatprep.subr.bf16.mxu0 %v10070_v34  ;;  %7242 = vmatprep.subr.bf16.mxu1 %v10070_v34  ;;  %v9130_v3 = vpack.c.bf16 %v244_v22, %v243_v13  ;;  %v249_v13 = vld [vmem:[%s9993_s11] sm:$0xff] }
 0x277   :  { %v9163_v22 = vpack.c.bf16 %v250_v27, %v249_v13 }
 0x278   :  { %10107 = vst [vmem:[#allocation43_spill] sm:$0xff] %v9130_v3 }
 0x279   :  { %7223 = vmatpush3.bf16.msra.mxu0 %v9108_v14  ;;  %7244 = vmatpush3.bf16.msra.mxu1 %v9110_v5  ;;  %10108 = vst [vmem:[#allocation44_spill] sm:$0xff] %v9163_v22  ;;  %v246_v14 = vld [vmem:[%s9990_s8] sm:$0xf] }
 0x27a   :  { %7224 = vmatprep.subr.bf16.mxu0 %v10070_v34  ;;  %7245 = vmatprep.subr.bf16.mxu1 %v10070_v34 }
 0x27d   :  { %7226 = vmatpush3.bf16.msra.mxu0 %v9128_v59  ;;  %7247 = vmatpush3.bf16.msra.mxu1 %v9130_v3  ;;  %v253_v3 = vld [vmem:[%s9993_s11 + $0x20] sm:$0xff]  ;;  %v254_v59 = vld [vmem:[%s9993_s11 + $0x28] sm:$0xff] }
 0x27e   :  { %6162 = vmatprep.subr.mxu0 %v10073_v11  ;;  %6195 = vmatprep.subr.mxu1 %v10073_v11  ;;  %v9179_v13 = vpack.c.bf16 %v254_v59, %v253_v3  ;;  %v247_v59 = vld [vmem:[%s9991_s9] sm:$0xf] }
 0x280   :  { %10110 = vst [vmem:[#allocation46_spill] sm:$0xff] %v9179_v13 }
 0x281   :  { %6163 = vmatpush3.msra.mxu0 %v170_v45  ;;  %6196 = vmatpush3.msra.mxu1 %v245_v37  ;;  %v252_v45 = vld [vmem:[%s9993_s11 + $0x18] sm:$0xff] }
 0x282   :  { %6165 = vmatmul.mubr.msk.f32.vlgmr.msra.gmra.mrb[8].mxu0 %vm1401_vm9, %v8550_v42  ;;  %6198 = vmatmul.mubr.msk.f32.vlgmr.msra.gmra.mrb[14].mxu1 %vm1401_vm9, %v8550_v42  ;;  %v251_v42 = vld [vmem:[%s9993_s11 + $0x10] sm:$0xff] }
 0x283   :  { %6200 = vmatprep.subr.mxu1 %v10073_v11  ;;  %6202 = vmatprep.mubr.msk.f32.mxu1 %vm7866_vm1, %v10073_v11  ;;  %v9169_v37 = vpack.c.bf16 %v252_v45, %v251_v42 }
 0x284   :  { %7248 = vmatprep.subr.bf16.mxu0 %v10070_v34  ;;  %6230 = vmatprep.mubr.msk.f32.mxu0 %vm7866_vm1, %v10073_v11 }
 0x285   :  { %7250 = vmatpush3.bf16.msra.mxu0 %v9163_v22  ;;  %10109 = vst [vmem:[#allocation45_spill] sm:$0xff] %v9169_v37 }
 0x286   :  { %7251 = vmatprep.subr.bf16.mxu0 %v10070_v34 }
 0x289   :  { %7253 = vmatpush3.bf16.msra.mxu0 %v9169_v37 }
 0x28a   :  { %7254 = vmatprep.subr.bf16.mxu0 %v10070_v34 }
 0x28d   :  { %7256 = vmatpush3.bf16.msra.mxu0 %v9179_v13 }
 0x28e   :  { %7257 = vmatprep.subr.bf16.mxu0 %v10070_v34 }
 0x355   :  { %v2051_v27 = vpop.f32.mrb[8].mxu0  ;;  %v2122_v42 = vpop.f32.mrb[14].mxu1 }
 0x356   :  { %v2127_v45 = vmax.f32 %v2051_v27, %v2122_v42  ;;  %v6166_v22 = vpop.f32.mrb[9].mxu0  ;;  %v6199_v5 = vpop.f32.mrb[15].mxu1  ;;  %v258_v27 = vld [vmem:[%s9993_s11 + $0x48] sm:$0xff] }
 0x357   :  { %v256_v5 = vld [vmem:[%s9993_s11 + $0x38] sm:$0xff]  ;;  %v257_v22 = vld [vmem:[%s9993_s11 + $0x40] sm:$0xff] }
 0x358   :  { %6201 = vmatpush3.msra.mxu1 %v2127_v45  ;;  %v9214_v42 = vpack.c.bf16 %v258_v27, %v257_v22  ;;  %v293_v22 = vld [vmem:[%s9995_s13 + $0x18] sm:$0xff] }
 0x359   :  { %6203 = vmatmul.mubr.msk.f32.vlgmr.msra.gmra.mrb[16].mxu1 %vm2128_vm10, %v246_v14  ;;  %6205 = vmatprep.subr.mxu1 %v10073_v11  ;;  %v255_v14 = vld [vmem:[%s9993_s11 + $0x30] sm:$0xff] }
 0x35a   :  { %6206 = vmatpush3.msra.mxu1 %v2127_v45  ;;  %6207 = vmatprep.mubr.msk.f32.mxu1 %vm7866_vm1, %v10073_v11  ;;  %v9204_v3 = vpack.c.bf16 %v256_v5, %v255_v14  ;;  %10112 = vst [vmem:[#allocation48_spill] sm:$0xff] %v9214_v42  ;;  %v290_v45 = vld [vmem:[%s9995_s13] sm:$0xff]  ;;  %v292_v14 = vld [vmem:[%s9995_s13 + $0x10] sm:$0xff] }
 0x35b   :  { %7308 = vmatprep.subr.bf16.mxu1 %v10070_v34  ;;  %v9233_v27 = vpack.c.bf16 %v293_v22, %v292_v14  ;;  %v9251_v22 = vld [vmem:[%s9992_s10] ss:$0 sm:$0xff] }
 0x35c   :  { %10111 = vst [vmem:[#allocation47_spill] sm:$0xff] %v9204_v3  ;;  %7259 = vmatpush3.bf16.msra.mxu0 %v9204_v3  ;;  %v295_v3 = vld [vmem:[%s9995_s13 + $0x28] sm:$0xff] }
 0x35d   :  { %6208 = vmatmul.mubr.msk.f32.vlgmr.msra.gmra.mrb[18].mxu1 %vm2128_vm10, %v247_v59  ;;  %7260 = vmatprep.subr.bf16.mxu0 %v10070_v34  ;;  %v291_v59 = vld [vmem:[%s9995_s13 + $0x8] sm:$0xff]  ;;  %10114 = vst [vmem:[#allocation50_spill] sm:$0xff] %v9233_v27 }
 0x35e   :  { %6318 = vmatprep.mubr.msk.f32.mxu1 %vm7866_vm1, %v10073_v11  ;;  %v9227_v5 = vpack.c.bf16 %v291_v59, %v290_v45 }
 0x360   :  { %7262 = vmatpush3.bf16.msra.mxu0 %v9214_v42  ;;  %10113 = vst [vmem:[#allocation49_spill] sm:$0xff] %v9227_v5  ;;  %7310 = vmatpush3.bf16.msra.mxu1 %v9227_v5  ;;  %v294_v42 = vld [vmem:[%s9995_s13 + $0x20] sm:$0xff] }
 0x361   :  { %7263 = vmatprep.subr.bf16.mxu0 %v10070_v34  ;;  %7311 = vmatprep.subr.bf16.mxu1 %v10070_v34  ;;  %v9243_v45 = vpack.c.bf16 %v295_v3, %v294_v42  ;;  %v259_v3 = vld [vmem:[%s9993_s11 + $0x50] sm:$0xff]  ;;  %v260_v42 = vld [vmem:[%s9993_s11 + $0x58] sm:$0xff] }
 0x363   :  { %10115 = vst [vmem:[#allocation51_spill] sm:$0xff] %v9243_v45 }
 0x364   :  { %7313 = vmatpush3.bf16.msra.mxu1 %v9233_v27 }
 0x365   :  { %7314 = vmatprep.subr.bf16.mxu1 %v10070_v34 }
 0x368   :  { %7316 = vmatpush3.bf16.msra.mxu1 %v9243_v45 }
 0x369   :  { %7317 = vmatprep.subr.bf16.mxu1 %v10070_v34 }
 0x42c   :  { %v2198_v59 = vpop.f32.mrb[16].mxu1 }
 0x42d   :  { %v6204_v14 = vpop.f32.mrb[17].mxu1 }
 0x42e   :  { %v9260_v14 = vpack.c.bf16 %v260_v42, %v259_v3  ;;  %v265_v42 = vld [vmem:[%s9993_s11 + $0x80] sm:$0xff] }
 0x430   :  { %v2271_v13 = vpop.f32.mrb[18].mxu1  ;;  %10116 = vst [vmem:[#allocation52_spill] sm:$0xff] %v9260_v14 }
 0x431   :  { %v2275_v37 = vmax.f32 %v2198_v59, %v2271_v13  ;;  %v6209_v5 = vpop.f32.mrb[19].mxu1  ;;  %v261_v13 = vld [vmem:[%s9993_s11 + $0x60] sm:$0xff] }
 0x432   :  { %v262_v5 = vld [vmem:[%s9993_s11 + $0x68] sm:$0xff] }
 0x433   :  { %v2282_v45 = vadd.f32 %v9251_v22, %v2275_v37  ;;  %v9273_v59 = vpack.c.bf16 %v262_v5, %v261_v13  ;;  %v263_v37 = vld [vmem:[%s9993_s11 + $0x70] sm:$0xff]  ;;  %v266_v13 = vld [vmem:[%s9993_s11 + $0x88] sm:$0xff] }
 0x434   :  { %v9295_v5 = vpack.c.bf16 %v266_v13, %v265_v42  ;;  %v269_v42 = vld [vmem:[%s9993_s11 + $0xa0] sm:$0xff]  ;;  %v270_v13 = vld [vmem:[%s9993_s11 + $0xa8] sm:$0xff] }
 0x435   :  { %v9262_v27 = vmax.f32 %v2282_v45, 0.0  ;;  %10117 = vst [vmem:[#allocation53_spill] sm:$0xff] %v9273_v59  ;;  %v264_v45 = vld [vmem:[%s9993_s11 + $0x78] sm:$0xff] }
 0x436   :  { %v9285_v3 = vpack.c.bf16 %v264_v45, %v263_v37  ;;  %10119 = vst [vmem:[#allocation55_spill] sm:$0xff] %v9295_v5  ;;  %v267_v37 = vld [vmem:[%s9993_s11 + $0x90] sm:$0xff]  ;;  %v268_v45 = vld [vmem:[%s9993_s11 + $0x98] sm:$0xff] }
 0x437   :  { %6231 = vmatmul.mubr.msk.f32.vlgmr.msra.gmra.mrb[10].mxu0 %vm2284_vm11, %v9262_v27 }
 0x438   :  { %7265 = vmatpush3.bf16.msra.mxu0 %v9260_v14  ;;  %6253 = vmatprep.mubr.msk.f32.mxu0 %vm7866_vm1, %v10073_v11  ;;  %10118 = vst [vmem:[#allocation54_spill] sm:$0xff] %v9285_v3  ;;  %v2359_v14 = vrot.slane %v9262_v27, 1 }
 0x439   :  { %7266 = vmatprep.subr.bf16.mxu0 %v10070_v34 }
 0x43c   :  { %7268 = vmatpush3.bf16.msra.mxu0 %v9273_v59  ;;  %v9305_v59 = vpack.c.bf16 %v268_v45, %v267_v37  ;;  %v271_v37 = vld [vmem:[%s9993_s11 + $0xb0] sm:$0xff]  ;;  %v272_v45 = vld [vmem:[%s9993_s11 + $0xb8] sm:$0xff] }
 0x43d   :  { %7269 = vmatprep.subr.bf16.mxu0 %v10070_v34 }
 0x43e   :  { %10120 = vst [vmem:[#allocation56_spill] sm:$0xff] %v9305_v59 }
 0x440   :  { %7271 = vmatpush3.bf16.msra.mxu0 %v9285_v3  ;;  %v9315_v3 = vpack.c.bf16 %v270_v13, %v269_v42  ;;  %v273_v42 = vld [vmem:[%s9993_s11 + $0xc0] sm:$0xff]  ;;  %v274_v13 = vld [vmem:[%s9993_s11 + $0xc8] sm:$0xff] }
 0x441   :  { %7272 = vmatprep.subr.bf16.mxu0 %v10070_v34 }
 0x442   :  { %10121 = vst [vmem:[#allocation57_spill] sm:$0xff] %v9315_v3 }
 0x444   :  { %7274 = vmatpush3.bf16.msra.mxu0 %v9295_v5  ;;  %v9327_v5 = vpack.c.bf16 %v272_v45, %v271_v37  ;;  %v275_v37 = vld [vmem:[%s9993_s11 + $0xd0] sm:$0xff]  ;;  %v276_v45 = vld [vmem:[%s9993_s11 + $0xd8] sm:$0xff] }
 0x445   :  { %7275 = vmatprep.subr.bf16.mxu0 %v10070_v34 }
 0x446   :  { %10122 = vst [vmem:[#allocation58_spill] sm:$0xff] %v9327_v5 }
 0x448   :  { %7277 = vmatpush3.bf16.msra.mxu0 %v9305_v59  ;;  %v2433_v59 = vrot.slane %v9262_v27, 2 }
 0x449   :  { %7278 = vmatprep.subr.bf16.mxu0 %v10070_v34 }
 0x44b   :  { %6254 = vmatmul.mubr.msk.f32.vlgmr.msra.gmra.mrb[10].mxu0 %vm2284_vm11, %v2359_v14  ;;  %v9339_v14 = vpack.c.bf16 %v274_v13, %v273_v42  ;;  %v277_v42 = vld [vmem:[%s9993_s11 + $0xe0] sm:$0xff]  ;;  %v278_v13 = vld [vmem:[%s9993_s11 + $0xe8] sm:$0xff] }
 0x44c   :  { %7280 = vmatpush3.bf16.msra.mxu0 %v9315_v3  ;;  %6276 = vmatprep.mubr.msk.f32.mxu0 %vm7866_vm1, %v10073_v11  ;;  %v9349_v3 = vpack.c.bf16 %v276_v45, %v275_v37  ;;  %v279_v37 = vld [vmem:[%s9993_s11 + $0xf0] sm:$0xff]  ;;  %v280_v45 = vld [vmem:[%s9993_s11 + $0xf8] sm:$0xff] }
 0x44d   :  { %7281 = vmatprep.subr.bf16.mxu0 %v10070_v34  ;;  %10123 = vst [vmem:[#allocation59_spill] sm:$0xff] %v9339_v14 }
 0x44e   :  { %10124 = vst [vmem:[#allocation60_spill] sm:$0xff] %v9349_v3 }
 0x450   :  { %7283 = vmatpush3.bf16.msra.mxu0 %v9327_v5  ;;  %v9359_v5 = vpack.c.bf16 %v278_v13, %v277_v42  ;;  %v281_v42 = vld [vmem:[%s9993_s11 + $0x100] sm:$0xff]  ;;  %v282_v13 = vld [vmem:[%s9993_s11 + $0x108] sm:$0xff] }
 0x451   :  { %7284 = vmatprep.subr.bf16.mxu0 %v10070_v34 }
 0x452   :  { %10125 = vst [vmem:[#allocation61_spill] sm:$0xff] %v9359_v5 }
 0x454   :  { %7286 = vmatpush3.bf16.msra.mxu0 %v9339_v14  ;;  %v9369_v14 = vpack.c.bf16 %v280_v45, %v279_v37  ;;  %v283_v37 = vld [vmem:[%s9993_s11 + $0x110] sm:$0xff]  ;;  %v284_v45 = vld [vmem:[%s9993_s11 + $0x118] sm:$0xff] }
 0x455   :  { %7287 = vmatprep.subr.bf16.mxu0 %v10070_v34 }
 0x456   :  { %10126 = vst [vmem:[#allocation62_spill] sm:$0xff] %v9369_v14 }
 0x458   :  { %7289 = vmatpush3.bf16.msra.mxu0 %v9349_v3  ;;  %v9381_v3 = vpack.c.bf16 %v282_v13, %v281_v42  ;;  %v285_v42 = vld [vmem:[%s9993_s11 + $0x120] sm:$0xff]  ;;  %v286_v13 = vld [vmem:[%s9993_s11 + $0x128] sm:$0xff] }
 0x459   :  { %7290 = vmatprep.subr.bf16.mxu0 %v10070_v34 }
 0x45a   :  { %10127 = vst [vmem:[#allocation63_spill] sm:$0xff] %v9381_v3 }
 0x45c   :  { %7292 = vmatpush3.bf16.msra.mxu0 %v9359_v5 }
 0x45d   :  { %7293 = vmatprep.subr.bf16.mxu0 %v10070_v34 }
 0x45f   :  { %6277 = vmatmul.mubr.msk.f32.vlgmr.msra.gmra.mrb[10].mxu0 %vm2284_vm11, %v2433_v59  ;;  %v9393_v59 = vpack.c.bf16 %v284_v45, %v283_v37  ;;  %v287_v37 = vld [vmem:[%s9993_s11 + $0x130] sm:$0xff]  ;;  %v288_v45 = vld [vmem:[%s9993_s11 + $0x138] sm:$0xff] }
 0x460   :  { %7295 = vmatpush3.bf16.msra.mxu0 %v9369_v14  ;;  %6299 = vmatprep.mubr.msk.f32.mxu0 %vm7866_vm1, %v10073_v11  ;;  %v9403_v14 = vpack.c.bf16 %v286_v13, %v285_v42  ;;  %v2507_v42 = vrot.slane %v9262_v27, 3  ;;  %v7824_v13 = vld [vmem:[%s9985_s3] sm:$0xff] }
 0x461   :  { %7296 = vmatprep.subr.bf16.mxu0 %v10070_v34  ;;  %10128 = vst [vmem:[#allocation64_spill] sm:$0xff] %v9393_v59  ;;  %v9436_v27 = vld [vmem:[%s9994_s12] sm:$0x1] }
 0x462   :  { %10129 = vst [vmem:[#allocation65_spill] sm:$0xff] %v9403_v14  ;;  %10131 = vst [vmem:[#allocation67_spill] sm:$0xff] %v9436_v27 }
 0x464   :  { %7298 = vmatpush3.bf16.msra.mxu0 %v9381_v3  ;;  %v9413_v3 = vpack.c.bf16 %v288_v45, %v287_v37  ;;  %v297_v37 = vld [vmem:[%s9995_s13 + $0x38] sm:$0xff] }
 0x465   :  { %7299 = vmatprep.subr.bf16.mxu0 %v10070_v34 }
 0x466   :  { %10130 = vst [vmem:[#allocation66_spill] sm:$0xff] %v9413_v3 }
 0x468   :  { %7301 = vmatpush3.bf16.msra.mxu0 %v9393_v59 }
 0x469   :  { %7302 = vmatprep.subr.bf16.mxu0 %v10070_v34 }
 0x46c   :  { %7304 = vmatpush3.bf16.msra.mxu0 %v9403_v14  ;;  %v296_v14 = vld [vmem:[%s9995_s13 + $0x30] sm:$0xff] }
 0x46d   :  { %7305 = vmatprep.subr.bf16.mxu0 %v10070_v34  ;;  %v9429_v45 = vpack.c.bf16 %v297_v37, %v296_v14  ;;  %v9442_v14 = vld [vmem:[%s9982_s0 + $0x20] sm:$0xff]  ;;  %v9447_v37 = vld [vmem:[%s9982_s0 + $0x28] sm:$0xff] }
 0x46f   :  { %7319 = vmatpush3.bf16.msra.mxu1 %v9429_v45 }
 0x470   :  { %7307 = vmatpush3.bf16.msra.mxu0 %v9413_v3  ;;  %7320 = vmatprep.subr.bf16.mxu1 %v10070_v34 }
 0x473   :  { %6300 = vmatmul.mubr.msk.f32.vlgmr.msra.gmra.mrb[10].mxu0 %vm2284_vm11, %v2507_v42 }
 0x474   :  { %6497 = vmatprep.mubr.msk.f32.mxu0 %vm1221_vm8, %v7824_v13 }
 0x546   :  { %v2576_v42 = vpop.f32.mrb[10].mxu0 }
 0x547   :  { %v7683_v13 = vadd.f32 %v2576_v42, %v9436_v27  ;;  %v6301_v3 = vpop.f32.mrb[11].mxu0  ;;  %v2667_v42 = vrot.slane %v9447_v37, 1  ;;  %v9470_v27 = vld [vmem:[%s9982_s0 + $0x38] sm:$0xf] }
 0x548   :  { %v2666_v3 = vrot.slane %v9442_v14, 1 }
 0x549   :  { %v2581_v59 = vmax.f32 %v7683_v13, 0.0  ;;  %v9459_v13 = vld [vmem:[%s9982_s0 + $0x30] sm:$0xff] }
 0x54b   :  { %6319 = vmatmul.mubr.msk.f32.vlgmr.msra.gmra.mrb[20].mxu1 %vm2582_vm12, %v2581_v59  ;;  %v2669_v59 = vrot.slane %v9459_v13, 1 }
 0x54c   :  { %7322 = vmatpush3.bf16.msra.mxu1 %v7961_v4  ;;  %6329 = vmatprep.mubr.msk.f32.mxu1 %vm7866_vm1, %v10073_v11  ;;  %v2668_v4 = vsel %vm307_vm4, %v2666_v3, %v2667_v42 }
 0x54d   :  { %7323 = vmatprep.subr.bf16.mxu1 %v10070_v34  ;;  %v2670_v5 = vsel %vm307_vm4, %v2667_v42, %v2669_v59 }
 0x550   :  { %7326 = vmatpush3.bf16.msk.msra.mxu1 %vm8000_vm3, %v7985_v12  ;;  %v2671_v12 = vrot.slane %v9470_v27, 1 }
 0x551   :  { %7327 = vmatprep.subr.bf16.mxu1 %v10070_v34 }
 0x552   :  { %v2672_v3 = vsel %vm307_vm4, %v2669_v59, %v2671_v12 }
 0x553   :  { %6330 = vmatmul.mubr.msk.f32.vlgmr.msra.gmra.mrb[22].mxu1 %vm315_vm5, %v2668_v4 }
 0x554   :  { %6332 = vmatprep.mubr.msk.f32.mxu1 %vm7866_vm1, %v10073_v11  ;;  %7329 = vmatpush3.bf16.msra.mxu1 %v7972_v8  ;;  %v3005_v8 = vrot.slane %v9442_v14, 2 }
 0x555   :  { %7330 = vmatprep.subr.bf16.mxu1 %v10070_v34 }
 0x557   :  { %6333 = vmatmul.mubr.msk.f32.gmra.mrb[24].mxu1 %vm315_vm5, %v2670_v5 }
 0x558   :  { %6335 = vmatprep.mubr.msk.f32.mxu1 %vm7866_vm1, %v10073_v11  ;;  %7333 = vmatpush3.bf16.msk.msra.mxu1 %vm8000_vm3, %v8004_v16  ;;  %v3006_v16 = vrot.slane %v9447_v37, 2 }
 0x559   :  { %7334 = vmatprep.subr.bf16.mxu1 %v10070_v34 }
 0x55b   :  { %6336 = vmatmul.mubr.msk.f32.gmra.mrb[26].mxu1 %vm315_vm5, %v2672_v3 }
 0x55c   :  { %6346 = vmatprep.mubr.msk.f32.mxu1 %vm7866_vm1, %v10073_v11 }
 0x55f   :  { %6347 = vmatmul.mubr.msk.f32.vlgmr.msra.gmra.mrb[22].mxu1 %vm315_vm5, %v9442_v14 }
 0x560   :  { %6349 = vmatprep.mubr.msk.f32.mxu1 %vm7866_vm1, %v10073_v11  ;;  %7336 = vmatpush3.bf16.msra.mxu1 %v8035_v26  ;;  %v3007_v26 = vsel %vm661_vm6, %v3005_v8, %v3006_v16 }
 0x561   :  { %7337 = vmatprep.subr.bf16.mxu1 %v10070_v34 }
 0x563   :  { %6350 = vmatmul.mubr.msk.f32.gmra.mrb[24].mxu1 %vm315_vm5, %v9447_v37 }
 0x564   :  { %6352 = vmatprep.mubr.msk.f32.mxu1 %vm7866_vm1, %v10073_v11  ;;  %7340 = vmatpush3.bf16.msk.msra.mxu1 %vm8000_vm3, %v8067_v35 }
 0x565   :  { %7341 = vmatprep.subr.bf16.mxu1 %v10070_v34 }
 0x567   :  { %6353 = vmatmul.mubr.msk.f32.gmra.mrb[26].mxu1 %vm315_vm5, %v9459_v13 }
 0x568   :  { %6363 = vmatprep.mubr.msk.f32.mxu1 %vm7866_vm1, %v10073_v11 }
 0x56b   :  { %6364 = vmatmul.mubr.msk.f32.vlgmr.msra.gmra.mrb[28].mxu1 %vm315_vm5, %v2668_v4  ;;  %v3366_v4 = vrot.slane %v9459_v13, 4 }
 0x56c   :  { %6366 = vmatprep.mubr.msk.f32.mxu1 %vm7866_vm1, %v10073_v11  ;;  %7343 = vmatpush3.bf16.msra.mxu1 %v8115_v46 }
 0x56d   :  { %7344 = vmatprep.subr.bf16.mxu1 %v10070_v34 }
 0x56f   :  { %6367 = vmatmul.mubr.msk.f32.gmra.mrb[30].mxu1 %vm315_vm5, %v2670_v5  ;;  %v3189_v5 = vrot.slane %v9470_v27, 3 }
 0x570   :  { %6369 = vmatprep.mubr.msk.f32.mxu1 %vm7866_vm1, %v10073_v11  ;;  %7347 = vmatpush3.bf16.msk.msra.mxu1 %vm8000_vm3, %v8143_v54  ;;  %v3184_v54 = vrot.slane %v9442_v14, 3 }
 0x571   :  { %7348 = vmatprep.subr.bf16.mxu1 %v10070_v34 }
 0x573   :  { %6370 = vmatmul.mubr.msk.f32.gmra.mrb[32].mxu1 %vm315_vm5, %v2672_v3 }
 0x574   :  { %6380 = vmatprep.mubr.msk.f32.mxu1 %vm7866_vm1, %v10073_v11 }
 0x577   :  { %6381 = vmatmul.mubr.msk.f32.vlgmr.msra.gmra.mrb[28].mxu1 %vm315_vm5, %v9442_v14 }
 0x578   :  { %6383 = vmatprep.mubr.msk.f32.mxu1 %vm7866_vm1, %v10073_v11  ;;  %7350 = vmatpush3.bf16.msra.mxu1 %v8043_v28  ;;  %v3008_v28 = vrot.slane %v9459_v13, 2 }
 0x579   :  { %7351 = vmatprep.subr.bf16.mxu1 %v10070_v34 }
 0x57a   :  { %v3009_v35 = vsel %vm661_vm6, %v3006_v16, %v3008_v28 }
 0x57b   :  { %6384 = vmatmul.mubr.msk.f32.gmra.mrb[30].mxu1 %vm315_vm5, %v9447_v37 }
 0x57c   :  { %6386 = vmatprep.mubr.msk.f32.mxu1 %vm7866_vm1, %v10073_v11  ;;  %7354 = vmatpush3.bf16.msk.msra.mxu1 %vm8000_vm3, %v8071_v36  ;;  %v3010_v36 = vrot.slane %v9470_v27, 2 }
 0x57d   :  { %7355 = vmatprep.subr.bf16.mxu1 %v10070_v34 }
 0x57e   :  { %v3011_v46 = vsel %vm661_vm6, %v3008_v28, %v3010_v36 }
 0x57f   :  { %6387 = vmatmul.mubr.msk.f32.gmra.mrb[32].mxu1 %vm315_vm5, %v9459_v13 }
 0x580   :  { %6397 = vmatprep.mubr.msk.f32.mxu1 %vm7866_vm1, %v10073_v11 }
 0x583   :  { %6398 = vmatmul.mubr.msk.f32.vlgmr.msra.gmra.mrb[22].mxu1 %vm315_vm5, %v3007_v26 }
 0x584   :  { %6400 = vmatprep.mubr.msk.f32.mxu1 %vm7866_vm1, %v10073_v11  ;;  %7357 = vmatpush3.bf16.msra.mxu1 %v8193_v1  ;;  %v3185_v1 = vrot.slane %v9447_v37, 3 }
 0x585   :  { %7358 = vmatprep.subr.bf16.mxu1 %v10070_v34 }
 0x587   :  { %6401 = vmatmul.mubr.msk.f32.gmra.mrb[24].mxu1 %vm315_vm5, %v3009_v35 }
 0x588   :  { %6403 = vmatprep.mubr.msk.f32.mxu1 %vm7866_vm1, %v10073_v11  ;;  %7361 = vmatpush3.bf16.msk.msra.mxu1 %vm8000_vm3, %v8220_v18  ;;  %v3187_v18 = vrot.slane %v9459_v13, 3 }
 0x589   :  { %7362 = vmatprep.subr.bf16.mxu1 %v10070_v34 }
 0x58a   :  { %v3190_v42 = vsel %vm847_vm7, %v3187_v18, %v3189_v5 }
 0x58b   :  { %6404 = vmatmul.mubr.msk.f32.gmra.mrb[26].mxu1 %vm315_vm5, %v3011_v46 }
 0x58c   :  { %6414 = vmatprep.mubr.msk.f32.mxu1 %vm7866_vm1, %v10073_v11 }
 0x58f   :  { %6415 = vmatmul.mubr.msk.f32.vlgmr.msra.gmra.mrb[28].mxu1 %vm315_vm5, %v3007_v26 }
 0x590   :  { %6417 = vmatprep.mubr.msk.f32.mxu1 %vm7866_vm1, %v10073_v11  ;;  %7364 = vmatpush3.bf16.msra.mxu1 %v8117_v47  ;;  %v3186_v47 = vsel %vm847_vm7, %v3184_v54, %v3185_v1  ;;  %v7827_v54 = vld [vmem:[%s9986_s4] sm:$0xff] }
 0x591   :  { %7365 = vmatprep.subr.bf16.mxu1 %v10070_v34 }
 0x593   :  { %6418 = vmatmul.mubr.msk.f32.gmra.mrb[30].mxu1 %vm315_vm5, %v3009_v35 }
 0x594   :  { %6420 = vmatprep.mubr.msk.f32.mxu1 %vm7866_vm1, %v10073_v11  ;;  %7368 = vmatpush3.bf16.msk.msra.mxu1 %vm8000_vm3, %v8147_v55  ;;  %v3188_v55 = vsel %vm847_vm7, %v3185_v1, %v3187_v18  ;;  %v7828_v1 = vld [vmem:[%s9986_s4 + $0x8] sm:$0xf] }
 0x595   :  { %7369 = vmatprep.subr.bf16.mxu1 %v10070_v34 }
 0x597   :  { %6421 = vmatmul.mubr.msk.f32.gmra.mrb[32].mxu1 %vm315_vm5, %v3011_v46  ;;  %v7826_v46 = vld [vmem:[%s9985_s3 + $0x8] sm:$0xf] }
 0x598   :  { %6431 = vmatprep.mubr.msk.f32.mxu1 %vm7866_vm1, %v10073_v11 }
 0x59b   :  { %6432 = vmatmul.mubr.msk.f32.vlgmr.msra.gmra.mrb[22].mxu1 %vm315_vm5, %v3186_v47 }
 0x59c   :  { %6434 = vmatprep.mubr.msk.f32.mxu1 %vm7866_vm1, %v10073_v11  ;;  %7371 = vmatpush3.bf16.msra.mxu1 %v8259_v29  ;;  %v3363_v29 = vrot.slane %v9442_v14, 4  ;;  %v3368_v14 = vrot.slane %v9470_v27, 4 }
 0x59d   :  { %7372 = vmatprep.subr.bf16.mxu1 %v10070_v34 }
 0x59f   :  { %6435 = vmatmul.mubr.msk.f32.gmra.mrb[24].mxu1 %vm315_vm5, %v3188_v55 }
 0x5a0   :  { %6437 = vmatprep.mubr.msk.f32.mxu1 %vm7866_vm1, %v10073_v11  ;;  %7375 = vmatpush3.bf16.msk.msra.mxu1 %vm8000_vm3, %v8277_v33  ;;  %v3364_v33 = vrot.slane %v9447_v37, 4  ;;  %v3369_v37 = vsel %vm322_vm0, %v3366_v4, %v3368_v14 }
 0x5a1   :  { %7376 = vmatprep.subr.bf16.mxu1 %v10070_v34 }
 0x5a3   :  { %6438 = vmatmul.mubr.msk.f32.gmra.mrb[26].mxu1 %vm315_vm5, %v3190_v42 }
 0x5a4   :  { %6448 = vmatprep.mubr.msk.f32.mxu1 %vm7866_vm1, %v10073_v11 }
 0x5a7   :  { %6449 = vmatmul.mubr.msk.f32.vlgmr.msra.gmra.mrb[28].mxu1 %vm315_vm5, %v3186_v47 }
 0x5a8   :  { %6451 = vmatprep.mubr.msk.f32.mxu1 %vm7866_vm1, %v10073_v11  ;;  %7378 = vmatpush3.bf16.msra.mxu1 %v8195_v2  ;;  %v3365_v2 = vsel %vm322_vm0, %v3363_v29, %v3364_v33 }
 0x5a9   :  { %7379 = vmatprep.subr.bf16.mxu1 %v10070_v34 }
 0x5ab   :  { %6452 = vmatmul.mubr.msk.f32.gmra.mrb[30].mxu1 %vm315_vm5, %v3188_v55 }
 0x5ac   :  { %6454 = vmatprep.mubr.msk.f32.mxu1 %vm7866_vm1, %v10073_v11  ;;  %7382 = vmatpush3.bf16.msk.msra.mxu1 %vm8000_vm3, %v8224_v20  ;;  %v3367_v20 = vsel %vm322_vm0, %v3364_v33, %v3366_v4 }
 0x5ad   :  { %7383 = vmatprep.subr.bf16.mxu1 %v10070_v34 }
 0x5af   :  { %6455 = vmatmul.mubr.msk.f32.gmra.mrb[32].mxu1 %vm315_vm5, %v3190_v42 }
 0x5b0   :  { %6465 = vmatprep.mubr.msk.f32.mxu1 %vm7866_vm1, %v10073_v11 }
 0x5b3   :  { %6466 = vmatmul.mubr.msk.f32.vlgmr.msra.gmra.mrb[22].mxu1 %vm315_vm5, %v3365_v2 }
 0x5b4   :  { %6468 = vmatprep.mubr.msk.f32.mxu1 %vm7866_vm1, %v10073_v11  ;;  %7385 = vmatpush3.bf16.msra.mxu1 %v8303_v38  ;;  %v9667_v38 = vld [vmem:[%s9996_s14] sm:$0x1] }
 0x5b5   :  { %7386 = vmatprep.subr.bf16.mxu1 %v10070_v34 }
 0x5b7   :  { %6469 = vmatmul.mubr.msk.f32.gmra.mrb[24].mxu1 %vm315_vm5, %v3367_v20 }
 0x5b8   :  { %6471 = vmatprep.mubr.msk.f32.mxu1 %vm7866_vm1, %v10073_v11  ;;  %7389 = vmatpush3.bf16.msk.msra.mxu1 %vm8000_vm3, %v8316_v41 }
 0x5b9   :  { %7440 = vmatprep.subr.bf16.mxu1 %v10070_v34 }
 0x5bb   :  { %6472 = vmatmul.mubr.msk.f32.gmra.mrb[26].mxu1 %vm315_vm5, %v3369_v37 }
 0x5bc   :  { %6482 = vmatprep.mubr.msk.f32.mxu1 %vm7866_vm1, %v10073_v11 }
 0x5bf   :  { %6483 = vmatmul.mubr.msk.f32.vlgmr.msra.gmra.mrb[28].mxu1 %vm315_vm5, %v3365_v2 }
 0x5c0   :  { %6485 = vmatprep.mubr.msk.f32.mxu1 %vm7866_vm1, %v10073_v11  ;;  %7442 = vmatpush3.bf16.msra.mxu1 %v8363_v19 }
 0x5c1   :  { %7443 = vmatprep.subr.bf16.mxu1 %v10070_v34 }
 0x5c3   :  { %6486 = vmatmul.mubr.msk.f32.gmra.mrb[30].mxu1 %vm315_vm5, %v3367_v20 }
 0x5c4   :  { %6488 = vmatprep.mubr.msk.f32.mxu1 %vm7866_vm1, %v10073_v11  ;;  %7445 = vmatpush3.bf16.msra.mxu1 %v8385_v40 }
 0x5c5   :  { %7446 = vmatprep.subr.bf16.mxu1 %v10070_v34 }
 0x5c7   :  { %6489 = vmatmul.mubr.msk.f32.gmra.mrb[32].mxu1 %vm315_vm5, %v3369_v37 }
 0x5c8   :  { %7448 = vmatpush3.bf16.msra.mxu1 %v8409_v49  ;;  %6605 = vmatprep.mubr.msk.f32.mxu1 %vm7866_vm1, %v10073_v11 }
 0x5c9   :  { %7449 = vmatprep.subr.bf16.mxu1 %v10070_v34 }
 0x5cc   :  { %7451 = vmatpush3.bf16.msra.mxu1 %v8429_v57 }
 0x5cd   :  { %7452 = vmatprep.subr.bf16.mxu1 %v10070_v34 }
 0x5d0   :  { %7454 = vmatpush3.bf16.msra.mxu1 %v8449_v63 }
 0x5d1   :  { %7455 = vmatprep.subr.bf16.mxu1 %v10070_v34 }
 0x5d4   :  { %7457 = vmatpush3.bf16.msra.mxu1 %v8471_v10 }
 0x5d5   :  { %7458 = vmatprep.subr.bf16.mxu1 %v10070_v34 }
 0x5d8   :  { %7460 = vmatpush3.bf16.msra.mxu1 %v8491_v25 }
 0x5d9   :  { %6603 = vmatprep.subr.mxu1 %v10073_v11 }
 0x5dc   :  { %6604 = vmatpush3.msra.mxu1 %v7825_v15 }
 0x5dd   :  { %7461 = vmatprep.subr.bf16.mxu1 %v10070_v34 }
 0x61e   :  { %v2652_v41 = vpop.f32.mrb[20].mxu1 }
 0x61f   :  { %v2653_v19 = vadd.f32 %v2652_v41, %v9667_v38  ;;  %v6320_v40 = vpop.f32.mrb[21].mxu1 }
 0x621   :  { %2656 = vst [vmem:[#allocation2] sm:$0x1] %v2653_v19 }
 0x686   :  { %v3442_v49 = vpop.f32.mrb[22].mxu1 }
 0x687   :  { %v6467_v57 = vpop.f32.mrb[23].mxu1 }
 0x688   :  { %v10143_v57 = vld [vmem:[#allocation16_spill] sm:$0xff] }
 0x68a   :  { %v3447_v63 = vpop.f32.mrb[24].mxu1 }
 0x68b   :  { %v6470_v10 = vpop.f32.mrb[25].mxu1 }
 0x68c   :  { %v10145_v10 = vld [vmem:[#allocation18_spill] sm:$0xff] }
 0x68e   :  { %v3452_v25 = vpop.f32.mrb[26].mxu1 }
 0x68f   :  { %v6473_v27 = vpop.f32.mrb[27].mxu1 }
 0x690   :  { %v7833_v27 = vld [vmem:[%s9988_s6 + $0x160] sm:$0xff] }
 0x692   :  { %v3525_v13 = vpop.f32.mrb[28].mxu1 }
 0x693   :  { %v3542_v59 = vmax.f32 %v3442_v49, %v3525_v13  ;;  %v6484_v12 = vpop.f32.mrb[29].mxu1  ;;  %v7834_v13 = vld [vmem:[%s9989_s7 + $0x160] sm:$0xff] }
 0x694   :  { %v10148_v12 = vld [vmem:[#allocation21_spill] sm:$0xff] }
 0x696   :  { %v3530_v3 = vpop.f32.mrb[30].mxu1 }
 0x697   :  { %v3543_v8 = vmax.f32 %v3447_v63, %v3530_v3  ;;  %v6487_v16 = vpop.f32.mrb[31].mxu1  ;;  %v10144_v63 = vld [vmem:[#allocation17_spill] sm:$0xff]  ;;  %v10149_v3 = vld [vmem:[#allocation22_spill] sm:$0xff] }
 0x698   :  { %v10152_v16 = vld [vmem:[#allocation25_spill] sm:$0xff] }
 0x699   :  { %v7390_v26 = vpack.c.bf16 %v3543_v8, %v3542_v59  ;;  %v10147_v59 = vld [vmem:[#allocation20_spill] sm:$0xff] }
 0x69a   :  { %v3535_v28 = vpop.f32.mrb[32].mxu1  ;;  %v10151_v8 = vld [vmem:[#allocation24_spill] sm:$0xff] }
 0x69b   :  { %v3544_v35 = vmax.f32 %v3452_v25, %v3535_v28  ;;  %v6490_v36 = vpop.f32.mrb[33].mxu1  ;;  %7391 = vmatprep.subr.bf16.mxu0 %v7390_v26  ;;  %v10146_v25 = vld [vmem:[#allocation19_spill] sm:$0xff] }
 0x69c   :  { %7393 = vmatpush3.bf16.msra.mxu0 %v7390_v26  ;;  %v10154_v28 = vld [vmem:[#allocation27_spill] sm:$0xff]  ;;  %v10156_v36 = vld [vmem:[#allocation29_spill] sm:$0xff] }
 0x69d   :  { %6495 = vmatprep.subr.mxu0 %v3544_v35 }
 0x6a0   :  { %6496 = vmatpush3.msra.mxu0 %v3544_v35 }
 0x6a1   :  { %7395 = vmatprep.subr.bf16.mxu0 %v7390_v26  ;;  %6498 = vmatmul.mubr.msk.f32.vlgmr.msra.gmra.mrb[12].mxu0 %vm1221_vm8, %v7826_v46  ;;  %v10157_v46 = vld [vmem:[#allocation30_spill] sm:$0xff] }
 0x6a2   :  { %7397 = vmatpush3.bf16.msra.mxu0 %v7390_v26  ;;  %6506 = vmatprep.mubr.msk.f32.mxu0 %vm1221_vm8, %v7827_v54  ;;  %v10153_v26 = vld [vmem:[#allocation26_spill] sm:$0xff]  ;;  %v10158_v54 = vld [vmem:[#allocation31_spill] sm:$0xff] }
 0x6a3   :  { %6504 = vmatprep.subr.mxu0 %v3544_v35 }
 0x6a6   :  { %6505 = vmatpush3.msra.mxu0 %v3544_v35  ;;  %v10155_v35 = vld [vmem:[#allocation28_spill] sm:$0xff] }
 0x6a7   :  { %6507 = vmatmul.mubr.msk.f32.vlgmr.msra.gmra.mrb[14].mxu0 %vm1221_vm8, %v7828_v1  ;;  %7398 = vmatprep.subr.bf16.mxu0 %v10070_v34  ;;  %v10159_v1 = vld [vmem:[#allocation32_spill] sm:$0xff] }
 0x6a8   :  { %7400 = vmatpush3.bf16.msra.mxu0 %v8361_v31  ;;  %6539 = vmatprep.mubr.msk.f32.mxu0 %vm7866_vm1, %v10073_v11  ;;  %v7829_v31 = vld [vmem:[%s9988_s6 + $0xe8] sm:$0xff] }
 0x6a9   :  { %7401 = vmatprep.subr.bf16.mxu0 %v10070_v34 }
 0x6ac   :  { %7403 = vmatpush3.bf16.msra.mxu0 %v8383_v39 }
 0x6ad   :  { %7404 = vmatprep.subr.bf16.mxu0 %v10070_v34 }
 0x6b0   :  { %7406 = vmatpush3.bf16.msra.mxu0 %v8407_v48 }
 0x6b1   :  { %7407 = vmatprep.subr.bf16.mxu0 %v10070_v34 }
 0x6b4   :  { %7409 = vmatpush3.bf16.msra.mxu0 %v8427_v56 }
 0x6b5   :  { %7410 = vmatprep.subr.bf16.mxu0 %v10070_v34 }
 0x6b8   :  { %7412 = vmatpush3.bf16.msra.mxu0 %v8447_v62 }
 0x6b9   :  { %7413 = vmatprep.subr.bf16.mxu0 %v10070_v34 }
 0x6bc   :  { %7415 = vmatpush3.bf16.msra.mxu0 %v8466_v7  ;;  %v7830_v7 = vld [vmem:[%s9987_s5] ss:$0 sm:$0xff] }
 0x6bd   :  { %7416 = vmatprep.subr.bf16.mxu0 %v10070_v34 }
 0x6c0   :  { %7418 = vmatpush3.bf16.msra.mxu0 %v8486_v23 }
 0x6c1   :  { %6537 = vmatprep.subr.mxu0 %v10073_v11 }
 0x6c4   :  { %6538 = vmatpush3.msra.mxu0 %v7829_v31  ;;  %v7835_v31 = vld [vmem:[%s9988_s6 + $0x1d8] sm:$0xff] }
 0x6c5   :  { %7419 = vmatprep.subr.bf16.mxu0 %v10070_v34 }
 0x774   :  { %v6499_v39 = vpop.f32.mrb[12].mxu0 }
 0x775   :  { %v3611_v48 = vpop.f32.mrb[13].mxu0 }
 0x77a   :  { %v6508_v56 = vpop.f32.mrb[14].mxu0 }
 0x77b   :  { %v3696_v62 = vmax.f32 %v6499_v39, %v6508_v56  ;;  %v3686_v47 = vpop.f32.mrb[15].mxu0  ;;  %v7836_v39 = vld [vmem:[%s9989_s7 + $0x1d8] sm:$0xff]  ;;  %v10161_v56 = vld [vmem:[#allocation34_spill] sm:$0xff] }
 0x77c   :  { %v3695_v18 = vmax.f32 %v3611_v48, %v3686_v47  ;;  %v10160_v48 = vld [vmem:[#allocation33_spill] sm:$0xff]  ;;  %v10165_v47 = vld [vmem:[#allocation38_spill] sm:$0xff] }
 0x77d   :  { %v3698_v23 = vadd.f32 %v7830_v7, %v3696_v62  ;;  %v10164_v62 = vld [vmem:[#allocation37_spill] sm:$0xff] }
 0x77e   :  { %v3697_v55 = vadd.f32 %v7830_v7, %v3695_v18  ;;  %v10166_v18 = vld [vmem:[#allocation39_spill] sm:$0xff]  ;;  %v10167_v7 = vld [vmem:[#allocation40_spill] sm:$0xff] }
 0x77f   :  { %v3700_v5 = vmax.f32 %v3698_v23, 0.0  ;;  %v10168_v23 = vld [vmem:[#allocation41_spill] sm:$0xff] }
 0x780   :  { %v3699_v42 = vmax.f32 %v3697_v55, 0.0  ;;  %v10169_v55 = vld [vmem:[#allocation42_spill] sm:$0xff] }
 0x781   :  { %v3704_v29 = vrot.slane %v3700_v5, 1  ;;  %v3991_v33 = vrot.slane %v3700_v5, 2  ;;  %v4138_v2 = vrot.slane %v3700_v5, 3  ;;  %v4285_v4 = vrot.slane %v3700_v5, 4  ;;  %v10170_v5 = vld [vmem:[#allocation43_spill] sm:$0xff] }
 0x782   :  { %v3703_v20 = vrot.slane %v3699_v42, 1  ;;  %v3990_v14 = vrot.slane %v3699_v42, 2  ;;  %v4137_v37 = vrot.slane %v3699_v42, 3  ;;  %v4284_v15 = vrot.slane %v3699_v42, 4 }
 0x784   :  { %v3705_v41 = vsel %vm307_vm4, %v3703_v20, %v3704_v29  ;;  %v9708_v19 = vsel %vm661_vm6, %v3990_v14, %v3991_v33  ;;  %v9711_v40 = vsel %vm847_vm7, %v4137_v37, %v4138_v2  ;;  %v9714_v49 = vsel %vm322_vm0, %v4284_v15, %v4285_v4  ;;  %v10171_v29 = vld [vmem:[#allocation49_spill] sm:$0xff]  ;;  %v10172_v33 = vld [vmem:[#allocation50_spill] sm:$0xff]  ;;  %v10173_v2 = vld [vmem:[#allocation51_spill] sm:$0xff] }
 0x785   :  { %6540 = vmatmul.mubr.msk.f32.vlgmr.msra.gmra.mrb[16].mxu0 %vm1401_vm9, %v3705_v41  ;;  %6606 = vmatmul.mubr.msk.f32.vlgmr.msra.gmra.mrb[34].mxu1 %vm1401_vm9, %v3705_v41  ;;  %v7839_v41 = vld [vmem:[%s9990_s8] sm:$0xf]  ;;  %s7869_s8 = smov [#allocation2]  }
 0x786   :  { %7421 = vmatpush3.bf16.msra.mxu0 %v8522_v60  ;;  %7463 = vmatpush3.bf16.msra.mxu1 %v8524_v61  ;;  %v10132_v60 = vld [vmem:[#allocation5_spill] sm:$0xff]  ;;  %v7831_v61 = vld [vmem:[%s9988_s6 + $0x70] sm:$0xff] }
 0x787   :  { %7422 = vmatprep.subr.bf16.mxu0 %v10070_v34  ;;  %7464 = vmatprep.subr.bf16.mxu1 %v10070_v34 }
 0x788   :  { %6572 = vmatprep.mubr.msk.f32.mxu0 %vm7866_vm1, %v10073_v11  ;;  %6638 = vmatprep.mubr.msk.f32.mxu1 %vm7866_vm1, %v10073_v11 }
 0x78a   :  { %7424 = vmatpush3.bf16.msra.mxu0 %v8556_v43  ;;  %7466 = vmatpush3.bf16.msra.mxu1 %v8558_v44  ;;  %v7832_v43 = vld [vmem:[%s9989_s7 + $0x70] sm:$0xff] }
 0x78b   :  { %7425 = vmatprep.subr.bf16.mxu0 %v10070_v34  ;;  %7467 = vmatprep.subr.bf16.mxu1 %v10070_v34  ;;  %v10133_v44 = vld [vmem:[#allocation6_spill] sm:$0xff] }
 0x78e   :  { %7427 = vmatpush3.bf16.msra.mxu0 %v8580_v53  ;;  %7469 = vmatpush3.bf16.msra.mxu1 %v8582_v58  ;;  %v10134_v53 = vld [vmem:[#allocation7_spill] sm:$0xff]  ;;  %v10135_v58 = vld [vmem:[#allocation8_spill] sm:$0xff] }
 0x78f   :  { %7428 = vmatprep.subr.bf16.mxu0 %v10070_v34  ;;  %7470 = vmatprep.subr.bf16.mxu1 %v10070_v34 }
 0x792   :  { %7430 = vmatpush3.bf16.msra.mxu0 %v8600_v17  ;;  %7472 = vmatpush3.bf16.msra.mxu1 %v8602_v21  ;;  %v10136_v17 = vld [vmem:[#allocation9_spill] sm:$0xff]  ;;  %v10137_v21 = vld [vmem:[#allocation10_spill] sm:$0xff] }
 0x793   :  { %7431 = vmatprep.subr.bf16.mxu0 %v10070_v34  ;;  %7473 = vmatprep.subr.bf16.mxu1 %v10070_v34 }
 0x796   :  { %7433 = vmatpush3.bf16.msra.mxu0 %v8620_v30  ;;  %7475 = vmatpush3.bf16.msra.mxu1 %v8622_v32  ;;  %v10138_v30 = vld [vmem:[#allocation11_spill] sm:$0xff]  ;;  %v10139_v32 = vld [vmem:[#allocation12_spill] sm:$0xff] }
 0x797   :  { %7434 = vmatprep.subr.bf16.mxu0 %v10070_v34  ;;  %7476 = vmatprep.subr.bf16.mxu1 %v10070_v34 }
 0x79a   :  { %7436 = vmatpush3.bf16.msra.mxu0 %v8640_v52  ;;  %7478 = vmatpush3.bf16.msra.mxu1 %v8642_v0  ;;  %v10140_v52 = vld [vmem:[#allocation13_spill] sm:$0xff]  ;;  %v10141_v0 = vld [vmem:[#allocation14_spill] sm:$0xff] }
 0x79b   :  { %7437 = vmatprep.subr.bf16.mxu0 %v10070_v34  ;;  %7479 = vmatprep.subr.bf16.mxu1 %v10070_v34 }
 0x79e   :  { %7439 = vmatpush3.bf16.msra.mxu0 %v8660_v24  ;;  %7481 = vmatpush3.bf16.msra.mxu1 %v10132_v60  ;;  %v10142_v24 = vld [vmem:[#allocation15_spill] sm:$0xff] }
 0x79f   :  { %6570 = vmatprep.subr.mxu0 %v10073_v11  ;;  %6636 = vmatprep.subr.mxu1 %v10073_v11  ;;  %v10177_v60 = vld [vmem:[#allocation47_spill] sm:$0xff] }
 0x7a2   :  { %6571 = vmatpush3.msra.mxu0 %v7831_v61  ;;  %6637 = vmatpush3.msra.mxu1 %v7832_v43  ;;  %v10178_v61 = vld [vmem:[#allocation48_spill] sm:$0xff] }
 0x7a3   :  { %6573 = vmatmul.mubr.msk.f32.vlgmr.msra.gmra.mrb[16].mxu0 %vm1401_vm9, %v3699_v42  ;;  %6639 = vmatmul.mubr.msk.f32.vlgmr.msra.gmra.mrb[34].mxu1 %vm1401_vm9, %v3699_v42  ;;  %v7838_v42 = vld [vmem:[%s9989_s7 + $0x250] sm:$0xff] }
 0x7a4   :  { %7482 = vmatprep.subr.bf16.mxu0 %v10070_v34  ;;  %7503 = vmatprep.subr.bf16.mxu1 %v10070_v34 }
 0x7a5   :  { %7484 = vmatpush3.bf16.msra.mxu0 %v10133_v44  ;;  %7505 = vmatpush3.bf16.msra.mxu1 %v10134_v53 }
 0x7a6   :  { %7485 = vmatprep.subr.bf16.mxu0 %v10070_v34  ;;  %7506 = vmatprep.subr.bf16.mxu1 %v10070_v34 }
 0x7a7   :  { %6671 = vmatprep.mubr.msk.f32.mxu0 %vm7866_vm1, %v10073_v11  ;;  %6704 = vmatprep.mubr.msk.f32.mxu1 %vm7866_vm1, %v10073_v11 }
 0x7a9   :  { %7487 = vmatpush3.bf16.msra.mxu0 %v10135_v58  ;;  %7508 = vmatpush3.bf16.msra.mxu1 %v10136_v17 }
 0x7aa   :  { %7488 = vmatprep.subr.bf16.mxu0 %v10070_v34  ;;  %7509 = vmatprep.subr.bf16.mxu1 %v10070_v34 }
 0x7ad   :  { %7490 = vmatpush3.bf16.msra.mxu0 %v10137_v21  ;;  %7511 = vmatpush3.bf16.msra.mxu1 %v10138_v30 }
 0x7ae   :  { %7491 = vmatprep.subr.bf16.mxu0 %v10070_v34  ;;  %7512 = vmatprep.subr.bf16.mxu1 %v10070_v34 }
 0x7b1   :  { %7493 = vmatpush3.bf16.msra.mxu0 %v10139_v32  ;;  %7514 = vmatpush3.bf16.msra.mxu1 %v10140_v52  ;;  %v10179_v32 = vld [vmem:[#allocation52_spill] sm:$0xff]  ;;  %v10180_v52 = vld [vmem:[#allocation53_spill] sm:$0xff] }
 0x7b2   :  { %7494 = vmatprep.subr.bf16.mxu0 %v10070_v34  ;;  %7515 = vmatprep.subr.bf16.mxu1 %v10070_v34 }
 0x7b5   :  { %7496 = vmatpush3.bf16.msra.mxu0 %v10141_v0  ;;  %7517 = vmatpush3.bf16.msra.mxu1 %v10142_v24  ;;  %v10181_v0 = vld [vmem:[#allocation54_spill] sm:$0xff]  ;;  %v10182_v24 = vld [vmem:[#allocation55_spill] sm:$0xff] }
 0x7b6   :  { %7497 = vmatprep.subr.bf16.mxu0 %v10070_v34  ;;  %7518 = vmatprep.subr.bf16.mxu1 %v10070_v34 }
 0x7b9   :  { %7499 = vmatpush3.bf16.msra.mxu0 %v10143_v57  ;;  %7520 = vmatpush3.bf16.msra.mxu1 %v10144_v63  ;;  %v10184_v63 = vld [vmem:[#allocation57_spill] sm:$0xff] }
 0x7ba   :  { %7500 = vmatprep.subr.bf16.mxu0 %v10070_v34  ;;  %7521 = vmatprep.subr.bf16.mxu1 %v10070_v34 }
 0x7bd   :  { %7502 = vmatpush3.bf16.msra.mxu0 %v10145_v10  ;;  %7523 = vmatpush3.bf16.msra.mxu1 %v10146_v25  ;;  %v10185_v10 = vld [vmem:[#allocation58_spill] sm:$0xff]  ;;  %v10186_v25 = vld [vmem:[#allocation59_spill] sm:$0xff] }
 0x7be   :  { %6669 = vmatprep.subr.mxu0 %v10073_v11  ;;  %6702 = vmatprep.subr.mxu1 %v10073_v11 }
 0x7c1   :  { %6670 = vmatpush3.msra.mxu0 %v7833_v27  ;;  %6703 = vmatpush3.msra.mxu1 %v7834_v13  ;;  %v10187_v27 = vld [vmem:[#allocation60_spill] sm:$0xff]  ;;  %v10188_v13 = vld [vmem:[#allocation61_spill] sm:$0xff] }
 0x7c2   :  { %6672 = vmatmul.mubr.msk.f32.vlgmr.msra.gmra.mrb[16].mxu0 %vm1401_vm9, %v9708_v19  ;;  %6705 = vmatmul.mubr.msk.f32.vlgmr.msra.gmra.mrb[34].mxu1 %vm1401_vm9, %v9708_v19  ;;  %v10174_v19 = vld [vmem:[#allocation44_spill] sm:$0xff] }
 0x7c3   :  { %7524 = vmatprep.subr.bf16.mxu0 %v10070_v34  ;;  %7545 = vmatprep.subr.bf16.mxu1 %v10070_v34 }
 0x7c4   :  { %7526 = vmatpush3.bf16.msra.mxu0 %v8844_v51  ;;  %7547 = vmatpush3.bf16.msra.mxu1 %v10147_v59  ;;  %v10150_v51 = vld [vmem:[#allocation23_spill] sm:$0xff] }
 0x7c5   :  { %7527 = vmatprep.subr.bf16.mxu0 %v10070_v34  ;;  %7548 = vmatprep.subr.bf16.mxu1 %v10070_v34 }
 0x7c6   :  { %6737 = vmatprep.mubr.msk.f32.mxu0 %vm7866_vm1, %v10073_v11  ;;  %6770 = vmatprep.mubr.msk.f32.mxu1 %vm7866_vm1, %v10073_v11 }
 0x7c8   :  { %7529 = vmatpush3.bf16.msra.mxu0 %v10148_v12  ;;  %7550 = vmatpush3.bf16.msra.mxu1 %v10149_v3  ;;  %v10189_v12 = vld [vmem:[#allocation62_spill] sm:$0xff]  ;;  %v10190_v3 = vld [vmem:[#allocation63_spill] sm:$0xff] }
 0x7c9   :  { %7530 = vmatprep.subr.bf16.mxu0 %v10070_v34  ;;  %7551 = vmatprep.subr.bf16.mxu1 %v10070_v34 }
 0x7cc   :  { %7532 = vmatpush3.bf16.msra.mxu0 %v10150_v51  ;;  %7553 = vmatpush3.bf16.msra.mxu1 %v10151_v8  ;;  %v10191_v51 = vld [vmem:[#allocation64_spill] sm:$0xff]  ;;  %v10192_v8 = vld [vmem:[#allocation65_spill] sm:$0xff] }
 0x7cd   :  { %7533 = vmatprep.subr.bf16.mxu0 %v10070_v34  ;;  %7554 = vmatprep.subr.bf16.mxu1 %v10070_v34 }
 0x7d0   :  { %7535 = vmatpush3.bf16.msra.mxu0 %v10152_v16  ;;  %7556 = vmatpush3.bf16.msra.mxu1 %v10153_v26  ;;  %v10193_v16 = vld [vmem:[#allocation66_spill] sm:$0xff] }
 0x7d1   :  { %7536 = vmatprep.subr.bf16.mxu0 %v10070_v34  ;;  %7557 = vmatprep.subr.bf16.mxu1 %v10070_v34 }
 0x7d4   :  { %7538 = vmatpush3.bf16.msra.mxu0 %v10154_v28  ;;  %7559 = vmatpush3.bf16.msra.mxu1 %v10155_v35  ;;  %v10194_v28 = vld [vmem:[#allocation67_spill] sm:$0xff] }
 0x7d5   :  { %7539 = vmatprep.subr.bf16.mxu0 %v10070_v34  ;;  %7560 = vmatprep.subr.bf16.mxu1 %v10070_v34 }
 0x7d8   :  { %7541 = vmatpush3.bf16.msra.mxu0 %v10156_v36  ;;  %7562 = vmatpush3.bf16.msra.mxu1 %v10157_v46 }
 0x7d9   :  { %7542 = vmatprep.subr.bf16.mxu0 %v10070_v34  ;;  %7563 = vmatprep.subr.bf16.mxu1 %v10070_v34 }
 0x7dc   :  { %7544 = vmatpush3.bf16.msra.mxu0 %v10158_v54  ;;  %7565 = vmatpush3.bf16.msra.mxu1 %v10159_v1 }
 0x7dd   :  { %6735 = vmatprep.subr.mxu0 %v10073_v11  ;;  %6768 = vmatprep.subr.mxu1 %v10073_v11 }
 0x7e0   :  { %6736 = vmatpush3.msra.mxu0 %v7835_v31  ;;  %6769 = vmatpush3.msra.mxu1 %v7836_v39 }
 0x7e1   :  { %6738 = vmatmul.mubr.msk.f32.vlgmr.msra.gmra.mrb[16].mxu0 %vm1401_vm9, %v9711_v40  ;;  %6771 = vmatmul.mubr.msk.f32.vlgmr.msra.gmra.mrb[34].mxu1 %vm1401_vm9, %v9711_v40  ;;  %v10175_v40 = vld [vmem:[#allocation45_spill] sm:$0xff] }
 0x7e2   :  { %7566 = vmatprep.subr.bf16.mxu0 %v10070_v34  ;;  %7587 = vmatprep.subr.bf16.mxu1 %v10070_v34 }
 0x7e3   :  { %7568 = vmatpush3.bf16.msra.mxu0 %v9000_v50  ;;  %7589 = vmatpush3.bf16.msra.mxu1 %v9002_v6  ;;  %v10162_v50 = vld [vmem:[#allocation35_spill] sm:$0xff]  ;;  %v10163_v6 = vld [vmem:[#allocation36_spill] sm:$0xff] }
 0x7e4   :  { %7569 = vmatprep.subr.bf16.mxu0 %v10070_v34  ;;  %7590 = vmatprep.subr.bf16.mxu1 %v10070_v34 }
 0x7e5   :  { %6803 = vmatprep.mubr.msk.f32.mxu0 %vm7866_vm1, %v10073_v11  ;;  %6836 = vmatprep.mubr.msk.f32.mxu1 %vm7866_vm1, %v10073_v11 }
 0x7e7   :  { %7571 = vmatpush3.bf16.msra.mxu0 %v10160_v48  ;;  %7592 = vmatpush3.bf16.msra.mxu1 %v10161_v56 }
 0x7e8   :  { %7572 = vmatprep.subr.bf16.mxu0 %v10070_v34  ;;  %7593 = vmatprep.subr.bf16.mxu1 %v10070_v34 }
 0x7eb   :  { %7574 = vmatpush3.bf16.msra.mxu0 %v10162_v50  ;;  %7595 = vmatpush3.bf16.msra.mxu1 %v10163_v6 }
 0x7ec   :  { %7575 = vmatprep.subr.bf16.mxu0 %v10070_v34  ;;  %7596 = vmatprep.subr.bf16.mxu1 %v10070_v34 }
 0x7ef   :  { %7577 = vmatpush3.bf16.msra.mxu0 %v10164_v62  ;;  %7598 = vmatpush3.bf16.msra.mxu1 %v10165_v47 }
 0x7f0   :  { %7578 = vmatprep.subr.bf16.mxu0 %v10070_v34  ;;  %7599 = vmatprep.subr.bf16.mxu1 %v10070_v34 }
 0x7f3   :  { %7580 = vmatpush3.bf16.msra.mxu0 %v9088_v9  ;;  %7601 = vmatpush3.bf16.msra.mxu1 %v10166_v18  ;;  %v7837_v9 = vld [vmem:[%s9988_s6 + $0x250] sm:$0xff] }
 0x7f4   :  { %7581 = vmatprep.subr.bf16.mxu0 %v10070_v34  ;;  %7602 = vmatprep.subr.bf16.mxu1 %v10070_v34 }
 0x7f7   :  { %7583 = vmatpush3.bf16.msra.mxu0 %v10167_v7  ;;  %7604 = vmatpush3.bf16.msra.mxu1 %v10168_v23 }
 0x7f8   :  { %7584 = vmatprep.subr.bf16.mxu0 %v10070_v34  ;;  %7605 = vmatprep.subr.bf16.mxu1 %v10070_v34 }
 0x7fb   :  { %7586 = vmatpush3.bf16.msra.mxu0 %v10169_v55  ;;  %7607 = vmatpush3.bf16.msra.mxu1 %v10170_v5 }
 0x7fc   :  { %6801 = vmatprep.subr.mxu0 %v10073_v11  ;;  %6834 = vmatprep.subr.mxu1 %v10073_v11 }
 0x7ff   :  { %6802 = vmatpush3.msra.mxu0 %v7837_v9  ;;  %6835 = vmatpush3.msra.mxu1 %v7838_v42 }
 0x800   :  { %6804 = vmatmul.mubr.msk.f32.vlgmr.msra.gmra.mrb[16].mxu0 %vm1401_vm9, %v9714_v49  ;;  %6837 = vmatmul.mubr.msk.f32.vlgmr.msra.gmra.mrb[34].mxu1 %vm1401_vm9, %v9714_v49  ;;  %v10176_v49 = vld [vmem:[#allocation46_spill] sm:$0xff] }
 0x801   :  { %6839 = vmatprep.subr.mxu0 %v10073_v11  ;;  %6841 = vmatprep.mubr.msk.f32.mxu0 %vm7866_vm1, %v10073_v11 }
 0x802   :  { %7668 = vmatprep.subr.bf16.mxu1 %v10070_v34  ;;  %6957 = vmatprep.mubr.msk.f32.mxu1 %vm7866_vm1, %v10073_v11 }
 0x803   :  { %7670 = vmatpush3.bf16.msra.mxu1 %v10171_v29 }
 0x804   :  { %7671 = vmatprep.subr.bf16.mxu1 %v10070_v34 }
 0x807   :  { %7673 = vmatpush3.bf16.msra.mxu1 %v10172_v33 }
 0x808   :  { %7674 = vmatprep.subr.bf16.mxu1 %v10070_v34 }
 0x80b   :  { %7676 = vmatpush3.bf16.msra.mxu1 %v10173_v2 }
 0x80c   :  { %7677 = vmatprep.subr.bf16.mxu1 %v10070_v34 }
 0x80f   :  { %7679 = vmatpush3.bf16.msra.mxu1 %v9429_v45  ;;  %v7840_v45 = vld [vmem:[%s9991_s9] sm:$0xf]  ;;  %s4952_s9 = sshll.u32 %s7869_s8, 4  ;;  %s4953_s9 = int_to_ptr.vmem [resolvable:$true] %s4952_s9 }
 0x810   :  { %s7841_s25 = scalar_lea.vmem %s4953_s9, 32  ;;  %p7846_p1 = scmp.lt.s32.totalorder %s4953_s9, %s4953_s9 }
 0x811   :  { %p7842_p0 = scmp.ne.s32.totalorder %s4953_s9, %s7841_s25  ;;  %p7847_p2 = scmp.lt.s32.totalorder %s7841_s25, %s7841_s25 }
 0x813   :  { %p7848_p3 = por %p7847_p2, %p7846_p1 }
 0x815   :  { %p7849_p4 = pnand %p7848_p3, %p7842_p0 }
 0x8d3   :  { %v4355_v4 = vpop.f32.mrb[16].mxu0  ;;  %v4426_v20 = vpop.f32.mrb[34].mxu1 }
 0x8d4   :  { %v4431_v14 = vmax.f32 %v4355_v4, %v4426_v20  ;;  %v6805_v37 = vpop.f32.mrb[17].mxu0  ;;  %v6838_v15 = vpop.f32.mrb[35].mxu1 }
 0x8d6   :  { %6840 = vmatpush3.msra.mxu0 %v4431_v14 }
 0x8d7   :  { %6842 = vmatmul.mubr.msk.f32.vlgmr.msra.gmra.mrb[18].mxu0 %vm2128_vm10, %v7839_v41  ;;  %6844 = vmatprep.subr.mxu0 %v10073_v11 }
 0x8d8   :  { %6845 = vmatpush3.msra.mxu0 %v4431_v14  ;;  %6846 = vmatprep.mubr.msk.f32.mxu0 %vm7866_vm1, %v10073_v11 }
 0x8d9   :  { %7608 = vmatprep.subr.bf16.mxu0 %v10070_v34 }
 0x8db   :  { %6847 = vmatmul.mubr.msk.f32.vlgmr.msra.gmra.mrb[20].mxu0 %vm2128_vm10, %v7840_v45 }
 0x8dc   :  { %7610 = vmatpush3.bf16.msra.mxu0 %v10174_v19  ;;  %6869 = vmatprep.mubr.msk.f32.mxu0 %vm7866_vm1, %v10073_v11 }
 0x8dd   :  { %7611 = vmatprep.subr.bf16.mxu0 %v10070_v34 }
 0x8e0   :  { %7613 = vmatpush3.bf16.msra.mxu0 %v10175_v40 }
 0x8e1   :  { %7614 = vmatprep.subr.bf16.mxu0 %v10070_v34 }
 0x8e4   :  { %7616 = vmatpush3.bf16.msra.mxu0 %v10176_v49 }
 0x8e5   :  { %7617 = vmatprep.subr.bf16.mxu0 %v10070_v34 }
 0x8e8   :  { %7619 = vmatpush3.bf16.msra.mxu0 %v10177_v60 }
 0x8e9   :  { %7620 = vmatprep.subr.bf16.mxu0 %v10070_v34 }
 0x8ec   :  { %7622 = vmatpush3.bf16.msra.mxu0 %v10178_v61 }
 0x8ed   :  { %7623 = vmatprep.subr.bf16.mxu0 %v10070_v34 }
 0x9aa   :  { %v4498_v43 = vpop.f32.mrb[18].mxu0 }
 0x9ab   :  { %v6843_v44 = vpop.f32.mrb[19].mxu0 }
 0x9ae   :  { %v4568_v53 = vpop.f32.mrb[20].mxu0 }
 0x9af   :  { %v4572_v58 = vmax.f32 %v4498_v43, %v4568_v53  ;;  %v6848_v17 = vpop.f32.mrb[21].mxu0 }
 0x9b1   :  { %v4573_v21 = vadd.f32 %v9251_v22, %v4572_v58  ;;  %v10183_v22 = vld [vmem:[#allocation56_spill] sm:$0xff] }
 0x9b3   :  { %v4574_v30 = vmax.f32 %v4573_v21, 0.0 }
 0x9b5   :  { %6870 = vmatmul.mubr.msk.f32.vlgmr.msra.gmra.mrb[22].mxu0 %vm2284_vm11, %v4574_v30  ;;  %v4649_v57 = vrot.slane %v4574_v30, 1  ;;  %v4723_v59 = vrot.slane %v4574_v30, 2  ;;  %v4797_v26 = vrot.slane %v4574_v30, 3 }
 0x9b6   :  { %7625 = vmatpush3.bf16.msra.mxu0 %v10179_v32  ;;  %6892 = vmatprep.mubr.msk.f32.mxu0 %vm7866_vm1, %v10073_v11 }
 0x9b7   :  { %7626 = vmatprep.subr.bf16.mxu0 %v10070_v34 }
 0x9ba   :  { %7628 = vmatpush3.bf16.msra.mxu0 %v10180_v52 }
 0x9bb   :  { %7629 = vmatprep.subr.bf16.mxu0 %v10070_v34 }
 0x9be   :  { %7631 = vmatpush3.bf16.msra.mxu0 %v10181_v0 }
 0x9bf   :  { %7632 = vmatprep.subr.bf16.mxu0 %v10070_v34 }
 0x9c2   :  { %7634 = vmatpush3.bf16.msra.mxu0 %v10182_v24 }
 0x9c3   :  { %7635 = vmatprep.subr.bf16.mxu0 %v10070_v34 }
 0x9c6   :  { %7637 = vmatpush3.bf16.msra.mxu0 %v10183_v22 }
 0x9c7   :  { %7638 = vmatprep.subr.bf16.mxu0 %v10070_v34 }
 0x9c9   :  { %6893 = vmatmul.mubr.msk.f32.vlgmr.msra.gmra.mrb[22].mxu0 %vm2284_vm11, %v4649_v57 }
 0x9ca   :  { %7640 = vmatpush3.bf16.msra.mxu0 %v10184_v63  ;;  %6915 = vmatprep.mubr.msk.f32.mxu0 %vm7866_vm1, %v10073_v11 }
 0x9cb   :  { %7641 = vmatprep.subr.bf16.mxu0 %v10070_v34 }
 0x9ce   :  { %7643 = vmatpush3.bf16.msra.mxu0 %v10185_v10 }
 0x9cf   :  { %7644 = vmatprep.subr.bf16.mxu0 %v10070_v34 }
 0x9d2   :  { %7646 = vmatpush3.bf16.msra.mxu0 %v10186_v25 }
 0x9d3   :  { %7647 = vmatprep.subr.bf16.mxu0 %v10070_v34 }
 0x9d6   :  { %7649 = vmatpush3.bf16.msra.mxu0 %v10187_v27 }
 0x9d7   :  { %7650 = vmatprep.subr.bf16.mxu0 %v10070_v34 }
 0x9da   :  { %7652 = vmatpush3.bf16.msra.mxu0 %v10188_v13 }
 0x9db   :  { %7653 = vmatprep.subr.bf16.mxu0 %v10070_v34 }
 0x9dd   :  { %6916 = vmatmul.mubr.msk.f32.vlgmr.msra.gmra.mrb[22].mxu0 %vm2284_vm11, %v4723_v59 }
 0x9de   :  { %7655 = vmatpush3.bf16.msra.mxu0 %v10189_v12  ;;  %6938 = vmatprep.mubr.msk.f32.mxu0 %vm7866_vm1, %v10073_v11 }
 0x9df   :  { %7656 = vmatprep.subr.bf16.mxu0 %v10070_v34 }
 0x9e2   :  { %7658 = vmatpush3.bf16.msra.mxu0 %v10190_v3 }
 0x9e3   :  { %7659 = vmatprep.subr.bf16.mxu0 %v10070_v34 }
 0x9e6   :  { %7661 = vmatpush3.bf16.msra.mxu0 %v10191_v51 }
 0x9e7   :  { %7662 = vmatprep.subr.bf16.mxu0 %v10070_v34 }
 0x9ea   :  { %7664 = vmatpush3.bf16.msra.mxu0 %v10192_v8 }
 0x9eb   :  { %7665 = vmatprep.subr.bf16.mxu0 %v10070_v34 }
 0x9ee   :  { %7667 = vmatpush3.bf16.msra.mxu0 %v10193_v16 }
 0x9f1   :  { %6939 = vmatmul.mubr.msk.f32.vlgmr.msra.gmra.mrb[22].mxu0 %vm2284_vm11, %v4797_v26 }
 0xac4   :  { %v4866_v11 = vpop.f32.mrb[22].mxu0 }
 0xac5   :  { %v7684_v35 = vadd.f32 %v4866_v11, %v10194_v28  ;;  %v6940_v36 = vpop.f32.mrb[23].mxu0 }
 0xac7   :  { %v4871_v46 = vmax.f32 %v7684_v35, 0.0 }
 0xac9   :  { %6958 = vmatmul.mubr.msk.f32.vlgmr.msra.gmra.mrb[36].mxu1 %vm2582_vm12, %v4871_v46 }
 0xb9c   :  { %v4941_v54 = vpop.f32.mrb[36].mxu1 }
 0xb9d   :  { %v4942_v1 = vadd.f32 %v4941_v54, %v9667_v38  ;;  %v6959_v31 = vpop.f32.mrb[37].mxu1 }
 0xb9f   :  { %4945 = vst [vmem:[#allocation2 + $0x1] sm:$0x1] %v4942_v1 }
 0xba0   :  { %7852 = shalt.err (!%p7849_p4)
}
 0xba1   :  { %s7853_s28 = scalar_lea.hbm %s9997_s15, 32 }
 0xba2   :  { %p7854_p5 = scmp.ne.s32.totalorder %s9997_s15, %s7853_s28  ;;  %p7857_p6 = scmp.lt.u32.totalorder %s7853_s28, %s9997_s15 }
 0xba4   :  { %p7859_p7 = pnand %p7857_p6, %p7854_p5 }
 0xba6   :  { %7862 = shalt.err (!%p7859_p7)
}
 0xba7   :  { %4955 = dma.vmem_to_hbm [thread:$0]  %s4953_s9, 32, %s9997_s15, [#allocation3]  }
 0xba8   :  { %7863 = dma.done.wait [#allocation3], 32  }
 0xba9   :  { %7864 = vsyncadd [#allocation3], 4294967264 }
 0xbaa   :  { %4959 = vsyncpa [#allocation3], 1 }

</bundles_post_ra>
